<compile_context>
chip_gen: v7x
topology: tpu7x:2x2x1
jax: 0.10.0
libtpu: 0.0.40
codegen_flags: <defaults>
</compile_context>

<pallas_src>
import math

import jax
import jax.numpy as jnp
from jax.experimental import pallas as pl
from jax.experimental.pallas import tpu as pltpu

_NEG_SLOPE = 0.01  # torch nn.LeakyReLU default
_BN_EPS = 1e-5     # torch nn.BatchNorm1d default


def _round_up(n, m):
    return ((n + m - 1) // m) * m


# ---------------------------------------------------------------------------
# Kernel: one batch tile through all 5 (BN-folded) linear layers.
# ---------------------------------------------------------------------------
def _classifier_kernel(x_ref, w1_ref, w2_ref, w3_ref, w4_ref, w5_ref,
                       bias_ref, out_ref):
    def leaky(h):  # f32 elementwise on the VPU
        return jnp.maximum(h, _NEG_SLOPE * h)

    # Cast the f32 input tile to bf16 on the VPU (free filler under the MXU)
    # instead of paying a separate host-side convert + extra HBM pass.
    x = x_ref[...].astype(jnp.bfloat16)

    h = jnp.dot(x, w1_ref[...], preferred_element_type=jnp.float32)
    h = leaky(h + bias_ref[0:1, :w1_ref.shape[1]])

    h = jnp.dot(h.astype(jnp.bfloat16), w2_ref[...],
                preferred_element_type=jnp.float32)
    h = leaky(h + bias_ref[1:2, :w2_ref.shape[1]])

    h = jnp.dot(h.astype(jnp.bfloat16), w3_ref[...],
                preferred_element_type=jnp.float32)
    h = leaky(h + bias_ref[2:3, :w3_ref.shape[1]])

    h = jnp.dot(h.astype(jnp.bfloat16), w4_ref[...],
                preferred_element_type=jnp.float32)
    h = leaky(h + bias_ref[3:4, :w4_ref.shape[1]])

    out = jnp.dot(h.astype(jnp.bfloat16), w5_ref[...],
                  preferred_element_type=jnp.float32)
    out = out + bias_ref[4:5, :w5_ref.shape[1]]
    out_ref[...] = out.astype(out_ref.dtype)   # bf16 lane-dense store


# ---------------------------------------------------------------------------
# Host-side parameter prep: fold eval-mode BN into the Linears (in f32),
# cast to bf16, pad the last layer to a lane-dense width, pack biases.
# ---------------------------------------------------------------------------
def pack_params(raw, output_dim):
    ws, bs = [], []
    for idx in range(1, 5):  # layers 1..4 have BatchNorm1d after them
        W = raw[f"W{idx}"]          # [out, in] (torch layout)
        b = raw[f"b{idx}"]          # [out]
        scale = raw[f"gamma{idx}"] / jnp.sqrt(raw[f"var{idx}"] + _BN_EPS)
        ws.append((W * scale[:, None]).T)                         # [in, out]
        bs.append((b - raw[f"mean{idx}"]) * scale + raw[f"beta{idx}"])

    out_pad = _round_up(max(output_dim, 128), 128)
    W5 = jnp.pad(raw["W5"].T, ((0, 0), (0, out_pad - output_dim)))  # [128, out_pad]
    b5 = jnp.pad(raw["b5"], (0, out_pad - output_dim))
    ws.append(W5)
    bs.append(b5)

    bias_w = max(512, out_pad)
    bias_pack = jnp.zeros((8, bias_w), jnp.float32)
    for i, b in enumerate(bs):
        bias_pack = bias_pack.at[i, :b.shape[0]].set(b.astype(jnp.float32))

    return {
        "weights": [w.astype(jnp.bfloat16) for w in ws],
        "bias_pack": bias_pack,
        "out_pad": out_pad,
    }


# ---------------------------------------------------------------------------
# Forward wrapper: batch tiling + pallas_call.
# ---------------------------------------------------------------------------
def _choose_tile_b(B, tile_b_max):
    """Multiple of 256 (fills the 2x256 MXU rows on v6e/v7x). If the whole
    batch fits in <= tile_b_max rows, run it as a single grid step; otherwise
    use tile_b_max-row tiles."""
    tile_b_max = max(256, _round_up(tile_b_max, 256))
    return min(tile_b_max, _round_up(B, 256))


def classifier_forward(x, packed, output_dim, *, tile_b_max=512):
    B, d_in = x.shape
    weights = packed["weights"]
    bias_pack = packed["bias_pack"]
    out_pad = packed["out_pad"]

    tile_b = _choose_tile_b(B, tile_b_max)
    b_pad = _round_up(B, tile_b)
    if b_pad != B:  # only for ragged batches; no host pass otherwise
        x = jnp.pad(x, ((0, b_pad - B), (0, 0)))
    n_tiles = b_pad // tile_b

    in_specs = [pl.BlockSpec((tile_b, d_in), lambda i: (i, 0))]
    # Constant index_maps: weights + bias slab fetched once, VMEM-resident
    # across all grid steps.
    in_specs += [pl.BlockSpec(w.shape, lambda i: (0, 0)) for w in weights]
    in_specs += [pl.BlockSpec(bias_pack.shape, lambda i: (0, 0))]
    out_spec = pl.BlockSpec((tile_b, out_pad), lambda i: (i, 0))

    out = pl.pallas_call(
        _classifier_kernel,
        out_shape=jax.ShapeDtypeStruct((b_pad, out_pad), jnp.bfloat16),
        grid=(n_tiles,),
        in_specs=in_specs,
        out_specs=out_spec,
        compiler_params=pltpu.CompilerParams(
            dimension_semantics=("parallel",),
            vmem_limit_bytes=32 * 1024 * 1024),
    )(x, *weights, bias_pack)

    return out[:B, :output_dim].astype(jnp.float32)


# ---------------------------------------------------------------------------
# Synthetic params + pure-JAX references for correctness checks.
# ---------------------------------------------------------------------------
def init_raw_params(key, input_dim, output_dim):
    dims = [(input_dim, 512), (512, 512), (512, 256), (256, 128),
            (128, output_dim)]
    raw = {}
    for idx, (fi, fo) in enumerate(dims, start=1):
        key, kw, kb = jax.random.split(key, 3)
        bound = 1.0 / math.sqrt(fi)
        raw[f"W{idx}"] = jax.random.uniform(kw, (fo, fi), jnp.float32,
                                            -bound, bound)
        raw[f"b{idx}"] = jax.random.uniform(kb, (fo,), jnp.float32,
                                            -bound, bound)
        if idx < 5:  # BN params for the first four blocks
            key, kg, kbe, km, kv = jax.random.split(key, 5)
            raw[f"gamma{idx}"] = jax.random.uniform(kg, (fo,), jnp.float32,
                                                    0.5, 1.5)
            raw[f"beta{idx}"] = jax.random.normal(kbe, (fo,), jnp.float32) * 0.1
            raw[f"mean{idx}"] = jax.random.normal(km, (fo,), jnp.float32) * 0.1
            raw[f"var{idx}"] = jax.random.uniform(kv, (fo,), jnp.float32,
                                                  0.5, 1.5)
    return raw


def _reference_forward_f32(x, raw):
    """Unfolded, full-f32 eval-mode forward (matches the torch module)."""
    h = x
    for i in range(1, 5):
        h = h @ raw[f"W{i}"].T + raw[f"b{i}"]
        inv = 1.0 / jnp.sqrt(raw[f"var{i}"] + _BN_EPS)
        h = raw[f"gamma{i}"] * (h - raw[f"mean{i}"]) * inv + raw[f"beta{i}"]
        h = jnp.maximum(h, _NEG_SLOPE * h)
        # dropout: identity in eval mode
    return h @ raw["W5"].T + raw["b5"]


def _reference_forward_folded(x, packed, output_dim):
    """Same numerics as the kernel (bf16 weights/acts, f32 accum, bf16 out)."""
    ws = packed["weights"]
    biases = packed["bias_pack"]
    h = x.astype(jnp.bfloat16)
    for i in range(4):
        h = jnp.dot(h, ws[i], preferred_element_type=jnp.float32)
        h = h + biases[i, :ws[i].shape[1]]
        h = jnp.maximum(h, _NEG_SLOPE * h).astype(jnp.bfloat16)
    out = jnp.dot(h, ws[4], preferred_element_type=jnp.float32)
    out = out + biases[4, :ws[4].shape[1]]
    return out.astype(jnp.bfloat16).astype(jnp.float32)[:, :output_dim]


if __name__ == "__main__":
    batch, input_dim, output_dim = 256, 128, 10

    key = jax.random.PRNGKey(0)
    key, kx = jax.random.split(key)
    x = jax.random.normal(kx, (batch, input_dim), jnp.float32)

    raw = init_raw_params(key, input_dim, output_dim)
    packed = pack_params(raw, output_dim)

    out = classifier_forward(x, packed, output_dim)
    jax.block_until_ready(out)

    assert out.shape == (batch, output_dim)

    # Tight check vs. a pure-JAX model with identical (bf16-folded) numerics.
    ref_folded = _reference_forward_folded(x, packed, output_dim)
    assert jnp.allclose(out, ref_folded, atol=5e-2, rtol=2e-2)

    # Loose check vs. the full-precision eval-mode torch-equivalent forward
    # (difference is only the bf16 weight/activation/output cast).
    ref_f32 = _reference_forward_f32(x, raw)
    rel_err = jnp.max(jnp.abs(out - ref_f32)) / (jnp.max(jnp.abs(ref_f32)) + 1e-6)
    assert float(rel_err) < 0.05

    print("KERNEL_OK")
</pallas_src>

<mosaic_0001>
module attributes {stable_mosaic.version = 11 : i64} {
  func.func @_classifier_kernel(%arg0: i32, %arg1: memref<256x128xf32, #tpu.memory_space<vmem>>, %arg2: memref<128x512xbf16, #tpu.memory_space<vmem>>, %arg3: memref<512x512xbf16, #tpu.memory_space<vmem>>, %arg4: memref<512x256xbf16, #tpu.memory_space<vmem>>, %arg5: memref<256x128xbf16, #tpu.memory_space<vmem>>, %arg6: memref<128x128xbf16, #tpu.memory_space<vmem>>, %arg7: memref<8x512xf32, #tpu.memory_space<vmem>>, %arg8: memref<256x128xbf16, #tpu.memory_space<vmem>>) attributes {dimension_semantics = [#tpu.dimension_semantics<parallel>], iteration_bounds = array<i64: 1>, scalar_prefetch = 0 : i64, scratch_operands = 0 : i64, tpu.core_type = #tpu.core_type<tc>, window_params = [{transform_indices = @transform_0, window_bounds = array<i64: 256, 128>}, {pipeline_mode = #tpu.pipeline_mode<synchronous>, transform_indices = @transform_1, window_bounds = array<i64: 128, 512>}, {pipeline_mode = #tpu.pipeline_mode<synchronous>, transform_indices = @transform_2, window_bounds = array<i64: 512, 512>}, {pipeline_mode = #tpu.pipeline_mode<synchronous>, transform_indices = @transform_3, window_bounds = array<i64: 512, 256>}, {pipeline_mode = #tpu.pipeline_mode<synchronous>, transform_indices = @transform_4, window_bounds = array<i64: 256, 128>}, {pipeline_mode = #tpu.pipeline_mode<synchronous>, transform_indices = @transform_5, window_bounds = array<i64: 128, 128>}, {pipeline_mode = #tpu.pipeline_mode<synchronous>, transform_indices = @transform_6, window_bounds = array<i64: 8, 512>}, {transform_indices = @transform_7, window_bounds = array<i64: 256, 128>}]} {
    %c0 = arith.constant 0 : index
    %c0_0 = arith.constant 0 : index
    %0 = vector.load %arg1[%c0, %c0_0] : memref<256x128xf32, #tpu.memory_space<vmem>>, vector<256x128xf32>
    %1 = arith.truncf %0 : vector<256x128xf32> to vector<256x128xbf16>
    %c0_1 = arith.constant 0 : index
    %c0_2 = arith.constant 0 : index
    %2 = vector.load %arg2[%c0_1, %c0_2] : memref<128x512xbf16, #tpu.memory_space<vmem>>, vector<128x512xbf16>
    %cst = arith.constant dense<0.000000e+00> : vector<256x512xf32>
    %3 = tpu.matmul %1, %2, %cst {dimension_numbers = #tpu.dot_dimension_numbers<[1], [0], [0], [1], [0, 0, 1, 1], [], []>} : vector<256x128xbf16>, vector<128x512xbf16>, vector<256x512xf32> -> vector<256x512xf32>
    %c0_3 = arith.constant 0 : index
    %c0_4 = arith.constant 0 : index
    %4 = vector.load %arg7[%c0_3, %c0_4] : memref<8x512xf32, #tpu.memory_space<vmem>>, vector<1x512xf32>
    %5 = vector.broadcast %4 : vector<1x512xf32> to vector<256x512xf32>
    %6 = arith.addf %3, %5 : vector<256x512xf32>
    %cst_5 = arith.constant 0.00999999977 : f32
    %7 = vector.broadcast %cst_5 : f32 to vector<256x512xf32>
    %8 = arith.mulf %7, %6 : vector<256x512xf32>
    %9 = arith.maximumf %6, %8 : vector<256x512xf32>
    %10 = arith.truncf %9 : vector<256x512xf32> to vector<256x512xbf16>
    %c0_6 = arith.constant 0 : index
    %c0_7 = arith.constant 0 : index
    %11 = vector.load %arg3[%c0_6, %c0_7] : memref<512x512xbf16, #tpu.memory_space<vmem>>, vector<512x512xbf16>
    %cst_8 = arith.constant dense<0.000000e+00> : vector<256x512xf32>
    %12 = tpu.matmul %10, %11, %cst_8 {dimension_numbers = #tpu.dot_dimension_numbers<[1], [0], [0], [1], [0, 0, 1, 1], [], []>} : vector<256x512xbf16>, vector<512x512xbf16>, vector<256x512xf32> -> vector<256x512xf32>
    %c1 = arith.constant 1 : index
    %c0_9 = arith.constant 0 : index
    %13 = vector.load %arg7[%c1, %c0_9] : memref<8x512xf32, #tpu.memory_space<vmem>>, vector<1x512xf32>
    %14 = vector.broadcast %13 : vector<1x512xf32> to vector<256x512xf32>
    %15 = arith.addf %12, %14 : vector<256x512xf32>
    %cst_10 = arith.constant 0.00999999977 : f32
    %16 = vector.broadcast %cst_10 : f32 to vector<256x512xf32>
    %17 = arith.mulf %16, %15 : vector<256x512xf32>
    %18 = arith.maximumf %15, %17 : vector<256x512xf32>
    %19 = arith.truncf %18 : vector<256x512xf32> to vector<256x512xbf16>
    %c0_11 = arith.constant 0 : index
    %c0_12 = arith.constant 0 : index
    %20 = vector.load %arg4[%c0_11, %c0_12] : memref<512x256xbf16, #tpu.memory_space<vmem>>, vector<512x256xbf16>
    %cst_13 = arith.constant dense<0.000000e+00> : vector<256x256xf32>
    %21 = tpu.matmul %19, %20, %cst_13 {dimension_numbers = #tpu.dot_dimension_numbers<[1], [0], [0], [1], [0, 0, 1, 1], [], []>} : vector<256x512xbf16>, vector<512x256xbf16>, vector<256x256xf32> -> vector<256x256xf32>
    %c2 = arith.constant 2 : index
    %c0_14 = arith.constant 0 : index
    %22 = vector.load %arg7[%c2, %c0_14] : memref<8x512xf32, #tpu.memory_space<vmem>>, vector<1x256xf32>
    %23 = vector.broadcast %22 : vector<1x256xf32> to vector<256x256xf32>
    %24 = arith.addf %21, %23 : vector<256x256xf32>
    %cst_15 = arith.constant 0.00999999977 : f32
    %25 = vector.broadcast %cst_15 : f32 to vector<256x256xf32>
    %26 = arith.mulf %25, %24 : vector<256x256xf32>
    %27 = arith.maximumf %24, %26 : vector<256x256xf32>
    %28 = arith.truncf %27 : vector<256x256xf32> to vector<256x256xbf16>
    %c0_16 = arith.constant 0 : index
    %c0_17 = arith.constant 0 : index
    %29 = vector.load %arg5[%c0_16, %c0_17] : memref<256x128xbf16, #tpu.memory_space<vmem>>, vector<256x128xbf16>
    %cst_18 = arith.constant dense<0.000000e+00> : vector<256x128xf32>
    %30 = tpu.matmul %28, %29, %cst_18 {dimension_numbers = #tpu.dot_dimension_numbers<[1], [0], [0], [1], [0, 0, 1, 1], [], []>} : vector<256x256xbf16>, vector<256x128xbf16>, vector<256x128xf32> -> vector<256x128xf32>
    %c3 = arith.constant 3 : index
    %c0_19 = arith.constant 0 : index
    %31 = vector.load %arg7[%c3, %c0_19] : memref<8x512xf32, #tpu.memory_space<vmem>>, vector<1x128xf32>
    %32 = vector.broadcast %31 : vector<1x128xf32> to vector<256x128xf32>
    %33 = arith.addf %30, %32 : vector<256x128xf32>
    %cst_20 = arith.constant 0.00999999977 : f32
    %34 = vector.broadcast %cst_20 : f32 to vector<256x128xf32>
    %35 = arith.mulf %34, %33 : vector<256x128xf32>
    %36 = arith.maximumf %33, %35 : vector<256x128xf32>
    %37 = arith.truncf %36 : vector<256x128xf32> to vector<256x128xbf16>
    %c0_21 = arith.constant 0 : index
    %c0_22 = arith.constant 0 : index
    %38 = vector.load %arg6[%c0_21, %c0_22] : memref<128x128xbf16, #tpu.memory_space<vmem>>, vector<128x128xbf16>
    %cst_23 = arith.constant dense<0.000000e+00> : vector<256x128xf32>
    %39 = tpu.matmul %37, %38, %cst_23 {dimension_numbers = #tpu.dot_dimension_numbers<[1], [0], [0], [1], [0, 0, 1, 1], [], []>} : vector<256x128xbf16>, vector<128x128xbf16>, vector<256x128xf32> -> vector<256x128xf32>
    %c4 = arith.constant 4 : index
    %c0_24 = arith.constant 0 : index
    %40 = vector.load %arg7[%c4, %c0_24] : memref<8x512xf32, #tpu.memory_space<vmem>>, vector<1x128xf32>
    %41 = vector.broadcast %40 : vector<1x128xf32> to vector<256x128xf32>
    %42 = arith.addf %39, %41 : vector<256x128xf32>
    %43 = arith.truncf %42 : vector<256x128xf32> to vector<256x128xbf16>
    %c0_25 = arith.constant 0 : index
    %c0_26 = arith.constant 0 : index
    %44 = vector.load %arg8[%c0_25, %c0_26] : memref<256x128xbf16, #tpu.memory_space<vmem>>, vector<256x128xbf16>
    tpu.vector_store %arg8[%c0_25, %c0_26], %43 {strides = array<i32>} : memref<256x128xbf16, #tpu.memory_space<vmem>>, vector<256x128xbf16>,
    return
  }
  func.func @transform_0(%arg0: i32) -> (i32, i32) {
    %c0_i32 = arith.constant 0 : i32
    %c0_i32_0 = arith.constant 0 : i32
    return %arg0, %c0_i32 : i32, i32
  }
  func.func @transform_1(%arg0: i32) -> (i32, i32) {
    %c0_i32 = arith.constant 0 : i32
    %c0_i32_0 = arith.constant 0 : i32
    %c0_i32_1 = arith.constant 0 : i32
    return %c0_i32, %c0_i32_0 : i32, i32
  }
  func.func @transform_2(%arg0: i32) -> (i32, i32) {
    %c0_i32 = arith.constant 0 : i32
    %c0_i32_0 = arith.constant 0 : i32
    %c0_i32_1 = arith.constant 0 : i32
    return %c0_i32, %c0_i32_0 : i32, i32
  }
  func.func @transform_3(%arg0: i32) -> (i32, i32) {
    %c0_i32 = arith.constant 0 : i32
    %c0_i32_0 = arith.constant 0 : i32
    %c0_i32_1 = arith.constant 0 : i32
    return %c0_i32, %c0_i32_0 : i32, i32
  }
  func.func @transform_4(%arg0: i32) -> (i32, i32) {
    %c0_i32 = arith.constant 0 : i32
    %c0_i32_0 = arith.constant 0 : i32
    %c0_i32_1 = arith.constant 0 : i32
    return %c0_i32, %c0_i32_0 : i32, i32
  }
  func.func @transform_5(%arg0: i32) -> (i32, i32) {
    %c0_i32 = arith.constant 0 : i32
    %c0_i32_0 = arith.constant 0 : i32
    %c0_i32_1 = arith.constant 0 : i32
    return %c0_i32, %c0_i32_0 : i32, i32
  }
  func.func @transform_6(%arg0: i32) -> (i32, i32) {
    %c0_i32 = arith.constant 0 : i32
    %c0_i32_0 = arith.constant 0 : i32
    %c0_i32_1 = arith.constant 0 : i32
    return %c0_i32, %c0_i32_0 : i32, i32
  }
  func.func @transform_7(%arg0: i32) -> (i32, i32) {
    %c0_i32 = arith.constant 0 : i32
    %c0_i32_0 = arith.constant 0 : i32
    return %arg0, %c0_i32 : i32, i32
  }
}

</mosaic_0001>

<bundles_post_ra>
// kernel: tpu_custom_call.1
= control target key start
LH: loop header
LB: loop body
LE: loop exit
PB: predicated region body
PF: predicated region fallthrough
CT: control target
= control target key end

     0   :  { %12 = vsyncpa [#allocation3], 0  ;;  %s7300_s0 = inlined_call_operand.hbm [shape: f32[256,128], index: 0, kind: input, shape index: {}]   ;;  %s7301_s1 = inlined_call_operand.hbm [shape: bf16[128,512], index: 1, kind: input, shape index: {}]   ;;  %s7302_s2 = inlined_call_operand.hbm [shape: bf16[512,512], index: 2, kind: input, shape index: {}]   ;;  %s7303_s3 = inlined_call_operand.hbm [shape: bf16[512,256], index: 3, kind: input, shape index: {}]   ;;  %s7304_s4 = inlined_call_operand.hbm [shape: bf16[256,128], index: 4, kind: input, shape index: {}]   ;;  %s7305_s5 = inlined_call_operand.hbm [shape: bf16[128,128], index: 5, kind: input, shape index: {}]   ;;  %s7306_s6 = inlined_call_operand.hbm [shape: f32[8,512], index: 6, kind: input, shape index: {}]   ;;  %s7307_s7 = inlined_call_operand.hbm [shape: bf16[256,128], index: 7, kind: output, shape index: {}]  }
   0x1   :  { %13 = vsyncpa [#allocation6], 0 }
   0x2   :  { %14 = vsyncpa [#allocation9], 0 }
   0x3   :  { %15 = vsyncpa [#allocation12], 0 }
   0x4   :  { %16 = vsyncpa [#allocation4], 0  ;;  %s6243_s24 = smov [#allocation5]   ;;  %s6057_s28 = scalar_lea.hbm %s7301_s1, 4096 }
   0x5   :  { %s34_s25 = sshll.u32 %s6243_s24, 4  ;;  %p6058_p0 = scmp.ne.s32.totalorder %s7301_s1, %s6057_s28  ;;  %s35_s25 = int_to_ptr.vmem [resolvable:$true] %s34_s25 }
   0x6   :  { %p6061_p1 = scmp.lt.u32.totalorder %s6057_s28, %s7301_s1 }
   0x8   :  { %p6063_p2 = pnand %p6061_p1, %p6058_p0 }
   0xa   :  { %6066 = shalt.err (!%p6063_p2)
}
   0xb   :  { %s6067_s10 = scalar_lea.vmem %s35_s25, 4096  ;;  %p6072_p4 = scmp.lt.s32.totalorder %s35_s25, %s35_s25 }
   0xc   :  { %p6068_p3 = scmp.ne.s32.totalorder %s35_s25, %s6067_s10  ;;  %p6073_p5 = scmp.lt.s32.totalorder %s6067_s10, %s6067_s10 }
   0xe   :  { %p6074_p6 = por %p6073_p5, %p6072_p4 }
  0x10   :  { %p6075_p7 = pnand %p6074_p6, %p6068_p3 }
  0x12   :  { %6078 = shalt.err (!%p6075_p7)
}
  0x13   :  { %s6244_s11 = smov 256   ;;  %s6245_s12 = smov 16  }
  0x14   :  { %40 = dma.hbm_to_vmem [thread:$0]  %s7301_s1, 4096, %s35_s25, [#allocation6], %s6244_s11, %s6244_s11, %s6245_s12  }
  0x15   :  { %s6246_s15 = smov [#allocation8]   ;;  %s6079_s19 = scalar_lea.hbm %s7303_s3, 8192 }
  0x16   :  { %s58_s16 = sshll.u32 %s6246_s15, 4  ;;  %p6080_p8 = scmp.ne.s32.totalorder %s7303_s3, %s6079_s19  ;;  %s59_s16 = int_to_ptr.vmem [resolvable:$true] %s58_s16 }
  0x17   :  { %p6083_p9 = scmp.lt.u32.totalorder %s6079_s19, %s7303_s3 }
  0x19   :  { %p6085_p10 = pnand %p6083_p9, %p6080_p8 }
  0x1b   :  { %6088 = shalt.err (!%p6085_p10)
}
  0x1c   :  { %s6089_s24 = scalar_lea.vmem %s59_s16, 8192  ;;  %p6094_p12 = scmp.lt.s32.totalorder %s59_s16, %s59_s16 }
  0x1d   :  { %p6090_p11 = scmp.ne.s32.totalorder %s59_s16, %s6089_s24  ;;  %p6095_p13 = scmp.lt.s32.totalorder %s6089_s24, %s6089_s24 }
  0x1f   :  { %p6096_p0 = por %p6095_p13, %p6094_p12 }
  0x21   :  { %p6097_p1 = pnand %p6096_p0, %p6090_p11 }
  0x23   :  { %6100 = shalt.err (!%p6097_p1)
}
  0x24   :  { %s6247_s1 = smov 128   ;;  %s6248_s25 = smov 8  }
  0x25   :  { %64 = dma.hbm_to_vmem [thread:$0]  %s7303_s3, 8192, %s59_s16, [#allocation9], %s6247_s1, %s6247_s1, %s6248_s25  }
  0x26   :  { %s6249_s28 = smov [#allocation11]   ;;  %s6250_s30 = smov [#allocation2]  }
  0x27   :  { %s82_s29 = sshll.u32 %s6249_s28, 4  ;;  %s22_s8 = sshll.u32 %s6250_s30, 4  ;;  %s83_s29 = int_to_ptr.vmem [resolvable:$true] %s82_s29  ;;  %s6328_s8 = int_to_ptr.vmem [resolvable:$true] %s22_s8 }
  0x28   :  { %s6101_s13 = scalar_lea.hbm %s7305_s5, 1024 }
  0x29   :  { %p6102_p2 = scmp.ne.s32.totalorder %s7305_s5, %s6101_s13  ;;  %p6105_p3 = scmp.lt.u32.totalorder %s6101_s13, %s7305_s5 }
  0x2b   :  { %p6107_p4 = pnand %p6105_p3, %p6102_p2 }
  0x2d   :  { %6110 = shalt.err (!%p6107_p4)
}
  0x2e   :  { %s6111_s3 = scalar_lea.vmem %s83_s29, 1024  ;;  %p6116_p6 = scmp.lt.s32.totalorder %s83_s29, %s83_s29 }
  0x2f   :  { %p6112_p5 = scmp.ne.s32.totalorder %s83_s29, %s6111_s3  ;;  %p6117_p7 = scmp.lt.s32.totalorder %s6111_s3, %s6111_s3 }
  0x31   :  { %p6118_p8 = por %p6117_p7, %p6116_p6 }
  0x33   :  { %p6119_p9 = pnand %p6118_p8, %p6112_p5 }
  0x35   :  { %6122 = shalt.err (!%p6119_p9)
}
  0x36   :  { %s6251_s16 = smov 64   ;;  %s6252_s19 = smov 4  }
  0x37   :  { %88 = dma.hbm_to_vmem [thread:$0]  %s7305_s5, 1024, %s83_s29, [#allocation12], %s6251_s16, %s6251_s16, %s6252_s19  }
  0x38   :  { %s6123_s24 = scalar_lea.hbm %s7300_s0, 4096 }
  0x39   :  { %p6124_p10 = scmp.ne.s32.totalorder %s7300_s0, %s6123_s24  ;;  %p6127_p11 = scmp.lt.u32.totalorder %s6123_s24, %s7300_s0 }
  0x3b   :  { %p6129_p12 = pnand %p6127_p11, %p6124_p10 }
  0x3d   :  { %6132 = shalt.err (!%p6129_p12)
}
  0x3e   :  { %s6133_s9 = scalar_lea.vmem %s6328_s8, 4096  ;;  %p6138_p0 = scmp.lt.s32.totalorder %s6328_s8, %s6328_s8 }
  0x3f   :  { %p6134_p13 = scmp.ne.s32.totalorder %s6328_s8, %s6133_s9  ;;  %p6139_p1 = scmp.lt.s32.totalorder %s6133_s9, %s6133_s9 }
  0x41   :  { %p6140_p2 = por %p6139_p1, %p6138_p0 }
  0x43   :  { %p6141_p3 = pnand %p6140_p2, %p6134_p13 }
  0x45   :  { %6144 = shalt.err (!%p6141_p3)
}
  0x46   :  { %28 = dma.hbm_to_vmem [thread:$0]  %s7300_s0, 4096, %s6328_s8, [#allocation3], %s6247_s1, %s6247_s1, %s6248_s25  }
  0x47   :  { %s6253_s10 = smov [#allocation7]   ;;  %s6254_s14 = smov [#allocation10]  }
  0x48   :  { %s46_s13 = sshll.u32 %s6253_s10, 4  ;;  %s70_s15 = sshll.u32 %s6254_s14, 4  ;;  %s47_s13 = int_to_ptr.vmem [resolvable:$true] %s46_s13  ;;  %s6365_s15 = int_to_ptr.vmem [resolvable:$true] %s70_s15 }
  0x49   :  { %s6145_s3 = scalar_lea.hbm %s7302_s2, 16384 }
  0x4a   :  { %p6146_p4 = scmp.ne.s32.totalorder %s7302_s2, %s6145_s3  ;;  %p6149_p5 = scmp.lt.u32.totalorder %s6145_s3, %s7302_s2 }
  0x4c   :  { %p6151_p6 = pnand %p6149_p5, %p6146_p4 }
  0x4e   :  { %6154 = shalt.err (!%p6151_p6)
}
  0x4f   :  { %s6155_s0 = scalar_lea.vmem %s47_s13, 16384  ;;  %p6160_p8 = scmp.lt.s32.totalorder %s47_s13, %s47_s13 }
  0x50   :  { %p6156_p7 = scmp.ne.s32.totalorder %s47_s13, %s6155_s0  ;;  %p6161_p9 = scmp.lt.s32.totalorder %s6155_s0, %s6155_s0 }
  0x52   :  { %p6162_p10 = por %p6161_p9, %p6160_p8 }
  0x54   :  { %p6163_p11 = pnand %p6162_p10, %p6156_p7 }
  0x56   :  { %6166 = shalt.err (!%p6163_p11)
}
  0x57   :  { %52 = dma.hbm_to_vmem [thread:$0]  %s7302_s2, 16384, %s47_s13, [#allocation6], %s6244_s11, %s6244_s11, %s6245_s12  }
  0x58   :  { %s6167_s26 = scalar_lea.hbm %s7304_s4, 2048 }
  0x59   :  { %p6168_p12 = scmp.ne.s32.totalorder %s7304_s4, %s6167_s26  ;;  %p6171_p13 = scmp.lt.u32.totalorder %s6167_s26, %s7304_s4 }
  0x5b   :  { %p6173_p0 = pnand %p6171_p13, %p6168_p12 }
  0x5d   :  { %6176 = shalt.err (!%p6173_p0)
}
  0x5e   :  { %s6177_s5 = scalar_lea.vmem %s6365_s15, 2048  ;;  %p6182_p2 = scmp.lt.s32.totalorder %s6365_s15, %s6365_s15 }
  0x5f   :  { %p6178_p1 = scmp.ne.s32.totalorder %s6365_s15, %s6177_s5  ;;  %p6183_p3 = scmp.lt.s32.totalorder %s6177_s5, %s6177_s5 }
  0x61   :  { %p6184_p4 = por %p6183_p3, %p6182_p2 }
  0x63   :  { %p6185_p5 = pnand %p6184_p4, %p6178_p1 }
  0x65   :  { %6188 = shalt.err (!%p6185_p5)
}
  0x66   :  { %76 = dma.hbm_to_vmem [thread:$0]  %s7304_s4, 2048, %s6365_s15, [#allocation9], %s6251_s16, %s6251_s16, %s6252_s19  }
  0x67   :  { %s6255_s12 = smov [#allocation13]   ;;  %s6189_s14 = scalar_lea.hbm %s7306_s6, 512 }
  0x68   :  { %s95_s29 = sshll.u32 %s6255_s12, 4  ;;  %p6190_p6 = scmp.ne.s32.totalorder %s7306_s6, %s6189_s14  ;;  %s96_s29 = int_to_ptr.vmem [resolvable:$true] %s95_s29 }
  0x69   :  { %p6193_p7 = scmp.lt.u32.totalorder %s6189_s14, %s7306_s6 }
  0x6b   :  { %p6195_p8 = pnand %p6193_p7, %p6190_p6 }
  0x6d   :  { %6198 = shalt.err (!%p6195_p8)
}
  0x6e   :  { %s6199_s21 = scalar_lea.vmem %s96_s29, 512  ;;  %p6204_p10 = scmp.lt.s32.totalorder %s96_s29, %s96_s29 }
  0x6f   :  { %p6200_p9 = scmp.ne.s32.totalorder %s96_s29, %s6199_s21  ;;  %p6205_p11 = scmp.lt.s32.totalorder %s6199_s21, %s6199_s21 }
  0x71   :  { %p6206_p12 = por %p6205_p11, %p6204_p10 }
  0x73   :  { %p6207_p13 = pnand %p6206_p12, %p6200_p9 }
  0x75   :  { %6210 = shalt.err (!%p6207_p13)
}
  0x76   :  { %98 = dma.hbm_to_vmem [thread:$0]  %s7306_s6, 512, %s96_s29, [#allocation12]  }
  0x77   :  { %6233 = dma.done.wait [#allocation3], 4096  }
  0x78   :  { %6234 = vsyncadd [#allocation3], 4294963200 }
  0x79   :  { %6235 = dma.done.wait [#allocation6], 20480  }
  0x7a   :  { %6236 = vsyncadd [#allocation6], 4294946816 }
  0x7b   :  { %6237 = dma.done.wait [#allocation9], 10240  }
  0x7c   :  { %6238 = vsyncadd [#allocation9], 4294957056 }
  0x7d   :  { %6239 = dma.done.wait [#allocation12], 1536  }
  0x7e   :  { %6240 = vsyncadd [#allocation12], 4294965760  ;;  %v6256_v0 = vmov 0   ;;  %v5697_v1 = vld [vmem:[#allocation5 + $0x4] ss:$16 sps:$4 sm:$0xff]   ;;  %v122_v18 = vld [vmem:[#allocation2 + $0x8] sm:$0xff] }
  0x7f   :  { %415 = vmatprep.mubr.bf16.mxu0 %v6256_v0  ;;  %535 = vmatprep.mubr.bf16.mxu1 %v6256_v0  ;;  %v5699_v2 = vld [vmem:[#allocation5] ss:$16 sps:$4 sm:$0xff]   ;;  %v5700_v3 = vld [vmem:[#allocation5 + $0x24] ss:$16 sps:$4 sm:$0xff]   ;;  %v146_v20 = vld [vmem:[#allocation2 + $0xc8] sm:$0xff]  ;;  %s6257_s6 = smov [#allocation14]  }
  0x80   :  { %383 = vmatprep.subr.bf16.mxu0 %v5697_v1  ;;  %5282 = vmatprep.subr.bf16.mxu1 %v5697_v1  ;;  %v5702_v4 = vld [vmem:[#allocation5 + $0x20] ss:$16 sps:$4 sm:$0xff]   ;;  %v5703_v5 = vld [vmem:[#allocation5 + $0x44] ss:$16 sps:$4 sm:$0xff]   ;;  %v5723_v21 = vld [vmem:[#allocation5 + $0xc] ss:$16 sps:$4 sm:$0xff]  }
  0x81   :  { %384 = vmatpush1.bf16.msra.mxu0 %v5699_v2  ;;  %5290 = vmatpush1.bf16.msra.mxu1 %v5699_v2  ;;  %v5705_v6 = vld [vmem:[#allocation5 + $0x40] ss:$16 sps:$4 sm:$0xff]   ;;  %v5706_v7 = vld [vmem:[#allocation5 + $0x64] ss:$16 sps:$4 sm:$0xff]   ;;  %v5721_v24 = vld [vmem:[#allocation5 + $0x8] ss:$16 sps:$4 sm:$0xff]  }
  0x82   :  { %385 = vmatprep.subr.bf16.mxu0 %v5700_v3  ;;  %5283 = vmatprep.subr.bf16.mxu1 %v5700_v3  ;;  %v5708_v8 = vld [vmem:[#allocation5 + $0x60] ss:$16 sps:$4 sm:$0xff]   ;;  %v5709_v9 = vld [vmem:[#allocation5 + $0x84] ss:$16 sps:$4 sm:$0xff]   ;;  %v5726_v25 = vld [vmem:[#allocation5 + $0x2c] ss:$16 sps:$4 sm:$0xff]  }
  0x83   :  { %v5711_v10 = vld [vmem:[#allocation5 + $0x80] ss:$16 sps:$4 sm:$0xff]   ;;  %v5712_v11 = vld [vmem:[#allocation5 + $0xa4] ss:$16 sps:$4 sm:$0xff]   ;;  %v124_v27 = vld [vmem:[#allocation2 + $0x18] sm:$0xff]  ;;  %s4676_s22 = sshll.u32 %s6257_s6, 4  ;;  %s4677_s22 = int_to_ptr.vmem [resolvable:$true] %s4676_s22 }
  0x84   :  { %v5714_v12 = vld [vmem:[#allocation5 + $0xa0] ss:$16 sps:$4 sm:$0xff]   ;;  %v5715_v13 = vld [vmem:[#allocation5 + $0xc4] ss:$16 sps:$4 sm:$0xff]   ;;  %v5724_v28 = vld [vmem:[#allocation5 + $0x28] ss:$16 sps:$4 sm:$0xff]   ;;  %p6216_p1 = scmp.lt.s32.totalorder %s4677_s22, %s4677_s22 }
  0x85   :  { %386 = vmatpush1.bf16.msra.mxu0 %v5702_v4  ;;  %5291 = vmatpush1.bf16.msra.mxu1 %v5702_v4  ;;  %v5717_v14 = vld [vmem:[#allocation5 + $0xc0] ss:$16 sps:$4 sm:$0xff]   ;;  %v5718_v15 = vld [vmem:[#allocation5 + $0xe4] ss:$16 sps:$4 sm:$0xff]   ;;  %v148_v32 = vld [vmem:[#allocation2 + $0xd8] sm:$0xff]  ;;  %s6211_s23 = scalar_lea.vmem %s4677_s22, 2048 }
  0x86   :  { %387 = vmatprep.subr.bf16.mxu0 %v5703_v5  ;;  %5284 = vmatprep.subr.bf16.mxu1 %v5703_v5  ;;  %v5720_v16 = vld [vmem:[#allocation5 + $0xe0] ss:$16 sps:$4 sm:$0xff]   ;;  %v5747_v29 = vld [vmem:[#allocation7 + $0x4] ss:$16 sps:$4 sm:$0xff]   ;;  %v5729_v34 = vld [vmem:[#allocation5 + $0x4c] ss:$16 sps:$4 sm:$0xff]   ;;  %p6212_p0 = scmp.ne.s32.totalorder %s4677_s22, %s6211_s23  ;;  %p6217_p2 = scmp.lt.s32.totalorder %s6211_s23, %s6211_s23 }
  0x87   :  { %v121_v17 = vld [vmem:[#allocation2] sm:$0xff]  ;;  %v123_v26 = vld [vmem:[#allocation2 + $0x10] sm:$0xff]  ;;  %v5727_v37 = vld [vmem:[#allocation5 + $0x48] ss:$16 sps:$4 sm:$0xff]  }
  0x88   :  { %v145_v19 = vld [vmem:[#allocation2 + $0xc0] sm:$0xff]  ;;  %v6416_v22 = vpack.c.bf16 %v122_v18, %v121_v17  ;;  %v147_v30 = vld [vmem:[#allocation2 + $0xd0] sm:$0xff]  ;;  %v6424_v35 = vpack.c.bf16 %v124_v27, %v123_v26  ;;  %v5732_v38 = vld [vmem:[#allocation5 + $0x6c] ss:$16 sps:$4 sm:$0xff]   ;;  %p6218_p3 = por %p6217_p2, %p6216_p1 }
  0x89   :  { %388 = vmatpush1.bf16.msra.mxu0 %v5705_v6  ;;  %5292 = vmatpush1.bf16.msra.mxu1 %v5705_v6  ;;  %v6418_v23 = vpack.c.bf16 %v146_v20, %v145_v19  ;;  %v5745_v31 = vld [vmem:[#allocation7] ss:$16 sps:$4 sm:$0xff]   ;;  %v5750_v33 = vld [vmem:[#allocation7 + $0x24] ss:$16 sps:$4 sm:$0xff]   ;;  %v6426_v36 = vpack.c.bf16 %v148_v32, %v147_v30  ;;  %v126_v40 = vld [vmem:[#allocation2 + $0x28] sm:$0xff] }
  0x8a   :  { %389 = vmatprep.subr.bf16.mxu0 %v5706_v7  ;;  %5285 = vmatprep.subr.bf16.mxu1 %v5706_v7  ;;  %v125_v39 = vld [vmem:[#allocation2 + $0x20] sm:$0xff]  ;;  %v5730_v42 = vld [vmem:[#allocation5 + $0x68] ss:$16 sps:$4 sm:$0xff]   ;;  %v5735_v46 = vld [vmem:[#allocation5 + $0x8c] ss:$16 sps:$4 sm:$0xff]   ;;  %p6219_p4 = pnand %p6218_p3, %p6212_p0 }
  0x8b   :  { %v5748_v41 = vld [vmem:[#allocation7 + $0x20] ss:$16 sps:$4 sm:$0xff]   ;;  %v5753_v43 = vld [vmem:[#allocation7 + $0x44] ss:$16 sps:$4 sm:$0xff]   ;;  %v150_v45 = vld [vmem:[#allocation2 + $0xe8] sm:$0xff]  ;;  %v6432_v48 = vpack.c.bf16 %v126_v40, %v125_v39 }
  0x8c   :  { %v149_v44 = vld [vmem:[#allocation2 + $0xe0] sm:$0xff]  ;;  %v5733_v50 = vld [vmem:[#allocation5 + $0x88] ss:$16 sps:$4 sm:$0xff]   ;;  %v5738_v51 = vld [vmem:[#allocation5 + $0xac] ss:$16 sps:$4 sm:$0xff]  }
  0x8d   :  { %390 = vmatpush1.bf16.msra.mxu0 %v5708_v8  ;;  %5293 = vmatpush1.bf16.msra.mxu1 %v5708_v8  ;;  %v5751_v47 = vld [vmem:[#allocation7 + $0x40] ss:$16 sps:$4 sm:$0xff]   ;;  %v6434_v49 = vpack.c.bf16 %v150_v45, %v149_v44  ;;  %v128_v53 = vld [vmem:[#allocation2 + $0x38] sm:$0xff]  ;;  %v5756_v55 = vld [vmem:[#allocation7 + $0x64] ss:$16 sps:$4 sm:$0xff]  }
  0x8e   :  { %391 = vmatprep.subr.bf16.mxu0 %v5709_v9  ;;  %5286 = vmatprep.subr.bf16.mxu1 %v5709_v9  ;;  %v127_v52 = vld [vmem:[#allocation2 + $0x30] sm:$0xff]  ;;  %v5736_v54 = vld [vmem:[#allocation5 + $0xa8] ss:$16 sps:$4 sm:$0xff]   ;;  %v5741_v60 = vld [vmem:[#allocation5 + $0xcc] ss:$16 sps:$4 sm:$0xff]  }
  0x8f   :  { %v151_v56 = vld [vmem:[#allocation2 + $0xf0] sm:$0xff]  ;;  %v152_v58 = vld [vmem:[#allocation2 + $0xf8] sm:$0xff]  ;;  %v6440_v61 = vpack.c.bf16 %v128_v53, %v127_v52  ;;  %v129_v3 = vld [vmem:[#allocation2 + $0x40] sm:$0xff] }
  0x90   :  { %v5754_v57 = vld [vmem:[#allocation7 + $0x60] ss:$16 sps:$4 sm:$0xff]   ;;  %v5759_v59 = vld [vmem:[#allocation7 + $0x84] ss:$16 sps:$4 sm:$0xff]   ;;  %v6442_v62 = vpack.c.bf16 %v152_v58, %v151_v56  ;;  %v5739_v63 = vld [vmem:[#allocation5 + $0xc8] ss:$16 sps:$4 sm:$0xff]  }
  0x91   :  { %392 = vmatpush1.bf16.msra.mxu0 %v5711_v10  ;;  %5294 = vmatpush1.bf16.msra.mxu1 %v5711_v10  ;;  %v5744_v1 = vld [vmem:[#allocation5 + $0xec] ss:$16 sps:$4 sm:$0xff]   ;;  %v5757_v2 = vld [vmem:[#allocation7 + $0x80] ss:$16 sps:$4 sm:$0xff]   ;;  %v5762_v4 = vld [vmem:[#allocation7 + $0xa4] ss:$16 sps:$4 sm:$0xff]  }
  0x92   :  { %393 = vmatprep.subr.bf16.mxu0 %v5712_v11  ;;  %5287 = vmatprep.subr.bf16.mxu1 %v5712_v11  ;;  %v130_v5 = vld [vmem:[#allocation2 + $0x48] sm:$0xff]  ;;  %v5760_v8 = vld [vmem:[#allocation7 + $0xa0] ss:$16 sps:$4 sm:$0xff]   ;;  %v136_v40 = vld [vmem:[#allocation2 + $0x78] sm:$0xff] }
  0x93   :  { %v5742_v6 = vld [vmem:[#allocation5 + $0xe8] ss:$16 sps:$4 sm:$0xff]   ;;  %v5765_v7 = vld [vmem:[#allocation7 + $0xc] ss:$16 sps:$4 sm:$0xff]   ;;  %v6448_v9 = vpack.c.bf16 %v130_v5, %v129_v3  ;;  %v5766_v11 = vld [vmem:[#allocation7 + $0xc0] ss:$16 sps:$4 sm:$0xff]  }
  0x94   :  { %v5763_v10 = vld [vmem:[#allocation7 + $0x8] ss:$16 sps:$4 sm:$0xff]   ;;  %v5774_v18 = vld [vmem:[#allocation7 + $0x4c] ss:$16 sps:$4 sm:$0xff]   ;;  %v5775_v19 = vld [vmem:[#allocation7 + $0xe0] ss:$16 sps:$4 sm:$0xff]  }
  0x95   :  { %394 = vmatpush1.bf16.msra.mxu0 %v5714_v12  ;;  %5295 = vmatpush1.bf16.msra.mxu1 %v5714_v12  ;;  %v5768_v12 = vld [vmem:[#allocation7 + $0xc4] ss:$16 sps:$4 sm:$0xff]   ;;  %v5769_v17 = vld [vmem:[#allocation7 + $0x28] ss:$16 sps:$4 sm:$0xff]   ;;  %v5781_v26 = vld [vmem:[#allocation7 + $0x100] ss:$16 sps:$4 sm:$0xff]  }
  0x96   :  { %395 = vmatprep.subr.bf16.mxu0 %v5715_v13  ;;  %5288 = vmatprep.subr.bf16.mxu1 %v5715_v13  ;;  %v131_v13 = vld [vmem:[#allocation2 + $0x50] sm:$0xff]  ;;  %v133_v27 = vld [vmem:[#allocation2 + $0x60] sm:$0xff]  ;;  %v5786_v30 = vld [vmem:[#allocation7 + $0x8c] ss:$16 sps:$4 sm:$0xff]  }
  0x97   :  { %v135_v39 = vld [vmem:[#allocation2 + $0x70] sm:$0xff]  ;;  %v5793_v45 = vld [vmem:[#allocation7 + $0xc8] ss:$16 sps:$4 sm:$0xff]   ;;  %v5810_v58 = vld [vmem:[#allocation7 + $0x12c] ss:$16 sps:$4 sm:$0xff]  }
  0x98   :  { %v6466_v44 = vpack.c.bf16 %v136_v40, %v135_v39  ;;  %v138_v52 = vld [vmem:[#allocation2 + $0x88] sm:$0xff] }
  0x99   :  { %396 = vmatpush1.bf16.msra.mxu0 %v5717_v14  ;;  %5296 = vmatpush1.bf16.msra.mxu1 %v5717_v14  ;;  %v5771_v14 = vld [vmem:[#allocation7 + $0x2c] ss:$16 sps:$4 sm:$0xff]   ;;  %v5799_v53 = vld [vmem:[#allocation7 + $0xe8] ss:$16 sps:$4 sm:$0xff]  }
  0x9a   :  { %397 = vmatprep.subr.bf16.mxu0 %v5718_v15  ;;  %5289 = vmatprep.subr.bf16.mxu1 %v5718_v15  ;;  %v132_v15 = vld [vmem:[#allocation2 + $0x58] sm:$0xff]  ;;  %v142_v5 = vld [vmem:[#allocation2 + $0xa8] sm:$0xff] }
  0x9b   :  { %v6454_v20 = vpack.c.bf16 %v132_v15, %v131_v13  ;;  %v5819_v3 = vld [vmem:[#allocation7 + $0x16c] ss:$16 sps:$4 sm:$0xff]   ;;  %v5829_v13 = vld [vmem:[#allocation7 + $0x1a8] ss:$16 sps:$4 sm:$0xff]   ;;  %v5828_v15 = vld [vmem:[#allocation7 + $0x1c4] ss:$16 sps:$4 sm:$0xff]  }
  0x9d   :  { %398 = vmatpush1.bf16.msra.mxu0 %v5720_v16  ;;  %5297 = vmatpush1.bf16.msra.mxu1 %v5720_v16  ;;  %v5777_v16 = vld [vmem:[#allocation7 + $0xe4] ss:$16 sps:$4 sm:$0xff]  }
  0x9e   :  { %576 = vmatprep.subr.bf16.mxu1 %v5723_v21  ;;  %1880 = vmatprep.subr.bf16.mxu0 %v5747_v29  ;;  %v5772_v21 = vld [vmem:[#allocation7 + $0x48] ss:$16 sps:$4 sm:$0xff]  }
  0x9f   :  { %v5778_v29 = vld [vmem:[#allocation7 + $0x68] ss:$16 sps:$4 sm:$0xff]  }
  0xa0   :  { %416 = vmatmul.mubr.bf16.vlgmr.msra.gmra.mrb[0].mxu0 %v6416_v22  ;;  %536 = vmatmul.mubr.bf16.vlgmr.msra.gmra.mrb[0].mxu1 %v6418_v23 }
  0xa1   :  { %425 = vmatprep.mubr.bf16.mxu0 %v6256_v0  ;;  %577 = vmatpush1.bf16.msra.mxu1 %v5721_v24  ;;  %v5783_v24 = vld [vmem:[#allocation7 + $0x104] ss:$16 sps:$4 sm:$0xff]  }
  0xa2   :  { %578 = vmatprep.subr.bf16.mxu1 %v5726_v25  ;;  %545 = vmatprep.mubr.bf16.mxu1 %v6256_v0  ;;  %v5780_v25 = vld [vmem:[#allocation7 + $0x6c] ss:$16 sps:$4 sm:$0xff]  }
  0xa3   :  { %1881 = vmatpush1.bf16.msra.mxu0 %v5745_v31  ;;  %v5790_v31 = vld [vmem:[#allocation7 + $0x120] ss:$16 sps:$4 sm:$0xff]  }
  0xa4   :  { %1882 = vmatprep.subr.bf16.mxu0 %v5750_v33  ;;  %v5784_v33 = vld [vmem:[#allocation7 + $0x88] ss:$16 sps:$4 sm:$0xff]  }
  0xa5   :  { %579 = vmatpush1.bf16.msra.mxu1 %v5724_v28  ;;  %v134_v28 = vld [vmem:[#allocation2 + $0x68] sm:$0xff] }
  0xa6   :  { %580 = vmatprep.subr.bf16.mxu1 %v5729_v34  ;;  %v6460_v32 = vpack.c.bf16 %v134_v28, %v133_v27  ;;  %v5798_v34 = vld [vmem:[#allocation7 + $0x144] ss:$16 sps:$4 sm:$0xff]  }
  0xa7   :  { %1883 = vmatpush1.bf16.msra.mxu0 %v5748_v41  ;;  %v5787_v41 = vld [vmem:[#allocation7 + $0xa8] ss:$16 sps:$4 sm:$0xff]  }
  0xa8   :  { %426 = vmatmul.mubr.bf16.gmra.mrb[4].mxu0 %v6424_v35  ;;  %546 = vmatmul.mubr.bf16.gmra.mrb[4].mxu1 %v6426_v36 }
  0xa9   :  { %435 = vmatprep.mubr.bf16.mxu0 %v6256_v0  ;;  %581 = vmatpush1.bf16.msra.mxu1 %v5727_v37  ;;  %v5789_v37 = vld [vmem:[#allocation7 + $0xac] ss:$16 sps:$4 sm:$0xff]  }
  0xaa   :  { %582 = vmatprep.subr.bf16.mxu1 %v5732_v38  ;;  %555 = vmatprep.mubr.bf16.mxu1 %v6256_v0  ;;  %v5796_v38 = vld [vmem:[#allocation7 + $0x140] ss:$16 sps:$4 sm:$0xff]  }
  0xab   :  { %1884 = vmatprep.subr.bf16.mxu0 %v5753_v43  ;;  %v5805_v43 = vld [vmem:[#allocation7 + $0x160] ss:$16 sps:$4 sm:$0xff]  }
  0xac   :  { %1885 = vmatpush1.bf16.msra.mxu0 %v5751_v47  ;;  %v5801_v47 = vld [vmem:[#allocation7 + $0xec] ss:$16 sps:$4 sm:$0xff]  }
  0xad   :  { %583 = vmatpush1.bf16.msra.mxu1 %v5730_v42  ;;  %1886 = vmatprep.subr.bf16.mxu0 %v5756_v55  ;;  %v5795_v42 = vld [vmem:[#allocation7 + $0xcc] ss:$16 sps:$4 sm:$0xff]   ;;  %v5820_v55 = vld [vmem:[#allocation7 + $0x1a0] ss:$16 sps:$4 sm:$0xff]  }
  0xae   :  { %584 = vmatprep.subr.bf16.mxu1 %v5735_v46  ;;  %v5813_v46 = vld [vmem:[#allocation7 + $0x184] ss:$16 sps:$4 sm:$0xff]  }
  0xb0   :  { %436 = vmatmul.mubr.bf16.gmra.mrb[8].mxu0 %v6432_v48  ;;  %556 = vmatmul.mubr.bf16.gmra.mrb[8].mxu1 %v6434_v49 }
  0xb1   :  { %445 = vmatprep.mubr.bf16.mxu0 %v6256_v0  ;;  %585 = vmatpush1.bf16.msra.mxu1 %v5733_v50  ;;  %v5811_v50 = vld [vmem:[#allocation7 + $0x180] ss:$16 sps:$4 sm:$0xff]  }
  0xb2   :  { %586 = vmatprep.subr.bf16.mxu1 %v5738_v51  ;;  %565 = vmatprep.mubr.bf16.mxu1 %v6256_v0  ;;  %v137_v51 = vld [vmem:[#allocation2 + $0x80] sm:$0xff] }
  0xb3   :  { %1887 = vmatpush1.bf16.msra.mxu0 %v5754_v57  ;;  %v6472_v56 = vpack.c.bf16 %v138_v52, %v137_v51  ;;  %v5802_v57 = vld [vmem:[#allocation7 + $0x108] ss:$16 sps:$4 sm:$0xff]  }
  0xb4   :  { %1888 = vmatprep.subr.bf16.mxu0 %v5759_v59  ;;  %v139_v59 = vld [vmem:[#allocation2 + $0x90] sm:$0xff] }
  0xb5   :  { %587 = vmatpush1.bf16.msra.mxu1 %v5736_v54  ;;  %v5804_v54 = vld [vmem:[#allocation7 + $0x10c] ss:$16 sps:$4 sm:$0xff]  }
  0xb6   :  { %588 = vmatprep.subr.bf16.mxu1 %v5741_v60  ;;  %v140_v60 = vld [vmem:[#allocation2 + $0x98] sm:$0xff] }
  0xb7   :  { %1889 = vmatpush1.bf16.msra.mxu0 %v5757_v2  ;;  %v5814_v2 = vld [vmem:[#allocation7 + $0x148] ss:$16 sps:$4 sm:$0xff]  }
  0xb8   :  { %446 = vmatmul.mubr.bf16.gmra.mrb[12].mxu0 %v6440_v61  ;;  %566 = vmatmul.mubr.bf16.gmra.mrb[12].mxu1 %v6442_v62 }
  0xb9   :  { %455 = vmatprep.mubr.bf16.mxu0 %v6256_v0  ;;  %589 = vmatpush1.bf16.msra.mxu1 %v5739_v63  ;;  %v5816_v63 = vld [vmem:[#allocation7 + $0x14c] ss:$16 sps:$4 sm:$0xff]  }
  0xba   :  { %590 = vmatprep.subr.bf16.mxu1 %v5744_v1  ;;  %608 = vmatprep.mubr.bf16.mxu1 %v6256_v0  ;;  %v162_v1 = vpack.c.bf16 %v140_v60, %v139_v59 }
  0xbb   :  { %1890 = vmatprep.subr.bf16.mxu0 %v5762_v4  ;;  %v141_v4 = vld [vmem:[#allocation2 + $0xa0] sm:$0xff] }
  0xbc   :  { %1891 = vmatpush1.bf16.msra.mxu0 %v5760_v8  ;;  %v163_v8 = vpack.c.bf16 %v142_v5, %v141_v4  ;;  %v5841_v5 = vld [vmem:[#allocation7 + $0x200] ss:$16 sps:$4 sm:$0xff]  }
  0xbd   :  { %591 = vmatpush1.bf16.msra.mxu1 %v5742_v6  ;;  %1892 = vmatprep.subr.bf16.mxu0 %v5768_v12  ;;  %v5817_v6 = vld [vmem:[#allocation7 + $0x168] ss:$16 sps:$4 sm:$0xff]   ;;  %v5831_v12 = vld [vmem:[#allocation7 + $0x1ac] ss:$16 sps:$4 sm:$0xff]  }
  0xbe   :  { %2266 = vmatprep.subr.bf16.mxu1 %v5765_v7  ;;  %v5825_v7 = vld [vmem:[#allocation7 + $0x18c] ss:$16 sps:$4 sm:$0xff]  }
  0xc0   :  { %456 = vmatmul.mubr.bf16.gmra.mrb[16].mxu0 %v6448_v9  ;;  %609 = vmatmul.mubr.bf16.vlgmr.msra.gmra.mrb[16].mxu1 %v6416_v22  ;;  %v5792_v22 = vld [vmem:[#allocation7 + $0x124] ss:$16 sps:$4 sm:$0xff]  }
  0xc1   :  { %465 = vmatprep.mubr.bf16.mxu0 %v6256_v0  ;;  %618 = vmatprep.mubr.bf16.mxu1 %v6256_v0 }
  0xc2   :  { %2267 = vmatpush1.bf16.msra.mxu1 %v5763_v10  ;;  %1893 = vmatpush1.bf16.msra.mxu0 %v5766_v11  ;;  %v143_v10 = vld [vmem:[#allocation2 + $0xb0] sm:$0xff]  ;;  %v144_v11 = vld [vmem:[#allocation2 + $0xb8] sm:$0xff] }
  0xc3   :  { %2268 = vmatprep.subr.bf16.mxu1 %v5771_v14  ;;  %1894 = vmatprep.subr.bf16.mxu0 %v5777_v16  ;;  %v164_v14 = vpack.c.bf16 %v144_v11, %v143_v10  ;;  %v5834_v16 = vld [vmem:[#allocation7 + $0x1cc] ss:$16 sps:$4 sm:$0xff]  }
  0xc6   :  { %2269 = vmatpush1.bf16.msra.mxu1 %v5769_v17  ;;  %1895 = vmatpush1.bf16.msra.mxu0 %v5775_v19  ;;  %v5826_v17 = vld [vmem:[#allocation7 + $0x1c0] ss:$16 sps:$4 sm:$0xff]   ;;  %v5837_v19 = vld [vmem:[#allocation7 + $0x1e4] ss:$16 sps:$4 sm:$0xff]  }
  0xc7   :  { %2270 = vmatprep.subr.bf16.mxu1 %v5774_v18  ;;  %1896 = vmatprep.subr.bf16.mxu0 %v5783_v24  ;;  %v5832_v18 = vld [vmem:[#allocation7 + $0x1c8] ss:$16 sps:$4 sm:$0xff]  }
  0xc8   :  { %466 = vmatmul.mubr.bf16.gmra.mrb[20].mxu0 %v6454_v20  ;;  %619 = vmatmul.mubr.bf16.gmra.mrb[20].mxu1 %v6424_v35  ;;  %v5807_v35 = vld [vmem:[#allocation7 + $0x164] ss:$16 sps:$4 sm:$0xff]   ;;  %v5838_v24 = vld [vmem:[#allocation7 + $0x1e8] ss:$16 sps:$4 sm:$0xff]  }
  0xc9   :  { %475 = vmatprep.mubr.bf16.mxu0 %v6256_v0  ;;  %628 = vmatprep.mubr.bf16.mxu1 %v6256_v0 }
  0xca   :  { %2271 = vmatpush1.bf16.msra.mxu1 %v5772_v21  ;;  %1897 = vmatpush1.bf16.msra.mxu0 %v5781_v26  ;;  %v5835_v21 = vld [vmem:[#allocation7 + $0x1e0] ss:$16 sps:$4 sm:$0xff]   ;;  %v5870_v26 = vld [vmem:[#allocation7 + $0x20c] ss:$16 sps:$4 sm:$0xff]  }
  0xcb   :  { %2272 = vmatprep.subr.bf16.mxu1 %v5780_v25  ;;  %1898 = vmatprep.subr.bf16.mxu0 %v5792_v22  ;;  %v5843_v25 = vld [vmem:[#allocation7 + $0x204] ss:$16 sps:$4 sm:$0xff]   ;;  %v203_v22 = vlaneseq }
  0xcd   :  { %v6498_v27 = vshrl.u32 %v203_v22, 7 }
  0xce   :  { %2273 = vmatpush1.bf16.msra.mxu1 %v5778_v29  ;;  %1899 = vmatpush1.bf16.msra.mxu0 %v5790_v31 }
  0xcf   :  { %2274 = vmatprep.subr.bf16.mxu1 %v5786_v30  ;;  %1900 = vmatprep.subr.bf16.mxu0 %v5798_v34  ;;  %v6501_v28 = vsub.s32 0, %v6498_v27 }
  0xd0   :  { %476 = vmatmul.mubr.bf16.gmra.mrb[24].mxu0 %v6460_v32  ;;  %629 = vmatmul.mubr.bf16.gmra.mrb[24].mxu1 %v6432_v48  ;;  %v5822_v48 = vld [vmem:[#allocation7 + $0x1a4] ss:$16 sps:$4 sm:$0xff]  }
  0xd1   :  { %485 = vmatprep.mubr.bf16.mxu0 %v6256_v0  ;;  %638 = vmatprep.mubr.bf16.mxu1 %v6256_v0  ;;  %7310 = vst [vmem:[#allocation20_spill] sm:$0xff] %v6501_v28 }
  0xd2   :  { %2275 = vmatpush1.bf16.msra.mxu1 %v5784_v33  ;;  %1901 = vmatpush1.bf16.msra.mxu0 %v5796_v38 }
  0xd3   :  { %2276 = vmatprep.subr.bf16.mxu1 %v5789_v37  ;;  %1902 = vmatprep.subr.bf16.mxu0 %v5807_v35 }
  0xd6   :  { %2277 = vmatpush1.bf16.msra.mxu1 %v5787_v41  ;;  %1903 = vmatpush1.bf16.msra.mxu0 %v5805_v43 }
  0xd7   :  { %2278 = vmatprep.subr.bf16.mxu1 %v5795_v42  ;;  %1904 = vmatprep.subr.bf16.mxu0 %v5813_v46 }
  0xd8   :  { %486 = vmatmul.mubr.bf16.gmra.mrb[28].mxu0 %v6466_v44  ;;  %639 = vmatmul.mubr.bf16.gmra.mrb[28].mxu1 %v6440_v61  ;;  %v5808_v61 = vld [vmem:[#allocation7 + $0x128] ss:$16 sps:$4 sm:$0xff]  }
  0xd9   :  { %495 = vmatprep.mubr.bf16.mxu0 %v6256_v0  ;;  %648 = vmatprep.mubr.bf16.mxu1 %v6256_v0 }
  0xda   :  { %2279 = vmatpush1.bf16.msra.mxu1 %v5793_v45  ;;  %1905 = vmatpush1.bf16.msra.mxu0 %v5811_v50 }
  0xdb   :  { %2280 = vmatprep.subr.bf16.mxu1 %v5801_v47  ;;  %1906 = vmatprep.subr.bf16.mxu0 %v5822_v48 }
  0xde   :  { %2281 = vmatpush1.bf16.msra.mxu1 %v5799_v53  ;;  %1907 = vmatpush1.bf16.msra.mxu0 %v5820_v55 }
  0xdf   :  { %2282 = vmatprep.subr.bf16.mxu1 %v5804_v54  ;;  %1908 = vmatprep.subr.bf16.mxu0 %v5828_v15 }
  0xe0   :  { %496 = vmatmul.mubr.bf16.gmra.mrb[32].mxu0 %v6472_v56  ;;  %649 = vmatmul.mubr.bf16.gmra.mrb[32].mxu1 %v6448_v9  ;;  %v5823_v9 = vld [vmem:[#allocation7 + $0x188] ss:$16 sps:$4 sm:$0xff]  }
  0xe1   :  { %505 = vmatprep.mubr.bf16.mxu0 %v6256_v0  ;;  %658 = vmatprep.mubr.bf16.mxu1 %v6256_v0 }
  0xe2   :  { %2283 = vmatpush1.bf16.msra.mxu1 %v5802_v57  ;;  %1909 = vmatpush1.bf16.msra.mxu0 %v5826_v17 }
  0xe3   :  { %2284 = vmatprep.subr.bf16.mxu1 %v5810_v58  ;;  %1910 = vmatprep.subr.bf16.mxu0 %v5837_v19 }
  0xe6   :  { %2285 = vmatpush1.bf16.msra.mxu1 %v5808_v61  ;;  %1911 = vmatpush1.bf16.msra.mxu0 %v5835_v21 }
  0xe7   :  { %2286 = vmatprep.subr.bf16.mxu1 %v5816_v63  ;;  %2073 = vmatprep.subr.bf16.mxu0 %v5843_v25 }
  0xe8   :  { %506 = vmatmul.mubr.bf16.gmra.mrb[36].mxu0 %v162_v1  ;;  %659 = vmatmul.mubr.bf16.gmra.mrb[36].mxu1 %v6454_v20  ;;  %v5840_v20 = vld [vmem:[#allocation7 + $0x1ec] ss:$16 sps:$4 sm:$0xff]  }
  0xe9   :  { %515 = vmatprep.mubr.bf16.mxu0 %v6256_v0  ;;  %668 = vmatprep.mubr.bf16.mxu1 %v6256_v0 }
  0xea   :  { %2287 = vmatpush1.bf16.msra.mxu1 %v5814_v2 }
  0xeb   :  { %2288 = vmatprep.subr.bf16.mxu1 %v5819_v3 }
  0xee   :  { %2289 = vmatpush1.bf16.msra.mxu1 %v5817_v6  ;;  %v5846_v6 = vld [vmem:[#allocation7 + $0x224] ss:$16 sps:$4 sm:$0xff]  }
  0xef   :  { %2290 = vmatprep.subr.bf16.mxu1 %v5825_v7 }
  0xf0   :  { %516 = vmatmul.mubr.bf16.gmra.mrb[40].mxu0 %v163_v8  ;;  %669 = vmatmul.mubr.bf16.gmra.mrb[40].mxu1 %v6460_v32 }
  0xf1   :  { %525 = vmatprep.mubr.bf16.mxu0 %v6256_v0  ;;  %678 = vmatprep.mubr.bf16.mxu1 %v6256_v0 }
  0xf2   :  { %2291 = vmatpush1.bf16.msra.mxu1 %v5823_v9 }
  0xf3   :  { %2292 = vmatprep.subr.bf16.mxu1 %v5831_v12 }
  0xf6   :  { %2293 = vmatpush1.bf16.msra.mxu1 %v5829_v13  ;;  %v5868_v13 = vld [vmem:[#allocation7 + $0x208] ss:$16 sps:$4 sm:$0xff]  }
  0xf7   :  { %2294 = vmatprep.subr.bf16.mxu1 %v5834_v16 }
  0xf8   :  { %526 = vmatmul.mubr.bf16.gmra.mrb[44].mxu0 %v164_v14  ;;  %679 = vmatmul.mubr.bf16.gmra.mrb[44].mxu1 %v6466_v44 }
  0xf9   :  { %688 = vmatprep.mubr.bf16.mxu1 %v6256_v0 }
  0xfa   :  { %2295 = vmatpush1.bf16.msra.mxu1 %v5832_v18 }
  0xfb   :  { %2296 = vmatprep.subr.bf16.mxu1 %v5840_v20 }
  0xfe   :  { %2297 = vmatpush1.bf16.msra.mxu1 %v5838_v24 }
  0xff   :  { %2459 = vmatprep.subr.bf16.mxu1 %v5870_v26 }
 0x100   :  { %689 = vmatmul.mubr.bf16.gmra.mrb[48].mxu1 %v6472_v56 }
 0x101   :  { %698 = vmatprep.mubr.bf16.mxu1 %v6256_v0 }
 0x108   :  { %699 = vmatmul.mubr.bf16.gmra.mrb[52].mxu1 %v162_v1 }
 0x109   :  { %708 = vmatprep.mubr.bf16.mxu1 %v6256_v0 }
 0x110   :  { %709 = vmatmul.mubr.bf16.gmra.mrb[56].mxu1 %v163_v8 }
 0x111   :  { %718 = vmatprep.mubr.bf16.mxu1 %v6256_v0 }
 0x118   :  { %719 = vmatmul.mubr.bf16.gmra.mrb[60].mxu1 %v164_v14  ;;  %v5873_v14 = vld [vmem:[#allocation7 + $0x22c] ss:$16 sps:$4 sm:$0xff]  }
 0x119   :  { %728 = vmatprep.mubr.bf16.mxu1 %v6256_v0 }
 0x120   :  { %729 = vmatmul.mubr.bf16.gmra.mrb[64].mxu1 %v6418_v23  ;;  %v6503_v23 = vld [vmem:[#allocation13] ss:$8 sm:$0xf] }
 0x121   :  { %738 = vmatprep.mubr.bf16.mxu1 %v6256_v0 }
 0x128   :  { %739 = vmatmul.mubr.bf16.gmra.mrb[68].mxu1 %v6426_v36  ;;  %v6506_v36 = vsub.s32 1, %v6498_v27 }
 0x129   :  { %748 = vmatprep.mubr.bf16.mxu1 %v6256_v0 }
 0x12a   :  { %7311 = vst [vmem:[#allocation21_spill] sm:$0xff] %v6506_v36 }
 0x130   :  { %749 = vmatmul.mubr.bf16.gmra.mrb[72].mxu1 %v6434_v49  ;;  %v6510_v49 = vrot.slane %v6503_v23, %v6501_v28 }
 0x131   :  { %758 = vmatprep.mubr.bf16.mxu1 %v6256_v0  ;;  %v6514_v0 = vrot.slane %v6503_v23, %v6506_v36 }
 0x138   :  { %759 = vmatmul.mubr.bf16.gmra.mrb[76].mxu1 %v6442_v62 }
 0x173   :  { %v417_v62 = vpop.f32.mrb[0].mxu0  ;;  %v537_v29 = vpop.f32.mrb[0].mxu1 }
 0x174   :  { %v418_v30 = vadd.f32 %v417_v62, %v6510_v49  ;;  %v419_v31 = vpop.f32.mrb[1].mxu0  ;;  %v538_v32 = vadd.f32 %v537_v29, %v6510_v49  ;;  %v539_v33 = vpop.f32.mrb[1].mxu1 }
 0x175   :  { %v420_v34 = vadd.f32 %v419_v31, %v6514_v0  ;;  %v421_v37 = vpop.f32.mrb[2].mxu0  ;;  %v540_v38 = vadd.f32 %v539_v33, %v6514_v0  ;;  %v541_v35 = vpop.f32.mrb[2].mxu1  ;;  %v5844_v31 = vld [vmem:[#allocation7 + $0x220] ss:$16 sps:$4 sm:$0xff]  }
 0x176   :  { %v769_v39 = vmul.f32 0.01, %v418_v30  ;;  %v422_v40 = vadd.f32 %v421_v37, %v6510_v49  ;;  %v423_v41 = vpop.f32.mrb[3].mxu0  ;;  %v865_v42 = vmul.f32 0.01, %v538_v32  ;;  %v542_v43 = vadd.f32 %v541_v35, %v6510_v49  ;;  %v543_v44 = vpop.f32.mrb[3].mxu1 }
 0x177   :  { %v770_v45 = vmul.f32 0.01, %v420_v34  ;;  %v424_v46 = vadd.f32 %v423_v41, %v6514_v0  ;;  %v866_v47 = vmul.f32 0.01, %v540_v38  ;;  %v544_v50 = vadd.f32 %v543_v44, %v6514_v0  ;;  %v5871_v37 = vld [vmem:[#allocation7 + $0x228] ss:$16 sps:$4 sm:$0xff]  }
 0x178   :  { %v773_v48 = vmul.f32 0.01, %v422_v40  ;;  %v993_v51 = vmax.f32 %v538_v32, %v865_v42  ;;  %v869_v52 = vmul.f32 0.01, %v542_v43  ;;  %v897_v56 = vmax.f32 %v418_v30, %v769_v39  ;;  %v5879_v41 = vld [vmem:[#allocation7 + $0x24c] ss:$16 sps:$4 sm:$0xff]  }
 0x179   :  { %v774_v53 = vmul.f32 0.01, %v424_v46  ;;  %v994_v54 = vmax.f32 %v540_v38, %v866_v47  ;;  %v870_v55 = vmul.f32 0.01, %v544_v50  ;;  %v898_v59 = vmax.f32 %v420_v34, %v770_v45 }
 0x17a   :  { %v901_v57 = vmax.f32 %v422_v40, %v773_v48  ;;  %v997_v58 = vmax.f32 %v542_v43, %v869_v52  ;;  %v5849_v40 = vld [vmem:[#allocation7 + $0x244] ss:$16 sps:$4 sm:$0xff]  }
 0x17b   :  { %v902_v60 = vmax.f32 %v424_v46, %v774_v53  ;;  %v427_v61 = vpop.f32.mrb[4].mxu0  ;;  %v998_v63 = vmax.f32 %v544_v50, %v870_v55  ;;  %v547_v1 = vpop.f32.mrb[4].mxu1  ;;  %v5847_v53 = vld [vmem:[#allocation7 + $0x240] ss:$16 sps:$4 sm:$0xff]  }
 0x17c   :  { %v1025_v2 = vpack.c.bf16 %v901_v57, %v897_v56  ;;  %v428_v3 = vadd.f32 %v427_v61, %v6510_v49  ;;  %v429_v4 = vpop.f32.mrb[5].mxu0  ;;  %v548_v7 = vadd.f32 %v547_v1, %v6510_v49  ;;  %v549_v8 = vpop.f32.mrb[5].mxu1  ;;  %v6526_v9 = vpack.c.bf16 %v997_v58, %v993_v51  ;;  %v5877_v61 = vld [vmem:[#allocation7 + $0x248] ss:$16 sps:$4 sm:$0xff]  }
 0x17d   :  { %v430_v10 = vadd.f32 %v429_v4, %v6514_v0  ;;  %v431_v11 = vpop.f32.mrb[6].mxu0  ;;  %v1026_v12 = vpack.c.bf16 %v902_v60, %v898_v59  ;;  %v6530_v15 = vadd.f32 %v549_v8, %v6514_v0  ;;  %v551_v16 = vpop.f32.mrb[6].mxu1  ;;  %v6532_v17 = vpack.c.bf16 %v998_v63, %v994_v54  ;;  %v5852_v54 = vld [vmem:[#allocation7 + $0x264] ss:$16 sps:$4 sm:$0xff]   ;;  %v5882_v63 = vld [vmem:[#allocation7 + $0x26c] ss:$16 sps:$4 sm:$0xff]  }
 0x17e   :  { %v777_v18 = vmul.f32 0.01, %v428_v3  ;;  %v432_v19 = vadd.f32 %v431_v11, %v6510_v49  ;;  %v433_v20 = vpop.f32.mrb[7].mxu0  ;;  %v873_v21 = vmul.f32 0.01, %v548_v7  ;;  %v552_v24 = vadd.f32 %v551_v16, %v6510_v49  ;;  %v553_v25 = vpop.f32.mrb[7].mxu1 }
 0x17f   :  { %v778_v26 = vmul.f32 0.01, %v430_v10  ;;  %v434_v22 = vadd.f32 %v433_v20, %v6514_v0  ;;  %1912 = vmatprep.mubr.bf16.mxu0 %v1026_v12  ;;  %2298 = vmatprep.mubr.bf16.mxu1 %v1026_v12  ;;  %v6538_v62 = vmul.f32 0.01, %v6530_v15  ;;  %v6541_v29 = vadd.f32 %v553_v25, %v6514_v0 }
 0x180   :  { %v781_v30 = vmul.f32 0.01, %v432_v19  ;;  %1913 = vmatmul.mubr.bf16.vlgmr.msra.gmra.mrb[48].mxu0 %v1025_v2  ;;  %2299 = vmatmul.mubr.bf16.vlgmr.msra.gmra.mrb[80].mxu1 %v1025_v2  ;;  %v1001_v32 = vmax.f32 %v548_v7, %v873_v21  ;;  %v877_v33 = vmul.f32 0.01, %v552_v24  ;;  %v905_v35 = vmax.f32 %v428_v3, %v777_v18  ;;  %v5880_v21 = vld [vmem:[#allocation7 + $0x268] ss:$16 sps:$4 sm:$0xff]  }
 0x181   :  { %v782_v34 = vmul.f32 0.01, %v434_v22  ;;  %2074 = vmatpush1.bf16.msra.mxu0 %v5841_v5  ;;  %2460 = vmatpush1.bf16.msra.mxu1 %v5868_v13  ;;  %v6544_v38 = vmul.f32 0.01, %v6541_v29  ;;  %v906_v43 = vmax.f32 %v430_v10, %v778_v26  ;;  %v1002_v46 = vmax.f32 %v6530_v15, %v6538_v62  ;;  %v5850_v15 = vld [vmem:[#allocation7 + $0x260] ss:$16 sps:$4 sm:$0xff]  }
 0x182   :  { %v909_v39 = vmax.f32 %v432_v19, %v781_v30  ;;  %2075 = vmatprep.subr.bf16.mxu0 %v5846_v6  ;;  %2461 = vmatprep.subr.bf16.mxu1 %v5873_v14  ;;  %v1005_v42 = vmax.f32 %v552_v24, %v877_v33  ;;  %v5855_v26 = vld [vmem:[#allocation7 + $0x284] ss:$16 sps:$4 sm:$0xff]   ;;  %v213_v30 = vsub.s32 2, %v6498_v27 }
 0x183   :  { %v910_v44 = vmax.f32 %v434_v22, %v782_v34  ;;  %v437_v45 = vpop.f32.mrb[8].mxu0  ;;  %v1006_v47 = vmax.f32 %v6541_v29, %v6544_v38  ;;  %v557_v50 = vpop.f32.mrb[8].mxu1  ;;  %v5888_v22 = vld [vmem:[#allocation7 + $0x28c] ss:$16 sps:$4 sm:$0xff]   ;;  %v5853_v34 = vld [vmem:[#allocation7 + $0x280] ss:$16 sps:$4 sm:$0xff]  }
 0x184   :  { %v438_v48 = vadd.f32 %v437_v45, %v6510_v49  ;;  %v439_v51 = vpop.f32.mrb[9].mxu0  ;;  %v1029_v52 = vpack.c.bf16 %v909_v39, %v905_v35  ;;  %v558_v55 = vadd.f32 %v557_v50, %v6510_v49  ;;  %v559_v56 = vpop.f32.mrb[9].mxu1  ;;  %v6552_v57 = vpack.c.bf16 %v1005_v42, %v1001_v32  ;;  %v5858_v42 = vld [vmem:[#allocation7 + $0x2a4] ss:$16 sps:$4 sm:$0xff]  }
 0x185   :  { %v440_v58 = vadd.f32 %v439_v51, %v6514_v0  ;;  %v441_v59 = vpop.f32.mrb[10].mxu0  ;;  %v1030_v60 = vpack.c.bf16 %v910_v44, %v906_v43  ;;  %2076 = vmatpush1.bf16.msra.mxu0 %v5844_v31  ;;  %2462 = vmatpush1.bf16.msra.mxu1 %v5871_v37  ;;  %v6556_v1 = vadd.f32 %v559_v56, %v6514_v0  ;;  %v561_v2 = vpop.f32.mrb[10].mxu1  ;;  %v5886_v43 = vld [vmem:[#allocation7 + $0x288] ss:$16 sps:$4 sm:$0xff]   ;;  %v5891_v51 = vld [vmem:[#allocation7 + $0x2ac] ss:$16 sps:$4 sm:$0xff]  }
 0x186   :  { %v785_v3 = vmul.f32 0.01, %v438_v48  ;;  %v442_v4 = vadd.f32 %v441_v59, %v6510_v49  ;;  %v443_v5 = vpop.f32.mrb[11].mxu0  ;;  %2077 = vmatprep.subr.bf16.mxu0 %v5849_v40  ;;  %2463 = vmatprep.subr.bf16.mxu1 %v5879_v41  ;;  %v881_v6 = vmul.f32 0.01, %v558_v55  ;;  %v562_v7 = vadd.f32 %v561_v2, %v6510_v49  ;;  %v563_v8 = vpop.f32.mrb[11].mxu1 }
 0x187   :  { %v786_v10 = vmul.f32 0.01, %v440_v58  ;;  %v444_v11 = vadd.f32 %v443_v5, %v6514_v0  ;;  %1922 = vmatprep.mubr.bf16.mxu0 %v1030_v60  ;;  %2308 = vmatprep.mubr.bf16.mxu1 %v1030_v60  ;;  %v6562_v12 = vmul.f32 0.01, %v6556_v1  ;;  %v6565_v13 = vadd.f32 %v563_v8, %v6514_v0  ;;  %v5856_v5 = vld [vmem:[#allocation7 + $0x2a0] ss:$16 sps:$4 sm:$0xff]  }
 0x188   :  { %v789_v14 = vmul.f32 0.01, %v442_v4  ;;  %1923 = vmatmul.mubr.bf16.gmra.mrb[52].mxu0 %v1029_v52  ;;  %2309 = vmatmul.mubr.bf16.gmra.mrb[84].mxu1 %v1029_v52  ;;  %v1009_v16 = vmax.f32 %v558_v55, %v881_v6  ;;  %v885_v18 = vmul.f32 0.01, %v562_v7  ;;  %v913_v19 = vmax.f32 %v438_v48, %v785_v3 }
 0x189   :  { %v790_v20 = vmul.f32 0.01, %v444_v11  ;;  %2078 = vmatpush1.bf16.msra.mxu0 %v5847_v53  ;;  %2464 = vmatpush1.bf16.msra.mxu1 %v5877_v61  ;;  %v6568_v24 = vmul.f32 0.01, %v6565_v13  ;;  %v6570_v29 = vpack.c.bf16 %v1006_v47, %v1002_v46  ;;  %v914_v31 = vmax.f32 %v440_v58, %v786_v10 }
 0x18a   :  { %v917_v25 = vmax.f32 %v442_v4, %v789_v14  ;;  %2079 = vmatprep.subr.bf16.mxu0 %v5852_v54  ;;  %2465 = vmatprep.subr.bf16.mxu1 %v5882_v63  ;;  %v1013_v62 = vmax.f32 %v562_v7, %v885_v18  ;;  %v1010_v37 = vmax.f32 %v6556_v1, %v6562_v12  ;;  %v217_v54 = vsub.s32 3, %v6498_v27  ;;  %v5889_v12 = vld [vmem:[#allocation7 + $0x2a8] ss:$16 sps:$4 sm:$0xff]   ;;  %v5897_v18 = vld [vmem:[#allocation7 + $0x2cc] ss:$16 sps:$4 sm:$0xff]  }
 0x18b   :  { %v918_v32 = vmax.f32 %v444_v11, %v790_v20  ;;  %v447_v33 = vpop.f32.mrb[12].mxu0  ;;  %v1014_v38 = vmax.f32 %v6565_v13, %v6568_v24  ;;  %v567_v35 = vpop.f32.mrb[12].mxu1  ;;  %v6598_v8 = vrot.slane %v6503_v23, %v213_v30 }
 0x18c   :  { %v448_v39 = vadd.f32 %v447_v33, %v6510_v49  ;;  %v449_v40 = vpop.f32.mrb[13].mxu0  ;;  %v1033_v41 = vpack.c.bf16 %v917_v25, %v913_v19  ;;  %v568_v44 = vadd.f32 %v567_v35, %v6510_v49  ;;  %v569_v45 = vpop.f32.mrb[13].mxu1  ;;  %v6579_v46 = vpack.c.bf16 %v1013_v62, %v1009_v16  ;;  %v5861_v16 = vld [vmem:[#allocation7 + $0x2c4] ss:$16 sps:$4 sm:$0xff]   ;;  %v5859_v33 = vld [vmem:[#allocation7 + $0x2c0] ss:$16 sps:$4 sm:$0xff]  }
 0x18d   :  { %v450_v47 = vadd.f32 %v449_v40, %v6514_v0  ;;  %v451_v50 = vpop.f32.mrb[14].mxu0  ;;  %v1034_v48 = vpack.c.bf16 %v918_v32, %v914_v31  ;;  %2080 = vmatpush1.bf16.msra.mxu0 %v5850_v15  ;;  %2466 = vmatpush1.bf16.msra.mxu1 %v5880_v21  ;;  %v6583_v52 = vadd.f32 %v569_v45, %v6514_v0  ;;  %v571_v53 = vpop.f32.mrb[14].mxu1 }
 0x18e   :  { %v793_v55 = vmul.f32 0.01, %v448_v39  ;;  %v452_v56 = vadd.f32 %v451_v50, %v6510_v49  ;;  %v453_v58 = vpop.f32.mrb[15].mxu0  ;;  %2081 = vmatprep.subr.bf16.mxu0 %v5855_v26  ;;  %2467 = vmatprep.subr.bf16.mxu1 %v5888_v22  ;;  %v889_v59 = vmul.f32 0.01, %v568_v44  ;;  %v572_v60 = vadd.f32 %v571_v53, %v6510_v49  ;;  %v573_v61 = vpop.f32.mrb[15].mxu1 }
 0x18f   :  { %v794_v63 = vmul.f32 0.01, %v450_v47  ;;  %v454_v1 = vadd.f32 %v453_v58, %v6514_v0  ;;  %1932 = vmatprep.mubr.bf16.mxu0 %v1034_v48  ;;  %2318 = vmatprep.mubr.bf16.mxu1 %v1034_v48  ;;  %v6590_v2 = vmul.f32 0.01, %v6583_v52  ;;  %v6593_v3 = vadd.f32 %v573_v61, %v6514_v0  ;;  %v5862_v61 = vld [vmem:[#allocation7 + $0x2e0] ss:$16 sps:$4 sm:$0xff]  }
 0x190   :  { %v797_v4 = vmul.f32 0.01, %v452_v56  ;;  %1933 = vmatmul.mubr.bf16.gmra.mrb[56].mxu0 %v1033_v41  ;;  %2319 = vmatmul.mubr.bf16.gmra.mrb[88].mxu1 %v1033_v41  ;;  %v1017_v6 = vmax.f32 %v568_v44, %v889_v59  ;;  %v893_v7 = vmul.f32 0.01, %v572_v60  ;;  %v921_v10 = vmax.f32 %v448_v39, %v793_v55 }
 0x191   :  { %v798_v11 = vmul.f32 0.01, %v454_v1  ;;  %2082 = vmatpush1.bf16.msra.mxu0 %v5853_v34  ;;  %2468 = vmatpush1.bf16.msra.mxu1 %v5886_v43  ;;  %v6601_v13 = vmul.f32 0.01, %v6593_v3  ;;  %v6606_v14 = vrot.slane %v6503_v23, %v217_v54  ;;  %v6608_v20 = vpack.c.bf16 %v1014_v38, %v1010_v37  ;;  %v5864_v34 = vld [vmem:[#allocation7 + $0x2e4] ss:$16 sps:$4 sm:$0xff]  }
 0x192   :  { %v925_v15 = vmax.f32 %v452_v56, %v797_v4  ;;  %2083 = vmatprep.subr.bf16.mxu0 %v5858_v42  ;;  %2469 = vmatprep.subr.bf16.mxu1 %v5891_v51  ;;  %v1021_v19 = vmax.f32 %v572_v60, %v893_v7  ;;  %v922_v21 = vmax.f32 %v450_v47, %v794_v63  ;;  %v5895_v42 = vld [vmem:[#allocation7 + $0x2c8] ss:$16 sps:$4 sm:$0xff]   ;;  %v5900_v43 = vld [vmem:[#allocation7 + $0x2ec] ss:$16 sps:$4 sm:$0xff]   ;;  %v5867_v7 = vld [vmem:[#allocation7 + $0x304] ss:$16 sps:$4 sm:$0xff]  }
 0x193   :  { %v926_v24 = vmax.f32 %v454_v1, %v798_v11  ;;  %v457_v25 = vpop.f32.mrb[16].mxu0  ;;  %v1018_v26 = vmax.f32 %v6583_v52, %v6590_v2  ;;  %v1022_v22 = vmax.f32 %v6593_v3, %v6601_v13  ;;  %v610_v62 = vpop.f32.mrb[16].mxu1  ;;  %v5898_v4 = vld [vmem:[#allocation7 + $0x2e8] ss:$16 sps:$4 sm:$0xff]  }
 0x194   :  { %v458_v23 = vadd.f32 %v457_v25, %v6510_v49  ;;  %v459_v31 = vpop.f32.mrb[17].mxu0  ;;  %v1037_v32 = vpack.c.bf16 %v925_v15, %v921_v10  ;;  %v611_v35 = vadd.f32 %v610_v62, %v6598_v8  ;;  %v612_v37 = vpop.f32.mrb[17].mxu1  ;;  %v6616_v38 = vpack.c.bf16 %v1021_v19, %v1017_v6  ;;  %v5906_v10 = vld [vmem:[#allocation7 + $0x30c] ss:$16 sps:$4 sm:$0xff]  }
 0x195   :  { %v460_v39 = vadd.f32 %v459_v31, %v6514_v0  ;;  %v461_v40 = vpop.f32.mrb[18].mxu0  ;;  %v1038_v41 = vpack.c.bf16 %v926_v24, %v922_v21  ;;  %2084 = vmatpush1.bf16.msra.mxu0 %v5856_v5  ;;  %2470 = vmatpush1.bf16.msra.mxu1 %v5889_v12  ;;  %v6620_v44 = vadd.f32 %v612_v37, %v6606_v14  ;;  %v614_v45 = vpop.f32.mrb[18].mxu1  ;;  %v5876_v31 = vld [vmem:[#allocation7 + $0x324] ss:$16 sps:$4 sm:$0xff]   ;;  %v5904_v37 = vld [vmem:[#allocation7 + $0x308] ss:$16 sps:$4 sm:$0xff]  }
 0x196   :  { %v801_v47 = vmul.f32 0.01, %v458_v23  ;;  %v462_v50 = vadd.f32 %v461_v40, %v6510_v49  ;;  %v463_v48 = vpop.f32.mrb[19].mxu0  ;;  %2085 = vmatprep.subr.bf16.mxu0 %v5861_v16  ;;  %2471 = vmatprep.subr.bf16.mxu1 %v5897_v18  ;;  %v771_v51 = vmul.f32 0.01, %v611_v35  ;;  %v615_v52 = vadd.f32 %v614_v45, %v6598_v8  ;;  %v616_v53 = vpop.f32.mrb[19].mxu1 }
 0x197   :  { %v802_v55 = vmul.f32 0.01, %v460_v39  ;;  %v464_v56 = vadd.f32 %v463_v48, %v6514_v0  ;;  %1942 = vmatprep.mubr.bf16.mxu0 %v1038_v41  ;;  %2328 = vmatprep.mubr.bf16.mxu1 %v1038_v41  ;;  %v6626_v58 = vmul.f32 0.01, %v6620_v44  ;;  %v6629_v59 = vadd.f32 %v616_v53, %v6606_v14 }
 0x198   :  { %v805_v60 = vmul.f32 0.01, %v462_v50  ;;  %1943 = vmatmul.mubr.bf16.gmra.mrb[60].mxu0 %v1037_v32  ;;  %2329 = vmatmul.mubr.bf16.gmra.mrb[92].mxu1 %v1037_v32  ;;  %v899_v63 = vmax.f32 %v611_v35, %v771_v51  ;;  %v775_v1 = vmul.f32 0.01, %v615_v52  ;;  %v929_v2 = vmax.f32 %v458_v23, %v801_v47  ;;  %v5865_v23 = vld [vmem:[#allocation7 + $0x300] ss:$16 sps:$4 sm:$0xff]  }
 0x199   :  { %v806_v3 = vmul.f32 0.01, %v464_v56  ;;  %2086 = vmatpush1.bf16.msra.mxu0 %v5859_v33  ;;  %2472 = vmatpush1.bf16.msra.mxu1 %v5895_v42  ;;  %v6632_v5 = vmul.f32 0.01, %v6629_v59  ;;  %v6634_v12 = vpack.c.bf16 %v1022_v22, %v1018_v26  ;;  %v930_v13 = vmax.f32 %v460_v39, %v802_v55  ;;  %v5909_v39 = vld [vmem:[#allocation7 + $0x32c] ss:$16 sps:$4 sm:$0xff]  }
 0x19a   :  { %v933_v6 = vmax.f32 %v462_v50, %v805_v60  ;;  %2087 = vmatprep.subr.bf16.mxu0 %v5864_v34  ;;  %2473 = vmatprep.subr.bf16.mxu1 %v5900_v43  ;;  %v903_v11 = vmax.f32 %v615_v52, %v775_v1  ;;  %v900_v18 = vmax.f32 %v6620_v44, %v6626_v58 }
 0x19b   :  { %v934_v15 = vmax.f32 %v464_v56, %v806_v3  ;;  %v467_v16 = vpop.f32.mrb[20].mxu0  ;;  %v904_v19 = vmax.f32 %v6629_v59, %v6632_v5  ;;  %v620_v21 = vpop.f32.mrb[20].mxu1  ;;  %v5874_v56 = vld [vmem:[#allocation7 + $0x320] ss:$16 sps:$4 sm:$0xff]   ;;  %v5885_v3 = vld [vmem:[#allocation7 + $0x344] ss:$16 sps:$4 sm:$0xff]  }
 0x19c   :  { %v468_v24 = vadd.f32 %v467_v16, %v6510_v49  ;;  %v469_v25 = vpop.f32.mrb[21].mxu0  ;;  %v1041_v62 = vpack.c.bf16 %v933_v6, %v929_v2  ;;  %v6641_v32 = vpack.c.bf16 %v903_v11, %v899_v63  ;;  %v621_v26 = vadd.f32 %v620_v21, %v6598_v8  ;;  %v622_v22 = vpop.f32.mrb[21].mxu1  ;;  %v5907_v63 = vld [vmem:[#allocation7 + $0x328] ss:$16 sps:$4 sm:$0xff]  }
 0x19d   :  { %v470_v33 = vadd.f32 %v469_v25, %v6514_v0  ;;  %v471_v34 = vpop.f32.mrb[22].mxu0  ;;  %v1042_v35 = vpack.c.bf16 %v934_v15, %v930_v13  ;;  %2088 = vmatpush1.bf16.msra.mxu0 %v5862_v61  ;;  %2474 = vmatpush1.bf16.msra.mxu1 %v5898_v4  ;;  %v6646_v40 = vadd.f32 %v622_v22, %v6606_v14  ;;  %v624_v41 = vpop.f32.mrb[22].mxu1  ;;  %v5915_v4 = vld [vmem:[#allocation7 + $0x34c] ss:$16 sps:$4 sm:$0xff]  }
 0x19e   :  { %v809_v42 = vmul.f32 0.01, %v468_v24  ;;  %v472_v43 = vadd.f32 %v471_v34, %v6510_v49  ;;  %v473_v44 = vpop.f32.mrb[23].mxu0  ;;  %2089 = vmatprep.subr.bf16.mxu0 %v5867_v7  ;;  %2475 = vmatprep.subr.bf16.mxu1 %v5906_v10  ;;  %v779_v45 = vmul.f32 0.01, %v621_v26  ;;  %v625_v47 = vadd.f32 %v624_v41, %v6598_v8  ;;  %v626_v50 = vpop.f32.mrb[23].mxu1 }
 0x19f   :  { %v810_v48 = vmul.f32 0.01, %v470_v33  ;;  %v474_v51 = vadd.f32 %v473_v44, %v6514_v0  ;;  %1952 = vmatprep.mubr.bf16.mxu0 %v1042_v35  ;;  %2338 = vmatprep.mubr.bf16.mxu1 %v1042_v35  ;;  %v6652_v52 = vmul.f32 0.01, %v6646_v40  ;;  %v6655_v53 = vadd.f32 %v626_v50, %v6606_v14  ;;  %v5913_v34 = vld [vmem:[#allocation7 + $0x348] ss:$16 sps:$4 sm:$0xff]  }
 0x1a0   :  { %v813_v55 = vmul.f32 0.01, %v472_v43  ;;  %1953 = vmatmul.mubr.bf16.gmra.mrb[64].mxu0 %v1041_v62  ;;  %2339 = vmatmul.mubr.bf16.gmra.mrb[96].mxu1 %v1041_v62  ;;  %v907_v58 = vmax.f32 %v621_v26, %v779_v45  ;;  %v783_v59 = vmul.f32 0.01, %v625_v47  ;;  %v937_v60 = vmax.f32 %v468_v24, %v809_v42  ;;  %v5883_v62 = vld [vmem:[#allocation7 + $0x340] ss:$16 sps:$4 sm:$0xff]  }
 0x1a1   :  { %v814_v61 = vmul.f32 0.01, %v474_v51  ;;  %2090 = vmatpush1.bf16.msra.mxu0 %v5865_v23  ;;  %2476 = vmatpush1.bf16.msra.mxu1 %v5904_v37  ;;  %v6658_v1 = vmul.f32 0.01, %v6655_v53  ;;  %v6660_v6 = vpack.c.bf16 %v904_v19, %v900_v18  ;;  %v938_v7 = vmax.f32 %v470_v33, %v810_v48  ;;  %v5894_v23 = vld [vmem:[#allocation7 + $0x364] ss:$16 sps:$4 sm:$0xff]  }
 0x1a2   :  { %v941_v2 = vmax.f32 %v472_v43, %v813_v55  ;;  %2091 = vmatprep.subr.bf16.mxu0 %v5876_v31  ;;  %2477 = vmatprep.subr.bf16.mxu1 %v5909_v39  ;;  %v911_v5 = vmax.f32 %v625_v47, %v783_v59  ;;  %v908_v13 = vmax.f32 %v6646_v40, %v6652_v52  ;;  %v5918_v35 = vld [vmem:[#allocation7 + $0x36c] ss:$16 sps:$4 sm:$0xff]  }
 0x1a3   :  { %v942_v10 = vmax.f32 %v474_v51, %v814_v61  ;;  %v477_v11 = vpop.f32.mrb[24].mxu0  ;;  %v912_v15 = vmax.f32 %v6655_v53, %v6658_v1  ;;  %v630_v16 = vpop.f32.mrb[24].mxu1  ;;  %v5892_v53 = vld [vmem:[#allocation7 + $0x360] ss:$16 sps:$4 sm:$0xff]   ;;  %v5903_v1 = vld [vmem:[#allocation7 + $0x384] ss:$16 sps:$4 sm:$0xff]  }
 0x1a4   :  { %v478_v21 = vadd.f32 %v477_v11, %v6510_v49  ;;  %v479_v24 = vpop.f32.mrb[25].mxu0  ;;  %v1045_v25 = vpack.c.bf16 %v941_v2, %v937_v60  ;;  %v631_v31 = vadd.f32 %v630_v16, %v6598_v8  ;;  %v632_v18 = vpop.f32.mrb[25].mxu1  ;;  %v6668_v19 = vpack.c.bf16 %v911_v5, %v907_v58  ;;  %v5916_v60 = vld [vmem:[#allocation7 + $0x368] ss:$16 sps:$4 sm:$0xff]   ;;  %v5924_v2 = vld [vmem:[#allocation7 + $0x38c] ss:$16 sps:$4 sm:$0xff]  }
 0x1a5   :  { %v480_v26 = vadd.f32 %v479_v24, %v6514_v0  ;;  %v481_v22 = vpop.f32.mrb[26].mxu0  ;;  %v1046_v33 = vpack.c.bf16 %v942_v10, %v938_v7  ;;  %2092 = vmatpush1.bf16.msra.mxu0 %v5874_v56  ;;  %2478 = vmatpush1.bf16.msra.mxu1 %v5907_v63  ;;  %v6672_v37 = vadd.f32 %v632_v18, %v6606_v14  ;;  %v634_v39 = vpop.f32.mrb[26].mxu1 }
 0x1a6   :  { %v817_v40 = vmul.f32 0.01, %v478_v21  ;;  %v482_v41 = vadd.f32 %v481_v22, %v6510_v49  ;;  %v483_v42 = vpop.f32.mrb[27].mxu0  ;;  %2093 = vmatprep.subr.bf16.mxu0 %v5885_v3  ;;  %2479 = vmatprep.subr.bf16.mxu1 %v5915_v4  ;;  %v787_v43 = vmul.f32 0.01, %v631_v31  ;;  %v635_v44 = vadd.f32 %v634_v39, %v6598_v8  ;;  %v636_v45 = vpop.f32.mrb[27].mxu1 }
 0x1a7   :  { %v818_v47 = vmul.f32 0.01, %v480_v26  ;;  %v484_v50 = vadd.f32 %v483_v42, %v6514_v0  ;;  %1962 = vmatprep.mubr.bf16.mxu0 %v1046_v33  ;;  %2348 = vmatprep.mubr.bf16.mxu1 %v1046_v33  ;;  %v6678_v48 = vmul.f32 0.01, %v6672_v37  ;;  %v6681_v51 = vadd.f32 %v636_v45, %v6606_v14 }
 0x1a8   :  { %v821_v52 = vmul.f32 0.01, %v482_v41  ;;  %1963 = vmatmul.mubr.bf16.gmra.mrb[68].mxu0 %v1045_v25  ;;  %2349 = vmatmul.mubr.bf16.gmra.mrb[100].mxu1 %v1045_v25  ;;  %v915_v55 = vmax.f32 %v631_v31, %v787_v43  ;;  %v791_v56 = vmul.f32 0.01, %v635_v44  ;;  %v945_v58 = vmax.f32 %v478_v21, %v817_v40  ;;  %v5912_v31 = vld [vmem:[#allocation7 + $0x3a4] ss:$16 sps:$4 sm:$0xff]  }
 0x1a9   :  { %v822_v59 = vmul.f32 0.01, %v484_v50  ;;  %2094 = vmatpush1.bf16.msra.mxu0 %v5883_v62  ;;  %2480 = vmatpush1.bf16.msra.mxu1 %v5913_v34  ;;  %v6684_v61 = vmul.f32 0.01, %v6681_v51  ;;  %v6686_v4 = vpack.c.bf16 %v912_v15, %v908_v13  ;;  %v946_v5 = vmax.f32 %v480_v26, %v818_v47  ;;  %v5922_v34 = vld [vmem:[#allocation7 + $0x388] ss:$16 sps:$4 sm:$0xff]  }
 0x1aa   :  { %v949_v63 = vmax.f32 %v482_v41, %v821_v52  ;;  %2095 = vmatprep.subr.bf16.mxu0 %v5894_v23  ;;  %2481 = vmatprep.subr.bf16.mxu1 %v5918_v35  ;;  %v919_v3 = vmax.f32 %v635_v44, %v791_v56  ;;  %v916_v11 = vmax.f32 %v6672_v37, %v6678_v48  ;;  %v5901_v23 = vld [vmem:[#allocation7 + $0x380] ss:$16 sps:$4 sm:$0xff]   ;;  %v5927_v35 = vld [vmem:[#allocation7 + $0x3ac] ss:$16 sps:$4 sm:$0xff]  }
 0x1ab   :  { %v950_v7 = vmax.f32 %v484_v50, %v822_v59  ;;  %v487_v10 = vpop.f32.mrb[28].mxu0  ;;  %v920_v16 = vmax.f32 %v6681_v51, %v6684_v61  ;;  %v640_v21 = vpop.f32.mrb[28].mxu1 }
 0x1ac   :  { %v488_v24 = vadd.f32 %v487_v10, %v6510_v49  ;;  %v489_v25 = vpop.f32.mrb[29].mxu0  ;;  %v1049_v62 = vpack.c.bf16 %v949_v63, %v945_v58  ;;  %v641_v18 = vadd.f32 %v640_v21, %v6598_v8  ;;  %v642_v13 = vpop.f32.mrb[29].mxu1  ;;  %v6694_v15 = vpack.c.bf16 %v919_v3, %v915_v55 }
 0x1ad   :  { %v490_v26 = vadd.f32 %v489_v25, %v6514_v0  ;;  %v491_v22 = vpop.f32.mrb[30].mxu0  ;;  %v1050_v33 = vpack.c.bf16 %v950_v7, %v946_v5  ;;  %2096 = vmatpush1.bf16.msra.mxu0 %v5892_v53  ;;  %2482 = vmatpush1.bf16.msra.mxu1 %v5916_v60  ;;  %v6698_v37 = vadd.f32 %v642_v13, %v6606_v14  ;;  %v644_v39 = vpop.f32.mrb[30].mxu1  ;;  %v5910_v53 = vld [vmem:[#allocation7 + $0x3a0] ss:$16 sps:$4 sm:$0xff]   ;;  %v5925_v60 = vld [vmem:[#allocation7 + $0x3a8] ss:$16 sps:$4 sm:$0xff]  }
 0x1ae   :  { %v825_v40 = vmul.f32 0.01, %v488_v24  ;;  %v492_v41 = vadd.f32 %v491_v22, %v6510_v49  ;;  %v493_v42 = vpop.f32.mrb[31].mxu0  ;;  %2097 = vmatprep.subr.bf16.mxu0 %v5903_v1  ;;  %2483 = vmatprep.subr.bf16.mxu1 %v5924_v2  ;;  %v795_v43 = vmul.f32 0.01, %v641_v18  ;;  %v645_v44 = vadd.f32 %v644_v39, %v6598_v8  ;;  %v646_v45 = vpop.f32.mrb[31].mxu1 }
 0x1af   :  { %v826_v47 = vmul.f32 0.01, %v490_v26  ;;  %v494_v50 = vadd.f32 %v493_v42, %v6514_v0  ;;  %1972 = vmatprep.mubr.bf16.mxu0 %v1050_v33  ;;  %2358 = vmatprep.mubr.bf16.mxu1 %v1050_v33  ;;  %v6704_v48 = vmul.f32 0.01, %v6698_v37  ;;  %v6707_v51 = vadd.f32 %v646_v45, %v6606_v14  ;;  %v5921_v1 = vld [vmem:[#allocation7 + $0x3c4] ss:$16 sps:$4 sm:$0xff]  }
 0x1b0   :  { %v829_v52 = vmul.f32 0.01, %v492_v41  ;;  %1973 = vmatmul.mubr.bf16.gmra.mrb[72].mxu0 %v1049_v62  ;;  %2359 = vmatmul.mubr.bf16.gmra.mrb[104].mxu1 %v1049_v62  ;;  %v923_v55 = vmax.f32 %v641_v18, %v795_v43  ;;  %v799_v56 = vmul.f32 0.01, %v645_v44  ;;  %v953_v58 = vmax.f32 %v488_v24, %v825_v40  ;;  %v5933_v2 = vld [vmem:[#allocation7 + $0x3cc] ss:$16 sps:$4 sm:$0xff]  }
 0x1b1   :  { %v830_v59 = vmul.f32 0.01, %v494_v50  ;;  %2098 = vmatpush1.bf16.msra.mxu0 %v5901_v23  ;;  %2484 = vmatpush1.bf16.msra.mxu1 %v5922_v34  ;;  %v800_v61 = vmul.f32 0.01, %v6707_v51  ;;  %v6710_v5 = vpack.c.bf16 %v920_v16, %v916_v11  ;;  %v954_v7 = vmax.f32 %v490_v26, %v826_v47  ;;  %v5930_v22 = vld [vmem:[#allocation7 + $0x3e4] ss:$16 sps:$4 sm:$0xff]  }
 0x1b2   :  { %v957_v63 = vmax.f32 %v492_v41, %v829_v52  ;;  %2099 = vmatprep.subr.bf16.mxu0 %v5912_v31  ;;  %2485 = vmatprep.subr.bf16.mxu1 %v5927_v35  ;;  %v927_v3 = vmax.f32 %v645_v44, %v799_v56  ;;  %v924_v24 = vmax.f32 %v6698_v37, %v6704_v48  ;;  %v5919_v31 = vld [vmem:[#allocation7 + $0x3c0] ss:$16 sps:$4 sm:$0xff]   ;;  %v5931_v37 = vld [vmem:[#allocation7 + $0x3c8] ss:$16 sps:$4 sm:$0xff]   ;;  %v5936_v39 = vld [vmem:[#allocation7 + $0x3ec] ss:$16 sps:$4 sm:$0xff]  }
 0x1b3   :  { %v958_v10 = vmax.f32 %v494_v50, %v830_v59  ;;  %v497_v21 = vpop.f32.mrb[32].mxu0  ;;  %v928_v25 = vmax.f32 %v6707_v51, %v800_v61  ;;  %v650_v62 = vpop.f32.mrb[32].mxu1  ;;  %v5928_v56 = vld [vmem:[#allocation7 + $0x3e0] ss:$16 sps:$4 sm:$0xff]  }
 0x1b4   :  { %v498_v23 = vadd.f32 %v497_v21, %v6510_v49  ;;  %v499_v18 = vpop.f32.mrb[33].mxu0  ;;  %v1053_v13 = vpack.c.bf16 %v957_v63, %v953_v58  ;;  %v651_v33 = vadd.f32 %v650_v62, %v6598_v8  ;;  %v652_v34 = vpop.f32.mrb[33].mxu1  ;;  %v6717_v11 = vpack.c.bf16 %v927_v3, %v923_v55  ;;  %v5934_v63 = vld [vmem:[#allocation7 + $0x3e8] ss:$16 sps:$4 sm:$0xff]  }
 0x1b5   :  { %v500_v16 = vadd.f32 %v499_v18, %v6514_v0  ;;  %v501_v26 = vpop.f32.mrb[34].mxu0  ;;  %v1054_v35 = vpack.c.bf16 %v958_v10, %v954_v7  ;;  %2100 = vmatpush1.bf16.msra.mxu0 %v5910_v53  ;;  %2486 = vmatpush1.bf16.msra.mxu1 %v5925_v60  ;;  %v6721_v40 = vadd.f32 %v652_v34, %v6606_v14  ;;  %v654_v41 = vpop.f32.mrb[34].mxu1 }
 0x1b6   :  { %v833_v42 = vmul.f32 0.01, %v498_v23  ;;  %v502_v43 = vadd.f32 %v501_v26, %v6510_v49  ;;  %v503_v44 = vpop.f32.mrb[35].mxu0  ;;  %2101 = vmatprep.subr.bf16.mxu0 %v5921_v1  ;;  %2487 = vmatprep.subr.bf16.mxu1 %v5933_v2  ;;  %v803_v45 = vmul.f32 0.01, %v651_v33  ;;  %v655_v47 = vadd.f32 %v654_v41, %v6598_v8  ;;  %v656_v50 = vpop.f32.mrb[35].mxu1 }
 0x1b7   :  { %v834_v48 = vmul.f32 0.01, %v500_v16  ;;  %v504_v51 = vadd.f32 %v503_v44, %v6514_v0  ;;  %1982 = vmatprep.mubr.bf16.mxu0 %v1054_v35  ;;  %2368 = vmatprep.mubr.bf16.mxu1 %v1054_v35  ;;  %v804_v52 = vmul.f32 0.01, %v6721_v40  ;;  %v657_v53 = vadd.f32 %v656_v50, %v6606_v14 }
 0x1b8   :  { %v837_v55 = vmul.f32 0.01, %v502_v43  ;;  %1983 = vmatmul.mubr.bf16.gmra.mrb[76].mxu0 %v1053_v13  ;;  %2369 = vmatmul.mubr.bf16.gmra.mrb[108].mxu1 %v1053_v13  ;;  %v931_v58 = vmax.f32 %v651_v33, %v803_v45  ;;  %v807_v59 = vmul.f32 0.01, %v655_v47  ;;  %v961_v60 = vmax.f32 %v498_v23, %v833_v42 }
 0x1b9   :  { %v838_v61 = vmul.f32 0.01, %v504_v51  ;;  %2102 = vmatpush1.bf16.msra.mxu0 %v5919_v31  ;;  %2488 = vmatpush1.bf16.msra.mxu1 %v5931_v37  ;;  %v808_v1 = vmul.f32 0.01, %v657_v53  ;;  %v6728_v7 = vpack.c.bf16 %v928_v25, %v924_v24  ;;  %v962_v10 = vmax.f32 %v500_v16, %v834_v48 }
 0x1ba   :  { %v965_v2 = vmax.f32 %v502_v43, %v837_v55  ;;  %2103 = vmatprep.subr.bf16.mxu0 %v5930_v22  ;;  %2489 = vmatprep.subr.bf16.mxu1 %v5936_v39  ;;  %v935_v3 = vmax.f32 %v655_v47, %v807_v59  ;;  %v932_v18 = vmax.f32 %v6721_v40, %v804_v52 }
 0x1bb   :  { %v966_v21 = vmax.f32 %v504_v51, %v838_v61  ;;  %v507_v62 = vpop.f32.mrb[36].mxu0  ;;  %v936_v13 = vmax.f32 %v657_v53, %v808_v1  ;;  %v660_v33 = vpop.f32.mrb[36].mxu1 }
 0x1bc   :  { %v508_v23 = vadd.f32 %v507_v62, %v6510_v49  ;;  %v509_v34 = vpop.f32.mrb[37].mxu0  ;;  %v1057_v31 = vpack.c.bf16 %v965_v2, %v961_v60  ;;  %v661_v26 = vadd.f32 %v660_v33, %v6598_v8  ;;  %v662_v35 = vpop.f32.mrb[37].mxu1  ;;  %v6733_v37 = vpack.c.bf16 %v935_v3, %v931_v58 }
 0x1bd   :  { %v510_v22 = vadd.f32 %v509_v34, %v6514_v0  ;;  %v511_v24 = vpop.f32.mrb[38].mxu0  ;;  %v1058_v25 = vpack.c.bf16 %v966_v21, %v962_v10  ;;  %2104 = vmatpush1.bf16.msra.mxu0 %v5928_v56  ;;  %2490 = vmatpush1.bf16.msra.mxu1 %v5934_v63  ;;  %v663_v16 = vadd.f32 %v662_v35, %v6606_v14  ;;  %v664_v39 = vpop.f32.mrb[38].mxu1 }
 0x1be   :  { %v841_v40 = vmul.f32 0.01, %v508_v23  ;;  %v512_v41 = vadd.f32 %v511_v24, %v6510_v49  ;;  %v513_v42 = vpop.f32.mrb[39].mxu0  ;;  %v811_v43 = vmul.f32 0.01, %v661_v26  ;;  %v665_v44 = vadd.f32 %v664_v39, %v6598_v8  ;;  %v666_v45 = vpop.f32.mrb[39].mxu1 }
 0x1bf   :  { %v842_v47 = vmul.f32 0.01, %v510_v22  ;;  %v514_v50 = vadd.f32 %v513_v42, %v6514_v0  ;;  %1992 = vmatprep.mubr.bf16.mxu0 %v1058_v25  ;;  %2378 = vmatprep.mubr.bf16.mxu1 %v1058_v25  ;;  %v812_v48 = vmul.f32 0.01, %v663_v16  ;;  %v667_v51 = vadd.f32 %v666_v45, %v6606_v14 }
 0x1c0   :  { %v845_v52 = vmul.f32 0.01, %v512_v41  ;;  %1993 = vmatmul.mubr.bf16.gmra.mrb[80].mxu0 %v1057_v31  ;;  %2379 = vmatmul.mubr.bf16.gmra.mrb[112].mxu1 %v1057_v31  ;;  %v939_v53 = vmax.f32 %v661_v26, %v811_v43  ;;  %v815_v55 = vmul.f32 0.01, %v665_v44  ;;  %v969_v60 = vmax.f32 %v508_v23, %v841_v40 }
 0x1c1   :  { %v846_v56 = vmul.f32 0.01, %v514_v50  ;;  %v940_v58 = vmax.f32 %v663_v16, %v812_v48  ;;  %v816_v59 = vmul.f32 0.01, %v667_v51  ;;  %v6741_v1 = vpack.c.bf16 %v936_v13, %v932_v18 }
 0x1c2   :  { %v973_v61 = vmax.f32 %v512_v41, %v845_v52  ;;  %v943_v63 = vmax.f32 %v665_v44, %v815_v55  ;;  %v970_v2 = vmax.f32 %v510_v22, %v842_v47 }
 0x1c3   :  { %v974_v3 = vmax.f32 %v514_v50, %v846_v56  ;;  %v517_v10 = vpop.f32.mrb[40].mxu0  ;;  %v944_v21 = vmax.f32 %v667_v51, %v816_v59  ;;  %v670_v62 = vpop.f32.mrb[40].mxu1 }
 0x1c4   :  { %v518_v33 = vadd.f32 %v517_v10, %v6510_v49  ;;  %v519_v34 = vpop.f32.mrb[41].mxu0  ;;  %v1061_v35 = vpack.c.bf16 %v973_v61, %v969_v60  ;;  %v671_v31 = vadd.f32 %v670_v62, %v6598_v8  ;;  %v672_v26 = vpop.f32.mrb[41].mxu1  ;;  %v6745_v24 = vpack.c.bf16 %v943_v63, %v939_v53 }
 0x1c5   :  { %v520_v23 = vadd.f32 %v519_v34, %v6514_v0  ;;  %v521_v25 = vpop.f32.mrb[42].mxu0  ;;  %v1062_v16 = vpack.c.bf16 %v974_v3, %v970_v2  ;;  %v673_v18 = vadd.f32 %v672_v26, %v6606_v14  ;;  %v674_v13 = vpop.f32.mrb[42].mxu1  ;;  %v6749_v22 = vpack.c.bf16 %v944_v21, %v940_v58 }
 0x1c6   :  { %v849_v39 = vmul.f32 0.01, %v518_v33  ;;  %v522_v40 = vadd.f32 %v521_v25, %v6510_v49  ;;  %v523_v41 = vpop.f32.mrb[43].mxu0  ;;  %v819_v42 = vmul.f32 0.01, %v671_v31  ;;  %v675_v43 = vadd.f32 %v674_v13, %v6598_v8  ;;  %v676_v44 = vpop.f32.mrb[43].mxu1 }
 0x1c7   :  { %v850_v45 = vmul.f32 0.01, %v520_v23  ;;  %v524_v47 = vadd.f32 %v523_v41, %v6514_v0  ;;  %2002 = vmatprep.mubr.bf16.mxu0 %v1062_v16  ;;  %2388 = vmatprep.mubr.bf16.mxu1 %v1062_v16  ;;  %v820_v50 = vmul.f32 0.01, %v673_v18  ;;  %v677_v48 = vadd.f32 %v676_v44, %v6606_v14 }
 0x1c8   :  { %v853_v51 = vmul.f32 0.01, %v522_v40  ;;  %2003 = vmatmul.mubr.bf16.gmra.mrb[84].mxu0 %v1061_v35  ;;  %2389 = vmatmul.mubr.bf16.gmra.mrb[116].mxu1 %v1061_v35  ;;  %v947_v52 = vmax.f32 %v671_v31, %v819_v42  ;;  %v823_v53 = vmul.f32 0.01, %v675_v43  ;;  %v977_v59 = vmax.f32 %v518_v33, %v849_v39 }
 0x1c9   :  { %v854_v55 = vmul.f32 0.01, %v524_v47  ;;  %v948_v56 = vmax.f32 %v673_v18, %v820_v50  ;;  %v824_v58 = vmul.f32 0.01, %v677_v48  ;;  %v978_v63 = vmax.f32 %v520_v23, %v850_v45 }
 0x1ca   :  { %v981_v60 = vmax.f32 %v522_v40, %v853_v51  ;;  %v951_v61 = vmax.f32 %v675_v43, %v823_v53 }
 0x1cb   :  { %v982_v2 = vmax.f32 %v524_v47, %v854_v55  ;;  %v527_v3 = vpop.f32.mrb[44].mxu0  ;;  %v952_v10 = vmax.f32 %v677_v48, %v824_v58  ;;  %v680_v21 = vpop.f32.mrb[44].mxu1 }
 0x1cc   :  { %v528_v62 = vadd.f32 %v527_v3, %v6510_v49  ;;  %v529_v34 = vpop.f32.mrb[45].mxu0  ;;  %v1065_v26 = vpack.c.bf16 %v981_v60, %v977_v59  ;;  %v681_v25 = vadd.f32 %v680_v21, %v6598_v8  ;;  %v682_v35 = vpop.f32.mrb[45].mxu1  ;;  %v6757_v31 = vpack.c.bf16 %v951_v61, %v947_v52 }
 0x1cd   :  { %v530_v16 = vadd.f32 %v529_v34, %v6514_v0  ;;  %v531_v18 = vpop.f32.mrb[46].mxu0  ;;  %v1066_v33 = vpack.c.bf16 %v982_v2, %v978_v63  ;;  %v683_v13 = vadd.f32 %v682_v35, %v6606_v14  ;;  %v684_v23 = vpop.f32.mrb[46].mxu1  ;;  %v6761_v39 = vpack.c.bf16 %v952_v10, %v948_v56 }
 0x1ce   :  { %v857_v40 = vmul.f32 0.01, %v528_v62  ;;  %v532_v41 = vadd.f32 %v531_v18, %v6510_v49  ;;  %v533_v42 = vpop.f32.mrb[47].mxu0  ;;  %v827_v43 = vmul.f32 0.01, %v681_v25  ;;  %v685_v44 = vadd.f32 %v684_v23, %v6598_v8  ;;  %v686_v45 = vpop.f32.mrb[47].mxu1 }
 0x1cf   :  { %v858_v47 = vmul.f32 0.01, %v530_v16  ;;  %v534_v50 = vadd.f32 %v533_v42, %v6514_v0  ;;  %2012 = vmatprep.mubr.bf16.mxu0 %v1066_v33  ;;  %2398 = vmatprep.mubr.bf16.mxu1 %v1066_v33  ;;  %v828_v48 = vmul.f32 0.01, %v683_v13  ;;  %v687_v51 = vadd.f32 %v686_v45, %v6606_v14  ;;  %v5939_v45 = vld [vmem:[#allocation8 + $0x4] ss:$8 sps:$4 sm:$0xff]  }
 0x1d0   :  { %v861_v52 = vmul.f32 0.01, %v532_v41  ;;  %2013 = vmatmul.mubr.bf16.gmra.mrb[88].mxu0 %v1065_v26  ;;  %2399 = vmatmul.mubr.bf16.gmra.mrb[120].mxu1 %v1065_v26  ;;  %v955_v53 = vmax.f32 %v681_v25, %v827_v43  ;;  %v831_v55 = vmul.f32 0.01, %v685_v44  ;;  %v985_v59 = vmax.f32 %v528_v62, %v857_v40 }
 0x1d1   :  { %v862_v56 = vmul.f32 0.01, %v534_v50  ;;  %v956_v49 = vmax.f32 %v683_v13, %v828_v48  ;;  %v832_v58 = vmul.f32 0.01, %v687_v51  ;;  %v986_v63 = vmax.f32 %v530_v16, %v858_v47  ;;  %3369 = vmatprep.subr.bf16.mxu0 %v5939_v45 }
 0x1d2   :  { %v989_v60 = vmax.f32 %v532_v41, %v861_v52  ;;  %v959_v61 = vmax.f32 %v685_v44, %v831_v55 }
 0x1d3   :  { %v990_v2 = vmax.f32 %v534_v50, %v862_v56  ;;  %v960_v3 = vmax.f32 %v687_v51, %v832_v58  ;;  %v690_v0 = vpop.f32.mrb[48].mxu1 }
 0x1d4   :  { %v1069_v10 = vpack.c.bf16 %v989_v60, %v985_v59  ;;  %v691_v21 = vadd.f32 %v690_v0, %v6598_v8  ;;  %v692_v34 = vpop.f32.mrb[49].mxu1  ;;  %v6768_v35 = vpack.c.bf16 %v959_v61, %v955_v53 }
 0x1d5   :  { %v1070_v18 = vpack.c.bf16 %v990_v2, %v986_v63  ;;  %v693_v26 = vadd.f32 %v692_v34, %v6606_v14  ;;  %v694_v25 = vpop.f32.mrb[50].mxu1  ;;  %v6771_v33 = vpack.c.bf16 %v960_v3, %v956_v49 }
 0x1d6   :  { %v835_v13 = vmul.f32 0.01, %v691_v21  ;;  %v695_v62 = vadd.f32 %v694_v25, %v6598_v8  ;;  %v696_v23 = vpop.f32.mrb[51].mxu1 }
 0x1d7   :  { %2022 = vmatprep.mubr.bf16.mxu0 %v1070_v18  ;;  %2408 = vmatprep.mubr.bf16.mxu1 %v1070_v18  ;;  %v836_v16 = vmul.f32 0.01, %v693_v26  ;;  %v697_v40 = vadd.f32 %v696_v23, %v6606_v14 }
 0x1d8   :  { %2023 = vmatmul.mubr.bf16.gmra.mrb[92].mxu0 %v1069_v10  ;;  %2409 = vmatmul.mubr.bf16.gmra.mrb[124].mxu1 %v1069_v10  ;;  %v963_v41 = vmax.f32 %v691_v21, %v835_v13  ;;  %v839_v42 = vmul.f32 0.01, %v695_v62 }
 0x1d9   :  { %2032 = vmatprep.mubr.bf16.mxu0 %v6532_v17  ;;  %2418 = vmatprep.mubr.bf16.mxu1 %v6532_v17  ;;  %v964_v43 = vmax.f32 %v693_v26, %v836_v16  ;;  %v840_v44 = vmul.f32 0.01, %v697_v40 }
 0x1da   :  { %v967_v47 = vmax.f32 %v695_v62, %v839_v42 }
 0x1db   :  { %v968_v50 = vmax.f32 %v697_v40, %v840_v44  ;;  %v700_v48 = vpop.f32.mrb[52].mxu1 }
 0x1dc   :  { %v701_v51 = vadd.f32 %v700_v48, %v6598_v8  ;;  %v702_v52 = vpop.f32.mrb[53].mxu1  ;;  %v6778_v53 = vpack.c.bf16 %v967_v47, %v963_v41 }
 0x1dd   :  { %v703_v55 = vadd.f32 %v702_v52, %v6606_v14  ;;  %v704_v56 = vpop.f32.mrb[54].mxu1  ;;  %v6781_v49 = vpack.c.bf16 %v968_v50, %v964_v43 }
 0x1de   :  { %v843_v58 = vmul.f32 0.01, %v701_v51  ;;  %v705_v17 = vadd.f32 %v704_v56, %v6598_v8  ;;  %v706_v59 = vpop.f32.mrb[55].mxu1 }
 0x1df   :  { %v844_v60 = vmul.f32 0.01, %v703_v55  ;;  %v707_v61 = vadd.f32 %v706_v59, %v6606_v14 }
 0x1e0   :  { %2033 = vmatmul.mubr.bf16.gmra.mrb[96].mxu0 %v6526_v9  ;;  %2419 = vmatmul.mubr.bf16.gmra.mrb[128].mxu1 %v6526_v9  ;;  %v971_v63 = vmax.f32 %v701_v51, %v843_v58  ;;  %v847_v2 = vmul.f32 0.01, %v705_v17 }
 0x1e1   :  { %2042 = vmatprep.mubr.bf16.mxu0 %v6570_v29  ;;  %2428 = vmatprep.mubr.bf16.mxu1 %v6570_v29  ;;  %v972_v3 = vmax.f32 %v703_v55, %v844_v60  ;;  %v848_v0 = vmul.f32 0.01, %v707_v61 }
 0x1e2   :  { %v975_v10 = vmax.f32 %v705_v17, %v847_v2 }
 0x1e3   :  { %v976_v21 = vmax.f32 %v707_v61, %v848_v0  ;;  %v710_v34 = vpop.f32.mrb[56].mxu1 }
 0x1e4   :  { %v711_v18 = vadd.f32 %v710_v34, %v6598_v8  ;;  %v712_v26 = vpop.f32.mrb[57].mxu1  ;;  %v6790_v25 = vpack.c.bf16 %v975_v10, %v971_v63 }
 0x1e5   :  { %v713_v13 = vadd.f32 %v712_v26, %v6606_v14  ;;  %v714_v62 = vpop.f32.mrb[58].mxu1  ;;  %v6793_v9 = vpack.c.bf16 %v976_v21, %v972_v3 }
 0x1e6   :  { %v851_v23 = vmul.f32 0.01, %v711_v18  ;;  %v715_v16 = vadd.f32 %v714_v62, %v6598_v8  ;;  %v716_v40 = vpop.f32.mrb[59].mxu1 }
 0x1e7   :  { %v852_v29 = vmul.f32 0.01, %v713_v13  ;;  %v717_v41 = vadd.f32 %v716_v40, %v6606_v14 }
 0x1e8   :  { %2043 = vmatmul.mubr.bf16.gmra.mrb[100].mxu0 %v6552_v57  ;;  %2429 = vmatmul.mubr.bf16.gmra.mrb[132].mxu1 %v6552_v57  ;;  %v979_v42 = vmax.f32 %v711_v18, %v851_v23  ;;  %v855_v43 = vmul.f32 0.01, %v715_v16 }
 0x1e9   :  { %2052 = vmatprep.mubr.bf16.mxu0 %v6608_v20  ;;  %2438 = vmatprep.mubr.bf16.mxu1 %v6608_v20  ;;  %v980_v44 = vmax.f32 %v713_v13, %v852_v29  ;;  %v856_v45 = vmul.f32 0.01, %v717_v41 }
 0x1ea   :  { %v983_v47 = vmax.f32 %v715_v16, %v855_v43 }
 0x1eb   :  { %v984_v50 = vmax.f32 %v717_v41, %v856_v45  ;;  %v720_v48 = vpop.f32.mrb[60].mxu1 }
 0x1ec   :  { %v721_v51 = vadd.f32 %v720_v48, %v6598_v8  ;;  %v722_v52 = vpop.f32.mrb[61].mxu1  ;;  %v6802_v55 = vpack.c.bf16 %v983_v47, %v979_v42 }
 0x1ed   :  { %v723_v56 = vadd.f32 %v722_v52, %v6606_v14  ;;  %v724_v58 = vpop.f32.mrb[62].mxu1  ;;  %v6805_v57 = vpack.c.bf16 %v984_v50, %v980_v44 }
 0x1ee   :  { %v859_v17 = vmul.f32 0.01, %v721_v51  ;;  %v725_v59 = vadd.f32 %v724_v58, %v6598_v8  ;;  %v726_v60 = vpop.f32.mrb[63].mxu1 }
 0x1ef   :  { %v860_v20 = vmul.f32 0.01, %v723_v56  ;;  %v727_v61 = vadd.f32 %v726_v60, %v6606_v14 }
 0x1f0   :  { %2053 = vmatmul.mubr.bf16.gmra.mrb[104].mxu0 %v6579_v46  ;;  %2439 = vmatmul.mubr.bf16.gmra.mrb[136].mxu1 %v6579_v46  ;;  %v987_v63 = vmax.f32 %v721_v51, %v859_v17  ;;  %v863_v2 = vmul.f32 0.01, %v725_v59 }
 0x1f1   :  { %2062 = vmatprep.mubr.bf16.mxu0 %v6634_v12  ;;  %2448 = vmatprep.mubr.bf16.mxu1 %v6634_v12  ;;  %v988_v3 = vmax.f32 %v723_v56, %v860_v20  ;;  %v864_v0 = vmul.f32 0.01, %v727_v61 }
 0x1f2   :  { %v991_v10 = vmax.f32 %v725_v59, %v863_v2  ;;  %v5942_v2 = vld [vmem:[#allocation8 + $0x14] ss:$8 sps:$4 sm:$0xff]  }
 0x1f3   :  { %v992_v21 = vmax.f32 %v727_v61, %v864_v0  ;;  %v730_v34 = vpop.f32.mrb[64].mxu1 }
 0x1f4   :  { %v731_v18 = vadd.f32 %v730_v34, %v6598_v8  ;;  %v732_v26 = vpop.f32.mrb[65].mxu1  ;;  %v6814_v13 = vpack.c.bf16 %v991_v10, %v987_v63 }
 0x1f5   :  { %v733_v62 = vadd.f32 %v732_v26, %v6606_v14  ;;  %v734_v23 = vpop.f32.mrb[66].mxu1  ;;  %v6817_v46 = vpack.c.bf16 %v992_v21, %v988_v3 }
 0x1f6   :  { %v867_v16 = vmul.f32 0.01, %v731_v18  ;;  %v735_v40 = vadd.f32 %v734_v23, %v6598_v8  ;;  %v736_v29 = vpop.f32.mrb[67].mxu1  ;;  %v5945_v23 = vld [vmem:[#allocation8 + $0x24] ss:$8 sps:$4 sm:$0xff]  }
 0x1f7   :  { %v868_v12 = vmul.f32 0.01, %v733_v62  ;;  %v737_v41 = vadd.f32 %v736_v29, %v6606_v14 }
 0x1f8   :  { %2063 = vmatmul.mubr.bf16.gmra.mrb[108].mxu0 %v6616_v38  ;;  %2449 = vmatmul.mubr.bf16.gmra.mrb[140].mxu1 %v6616_v38  ;;  %v995_v42 = vmax.f32 %v731_v18, %v867_v16  ;;  %v871_v43 = vmul.f32 0.01, %v735_v40  ;;  %v5940_v18 = vld [vmem:[#allocation8 + $0x10] ss:$8 sps:$4 sm:$0xff]  }
 0x1f9   :  { %2105 = vmatprep.mubr.bf16.mxu0 %v6660_v6  ;;  %2491 = vmatprep.mubr.bf16.mxu1 %v6660_v6  ;;  %v996_v44 = vmax.f32 %v733_v62, %v868_v12  ;;  %v872_v45 = vmul.f32 0.01, %v737_v41  ;;  %v5937_v6 = vld [vmem:[#allocation8] ss:$8 sps:$4 sm:$0xff]  }
 0x1fa   :  { %v999_v47 = vmax.f32 %v735_v40, %v871_v43 }
 0x1fb   :  { %v1000_v50 = vmax.f32 %v737_v41, %v872_v45  ;;  %v740_v48 = vpop.f32.mrb[68].mxu1 }
 0x1fc   :  { %v741_v51 = vadd.f32 %v740_v48, %v6598_v8  ;;  %v742_v52 = vpop.f32.mrb[69].mxu1  ;;  %v6826_v56 = vpack.c.bf16 %v999_v47, %v995_v42 }
 0x1fd   :  { %v743_v58 = vadd.f32 %v742_v52, %v6606_v14  ;;  %v744_v17 = vpop.f32.mrb[70].mxu1  ;;  %v6829_v38 = vpack.c.bf16 %v1000_v50, %v996_v44  ;;  %v5943_v44 = vld [vmem:[#allocation8 + $0x20] ss:$8 sps:$4 sm:$0xff]   ;;  %v5948_v50 = vld [vmem:[#allocation8 + $0x34] ss:$8 sps:$4 sm:$0xff]  }
 0x1fe   :  { %v875_v59 = vmul.f32 0.01, %v741_v51  ;;  %v745_v60 = vadd.f32 %v744_v17, %v6598_v8  ;;  %v746_v20 = vpop.f32.mrb[71].mxu1 }
 0x1ff   :  { %v876_v61 = vmul.f32 0.01, %v743_v58  ;;  %v747_v63 = vadd.f32 %v746_v20, %v6606_v14 }
 0x200   :  { %2106 = vmatmul.mubr.bf16.vlgmr.msra.gmra.mrb[48].mxu0 %v6641_v32  ;;  %2492 = vmatmul.mubr.bf16.vlgmr.msra.gmra.mrb[80].mxu1 %v6641_v32  ;;  %v1003_v3 = vmax.f32 %v741_v51, %v875_v59  ;;  %v879_v0 = vmul.f32 0.01, %v745_v60  ;;  %v5946_v59 = vld [vmem:[#allocation8 + $0x30] ss:$8 sps:$4 sm:$0xff]  }
 0x201   :  { %2115 = vmatprep.mubr.bf16.mxu0 %v6686_v4  ;;  %2501 = vmatprep.mubr.bf16.mxu1 %v6686_v4  ;;  %v1004_v10 = vmax.f32 %v743_v58, %v876_v61  ;;  %v880_v21 = vmul.f32 0.01, %v747_v63 }
 0x202   :  { %v1007_v34 = vmax.f32 %v745_v60, %v879_v0  ;;  %3370 = vmatpush1.bf16.msra.mxu0 %v5937_v6  ;;  %v5951_v6 = vld [vmem:[#allocation8 + $0x44] ss:$8 sps:$4 sm:$0xff]  }
 0x203   :  { %v1008_v26 = vmax.f32 %v747_v63, %v880_v21  ;;  %v750_v62 = vpop.f32.mrb[72].mxu1  ;;  %3371 = vmatprep.subr.bf16.mxu0 %v5942_v2 }
 0x204   :  { %v751_v16 = vadd.f32 %v750_v62, %v6598_v8  ;;  %v752_v40 = vpop.f32.mrb[73].mxu1  ;;  %v6838_v29 = vpack.c.bf16 %v1007_v34, %v1003_v3  ;;  %v5949_v34 = vld [vmem:[#allocation8 + $0x40] ss:$8 sps:$4 sm:$0xff]   ;;  %v5954_v62 = vld [vmem:[#allocation8 + $0x54] ss:$8 sps:$4 sm:$0xff]  }
 0x205   :  { %v753_v32 = vadd.f32 %v752_v40, %v6606_v14  ;;  %v754_v12 = vpop.f32.mrb[74].mxu1  ;;  %v6841_v41 = vpack.c.bf16 %v1008_v26, %v1004_v10 }
 0x206   :  { %v883_v4 = vmul.f32 0.01, %v751_v16  ;;  %v755_v42 = vadd.f32 %v754_v12, %v6598_v8  ;;  %v756_v43 = vpop.f32.mrb[75].mxu1  ;;  %3372 = vmatpush1.bf16.msra.mxu0 %v5940_v18  ;;  %v5952_v12 = vld [vmem:[#allocation8 + $0x50] ss:$8 sps:$4 sm:$0xff]  }
 0x207   :  { %v884_v45 = vmul.f32 0.01, %v753_v32  ;;  %v757_v47 = vadd.f32 %v756_v43, %v6606_v14  ;;  %3373 = vmatprep.subr.bf16.mxu0 %v5945_v23 }
 0x208   :  { %2116 = vmatmul.mubr.bf16.gmra.mrb[52].mxu0 %v6668_v19  ;;  %2502 = vmatmul.mubr.bf16.gmra.mrb[84].mxu1 %v6668_v19  ;;  %v1011_v48 = vmax.f32 %v751_v16, %v883_v4  ;;  %v887_v51 = vmul.f32 0.01, %v755_v42 }
 0x209   :  { %2125 = vmatprep.mubr.bf16.mxu0 %v6710_v5  ;;  %2511 = vmatprep.mubr.bf16.mxu1 %v6710_v5  ;;  %v1012_v52 = vmax.f32 %v753_v32, %v884_v45  ;;  %v888_v58 = vmul.f32 0.01, %v757_v47  ;;  %v5963_v45 = vld [vmem:[#allocation8 + $0x84] ss:$8 sps:$4 sm:$0xff]  }
 0x20a   :  { %v1015_v17 = vmax.f32 %v755_v42, %v887_v51  ;;  %3374 = vmatpush1.bf16.msra.mxu0 %v5943_v44  ;;  %v5960_v44 = vld [vmem:[#allocation8 + $0x74] ss:$8 sps:$4 sm:$0xff]  }
 0x20b   :  { %v1016_v60 = vmax.f32 %v757_v47, %v888_v58  ;;  %v760_v20 = vpop.f32.mrb[76].mxu1  ;;  %3375 = vmatprep.subr.bf16.mxu0 %v5948_v50  ;;  %v5961_v47 = vld [vmem:[#allocation8 + $0x80] ss:$8 sps:$4 sm:$0xff]   ;;  %v5966_v50 = vld [vmem:[#allocation8 + $0x94] ss:$8 sps:$4 sm:$0xff]  }
 0x20c   :  { %v761_v61 = vadd.f32 %v760_v20, %v6598_v8  ;;  %v762_v63 = vpop.f32.mrb[77].mxu1  ;;  %v6850_v2 = vpack.c.bf16 %v1015_v17, %v1011_v48  ;;  %v5967_v48 = vld [vmem:[#allocation8 + $0xa0] ss:$8 sps:$4 sm:$0xff]   ;;  %v5972_v51 = vld [vmem:[#allocation8 + $0xb4] ss:$8 sps:$4 sm:$0xff]  }
 0x20d   :  { %v763_v19 = vadd.f32 %v762_v63, %v6606_v14  ;;  %v764_v3 = vpop.f32.mrb[78].mxu1  ;;  %v6853_v0 = vpack.c.bf16 %v1016_v60, %v1012_v52  ;;  %v5973_v52 = vld [vmem:[#allocation8 + $0xc0] ss:$8 sps:$4 sm:$0xff]   ;;  %v5978_v58 = vld [vmem:[#allocation8 + $0xd4] ss:$8 sps:$4 sm:$0xff]  }
 0x20e   :  { %v891_v5 = vmul.f32 0.01, %v761_v61  ;;  %v765_v10 = vadd.f32 %v764_v3, %v6598_v8  ;;  %v766_v21 = vpop.f32.mrb[79].mxu1  ;;  %3376 = vmatpush1.bf16.msra.mxu0 %v5946_v59  ;;  %v5979_v17 = vld [vmem:[#allocation8 + $0xe0] ss:$8 sps:$4 sm:$0xff]  }
 0x20f   :  { %v892_v18 = vmul.f32 0.01, %v763_v19  ;;  %v767_v26 = vadd.f32 %v766_v21, %v6606_v14  ;;  %3377 = vmatprep.subr.bf16.mxu0 %v5951_v6  ;;  %v5957_v14 = vld [vmem:[#allocation8 + $0x64] ss:$8 sps:$4 sm:$0xff]  }
 0x210   :  { %2126 = vmatmul.mubr.bf16.gmra.mrb[56].mxu0 %v6694_v15  ;;  %2512 = vmatmul.mubr.bf16.gmra.mrb[88].mxu1 %v6694_v15  ;;  %v1019_v23 = vmax.f32 %v761_v61, %v891_v5  ;;  %v895_v16 = vmul.f32 0.01, %v765_v10  ;;  %v5955_v15 = vld [vmem:[#allocation8 + $0x60] ss:$8 sps:$4 sm:$0xff]  }
 0x211   :  { %2135 = vmatprep.mubr.bf16.mxu0 %v6728_v7  ;;  %2521 = vmatprep.mubr.bf16.mxu1 %v6728_v7  ;;  %v1020_v40 = vmax.f32 %v763_v19, %v892_v18  ;;  %v896_v8 = vmul.f32 0.01, %v767_v26  ;;  %v5958_v7 = vld [vmem:[#allocation8 + $0x70] ss:$8 sps:$4 sm:$0xff]  }
 0x212   :  { %v1023_v32 = vmax.f32 %v765_v10, %v895_v16  ;;  %3378 = vmatpush1.bf16.msra.mxu0 %v5949_v34 }
 0x213   :  { %v1024_v4 = vmax.f32 %v767_v26, %v896_v8  ;;  %3379 = vmatprep.subr.bf16.mxu0 %v5954_v62 }
 0x214   :  { %v6861_v42 = vpack.c.bf16 %v1023_v32, %v1019_v23 }
 0x215   :  { %v6863_v43 = vpack.c.bf16 %v1024_v4, %v1020_v40 }
 0x216   :  { %3380 = vmatpush1.bf16.msra.mxu0 %v5952_v12 }
 0x217   :  { %3381 = vmatprep.subr.bf16.mxu0 %v5957_v14 }
 0x218   :  { %2136 = vmatmul.mubr.bf16.gmra.mrb[60].mxu0 %v6717_v11  ;;  %2522 = vmatmul.mubr.bf16.gmra.mrb[92].mxu1 %v6717_v11  ;;  %v5964_v11 = vld [vmem:[#allocation8 + $0x90] ss:$8 sps:$4 sm:$0xff]  }
 0x219   :  { %2145 = vmatprep.mubr.bf16.mxu0 %v6741_v1  ;;  %2531 = vmatprep.mubr.bf16.mxu1 %v6741_v1  ;;  %v5969_v1 = vld [vmem:[#allocation8 + $0xa4] ss:$8 sps:$4 sm:$0xff]  }
 0x21a   :  { %3382 = vmatpush1.bf16.msra.mxu0 %v5955_v15 }
 0x21b   :  { %3383 = vmatprep.subr.bf16.mxu0 %v5960_v44 }
 0x21e   :  { %3384 = vmatpush1.bf16.msra.mxu0 %v5958_v7 }
 0x21f   :  { %3385 = vmatprep.subr.bf16.mxu0 %v5963_v45 }
 0x220   :  { %2146 = vmatmul.mubr.bf16.gmra.mrb[64].mxu0 %v6733_v37  ;;  %2532 = vmatmul.mubr.bf16.gmra.mrb[96].mxu1 %v6733_v37  ;;  %v5970_v37 = vld [vmem:[#allocation8 + $0xb0] ss:$8 sps:$4 sm:$0xff]  }
 0x221   :  { %2155 = vmatprep.mubr.bf16.mxu0 %v6749_v22  ;;  %2541 = vmatprep.mubr.bf16.mxu1 %v6749_v22  ;;  %v5975_v22 = vld [vmem:[#allocation8 + $0xc4] ss:$8 sps:$4 sm:$0xff]  }
 0x222   :  { %3386 = vmatpush1.bf16.msra.mxu0 %v5961_v47 }
 0x223   :  { %3387 = vmatprep.subr.bf16.mxu0 %v5966_v50 }
 0x226   :  { %3388 = vmatpush1.bf16.msra.mxu0 %v5964_v11 }
 0x227   :  { %3389 = vmatprep.subr.bf16.mxu0 %v5969_v1 }
 0x228   :  { %2156 = vmatmul.mubr.bf16.gmra.mrb[68].mxu0 %v6745_v24  ;;  %2542 = vmatmul.mubr.bf16.gmra.mrb[100].mxu1 %v6745_v24  ;;  %v5976_v24 = vld [vmem:[#allocation8 + $0xd0] ss:$8 sps:$4 sm:$0xff]  }
 0x229   :  { %2165 = vmatprep.mubr.bf16.mxu0 %v6761_v39  ;;  %2551 = vmatprep.mubr.bf16.mxu1 %v6761_v39  ;;  %v5981_v39 = vld [vmem:[#allocation8 + $0xe4] ss:$8 sps:$4 sm:$0xff]  }
 0x22a   :  { %3390 = vmatpush1.bf16.msra.mxu0 %v5967_v48  ;;  %v5985_v48 = vld [vmem:[#allocation8 + $0x100] ss:$8 sps:$4 sm:$0xff]  }
 0x22b   :  { %3391 = vmatprep.subr.bf16.mxu0 %v5972_v51  ;;  %v5990_v51 = vld [vmem:[#allocation8 + $0x114] ss:$8 sps:$4 sm:$0xff]  }
 0x22e   :  { %3392 = vmatpush1.bf16.msra.mxu0 %v5970_v37 }
 0x22f   :  { %3393 = vmatprep.subr.bf16.mxu0 %v5975_v22 }
 0x230   :  { %2166 = vmatmul.mubr.bf16.gmra.mrb[72].mxu0 %v6757_v31  ;;  %2552 = vmatmul.mubr.bf16.gmra.mrb[104].mxu1 %v6757_v31  ;;  %v5984_v31 = vld [vmem:[#allocation8 + $0xf4] ss:$8 sps:$4 sm:$0xff]  }
 0x231   :  { %2175 = vmatprep.mubr.bf16.mxu0 %v6771_v33  ;;  %2561 = vmatprep.mubr.bf16.mxu1 %v6771_v33  ;;  %v5987_v33 = vld [vmem:[#allocation8 + $0x104] ss:$8 sps:$4 sm:$0xff]  }
 0x232   :  { %3394 = vmatpush1.bf16.msra.mxu0 %v5973_v52 }
 0x233   :  { %3395 = vmatprep.subr.bf16.mxu0 %v5978_v58 }
 0x236   :  { %3396 = vmatpush1.bf16.msra.mxu0 %v5976_v24 }
 0x237   :  { %3397 = vmatprep.subr.bf16.mxu0 %v5981_v39 }
 0x238   :  { %2176 = vmatmul.mubr.bf16.gmra.mrb[76].mxu0 %v6768_v35  ;;  %2562 = vmatmul.mubr.bf16.gmra.mrb[108].mxu1 %v6768_v35  ;;  %v5982_v35 = vld [vmem:[#allocation8 + $0xf0] ss:$8 sps:$4 sm:$0xff]  }
 0x239   :  { %2185 = vmatprep.mubr.bf16.mxu0 %v6781_v49  ;;  %2571 = vmatprep.mubr.bf16.mxu1 %v6781_v49 }
 0x23a   :  { %3398 = vmatpush1.bf16.msra.mxu0 %v5979_v17 }
 0x23b   :  { %3399 = vmatprep.subr.bf16.mxu0 %v5984_v31 }
 0x23e   :  { %3400 = vmatpush1.bf16.msra.mxu0 %v5982_v35 }
 0x23f   :  { %3562 = vmatprep.subr.bf16.mxu0 %v5987_v33 }
 0x240   :  { %2186 = vmatmul.mubr.bf16.gmra.mrb[80].mxu0 %v6778_v53  ;;  %2572 = vmatmul.mubr.bf16.gmra.mrb[112].mxu1 %v6778_v53  ;;  %v1218_v53 = vld [vmem:[#allocation13 + $0x1] ss:$8 sm:$0xf] }
 0x241   :  { %2195 = vmatprep.mubr.bf16.mxu0 %v6793_v9  ;;  %2581 = vmatprep.mubr.bf16.mxu1 %v6793_v9  ;;  %v6916_v49 = vrot.slane %v1218_v53, %v6501_v28  ;;  %v6923_v9 = vrot.slane %v1218_v53, %v6506_v36 }
 0x248   :  { %2196 = vmatmul.mubr.bf16.gmra.mrb[84].mxu0 %v6790_v25  ;;  %2582 = vmatmul.mubr.bf16.gmra.mrb[116].mxu1 %v6790_v25  ;;  %v6920_v25 = vrot.slane %v1218_v53, %v213_v30 }
 0x249   :  { %2205 = vmatprep.mubr.bf16.mxu0 %v6805_v57  ;;  %2591 = vmatprep.mubr.bf16.mxu1 %v6805_v57 }
 0x250   :  { %2206 = vmatmul.mubr.bf16.gmra.mrb[88].mxu0 %v6802_v55  ;;  %2592 = vmatmul.mubr.bf16.gmra.mrb[120].mxu1 %v6802_v55  ;;  %v6927_v55 = vrot.slane %v1218_v53, %v217_v54 }
 0x251   :  { %2215 = vmatprep.mubr.bf16.mxu0 %v6817_v46  ;;  %2601 = vmatprep.mubr.bf16.mxu1 %v6817_v46 }
 0x258   :  { %2216 = vmatmul.mubr.bf16.gmra.mrb[92].mxu0 %v6814_v13  ;;  %2602 = vmatmul.mubr.bf16.gmra.mrb[124].mxu1 %v6814_v13 }
 0x259   :  { %2225 = vmatprep.mubr.bf16.mxu0 %v6829_v38  ;;  %2611 = vmatprep.mubr.bf16.mxu1 %v6829_v38 }
 0x260   :  { %2226 = vmatmul.mubr.bf16.gmra.mrb[96].mxu0 %v6826_v56  ;;  %2612 = vmatmul.mubr.bf16.gmra.mrb[128].mxu1 %v6826_v56 }
 0x261   :  { %2235 = vmatprep.mubr.bf16.mxu0 %v6841_v41  ;;  %2621 = vmatprep.mubr.bf16.mxu1 %v6841_v41 }
 0x268   :  { %2236 = vmatmul.mubr.bf16.gmra.mrb[100].mxu0 %v6838_v29  ;;  %2622 = vmatmul.mubr.bf16.gmra.mrb[132].mxu1 %v6838_v29 }
 0x269   :  { %2245 = vmatprep.mubr.bf16.mxu0 %v6853_v0  ;;  %2631 = vmatprep.mubr.bf16.mxu1 %v6853_v0 }
 0x270   :  { %2246 = vmatmul.mubr.bf16.gmra.mrb[104].mxu0 %v6850_v2  ;;  %2632 = vmatmul.mubr.bf16.gmra.mrb[136].mxu1 %v6850_v2 }
 0x271   :  { %2255 = vmatprep.mubr.bf16.mxu0 %v6863_v43  ;;  %2641 = vmatprep.mubr.bf16.mxu1 %v6863_v43 }
 0x278   :  { %2256 = vmatmul.mubr.bf16.gmra.mrb[108].mxu0 %v6861_v42  ;;  %2642 = vmatmul.mubr.bf16.gmra.mrb[140].mxu1 %v6861_v42 }
 0x2d3   :  { %v2107_v57 = vpop.f32.mrb[48].mxu0  ;;  %v2493_v13 = vpop.f32.mrb[80].mxu1 }
 0x2d4   :  { %v5298_v46 = vadd.f32 %v2107_v57, %v6916_v49  ;;  %v5362_v56 = vadd.f32 %v2493_v13, %v6920_v25  ;;  %v2109_v38 = vpop.f32.mrb[49].mxu0  ;;  %v2495_v29 = vpop.f32.mrb[81].mxu1 }
 0x2d5   :  { %v5299_v41 = vadd.f32 %v2109_v38, %v6923_v9  ;;  %v5363_v30 = vadd.f32 %v2495_v29, %v6927_v55  ;;  %v2111_v59 = vpop.f32.mrb[50].mxu0  ;;  %v2497_v60 = vpop.f32.mrb[82].mxu1  ;;  %v5988_v38 = vld [vmem:[#allocation8 + $0x110] ss:$8 sps:$4 sm:$0xff]  }
 0x2d6   :  { %v2652_v20 = vmul.f32 0.01, %v5298_v46  ;;  %v2654_v6 = vmul.f32 0.01, %v5362_v56  ;;  %v5300_v27 = vadd.f32 %v2111_v59, %v6916_v49  ;;  %v5364_v54 = vadd.f32 %v2497_v60, %v6920_v25  ;;  %v2113_v61 = vpop.f32.mrb[51].mxu0  ;;  %v2499_v63 = vpop.f32.mrb[83].mxu1 }
 0x2d7   :  { %v2653_v2 = vmul.f32 0.01, %v5299_v41  ;;  %v2655_v19 = vmul.f32 0.01, %v5363_v30  ;;  %v5301_v3 = vadd.f32 %v2113_v61, %v6923_v9  ;;  %v5365_v0 = vadd.f32 %v2499_v63, %v6927_v55  ;;  %v5993_v60 = vld [vmem:[#allocation8 + $0x124] ss:$8 sps:$4 sm:$0xff]  }
 0x2d8   :  { %v2656_v5 = vmul.f32 0.01, %v5300_v27  ;;  %v2658_v10 = vmul.f32 0.01, %v5364_v54  ;;  %v2780_v18 = vmax.f32 %v5298_v46, %v2652_v20  ;;  %v2782_v26 = vmax.f32 %v5362_v56, %v2654_v6 }
 0x2d9   :  { %v2657_v21 = vmul.f32 0.01, %v5301_v3  ;;  %v2659_v34 = vmul.f32 0.01, %v5365_v0  ;;  %v2781_v16 = vmax.f32 %v5299_v41, %v2653_v2  ;;  %v2783_v40 = vmax.f32 %v5363_v30, %v2655_v19 }
 0x2da   :  { %v2784_v62 = vmax.f32 %v5300_v27, %v2656_v5  ;;  %v2786_v23 = vmax.f32 %v5364_v54, %v2658_v10 }
 0x2db   :  { %v2785_v8 = vmax.f32 %v5301_v3, %v2657_v21  ;;  %v2787_v32 = vmax.f32 %v5365_v0, %v2659_v34  ;;  %v2117_v12 = vpop.f32.mrb[52].mxu0  ;;  %v2503_v4 = vpop.f32.mrb[84].mxu1 }
 0x2dc   :  { %v2908_v14 = vpack.c.bf16 %v2784_v62, %v2780_v18  ;;  %v6937_v42 = vpack.c.bf16 %v2786_v23, %v2782_v26  ;;  %v5302_v43 = vadd.f32 %v2117_v12, %v6916_v49  ;;  %v5366_v15 = vadd.f32 %v2503_v4, %v6920_v25  ;;  %v2119_v44 = vpop.f32.mrb[53].mxu0  ;;  %v2505_v7 = vpop.f32.mrb[85].mxu1  ;;  %v5991_v23 = vld [vmem:[#allocation8 + $0x120] ss:$8 sps:$4 sm:$0xff]  }
 0x2dd   :  { %v5303_v45 = vadd.f32 %v2119_v44, %v6923_v9  ;;  %v5367_v47 = vadd.f32 %v2505_v7, %v6927_v55  ;;  %v2121_v50 = vpop.f32.mrb[54].mxu0  ;;  %v2507_v11 = vpop.f32.mrb[86].mxu1  ;;  %v2909_v1 = vpack.c.bf16 %v2785_v8, %v2781_v16  ;;  %v6943_v37 = vpack.c.bf16 %v2787_v32, %v2783_v40  ;;  %v5996_v16 = vld [vmem:[#allocation8 + $0x134] ss:$8 sps:$4 sm:$0xff]  }
 0x2de   :  { %v2660_v22 = vmul.f32 0.01, %v5302_v43  ;;  %v2662_v52 = vmul.f32 0.01, %v5366_v15  ;;  %v5304_v58 = vadd.f32 %v2121_v50, %v6916_v49  ;;  %v5368_v24 = vadd.f32 %v2507_v11, %v6920_v25  ;;  %v2123_v39 = vpop.f32.mrb[55].mxu0  ;;  %v2509_v17 = vpop.f32.mrb[87].mxu1 }
 0x2df   :  { %v2661_v31 = vmul.f32 0.01, %v5303_v45  ;;  %v2663_v35 = vmul.f32 0.01, %v5367_v47  ;;  %v5305_v33 = vadd.f32 %v2123_v39, %v6923_v9  ;;  %v5369_v53 = vadd.f32 %v2509_v17, %v6927_v55  ;;  %3401 = vmatprep.mubr.bf16.mxu0 %v2909_v1 }
 0x2e0   :  { %v2664_v57 = vmul.f32 0.01, %v5304_v58  ;;  %v2666_v13 = vmul.f32 0.01, %v5368_v24  ;;  %3402 = vmatmul.mubr.bf16.vlgmr.msra.gmra.mrb[112].mxu0 %v2908_v14  ;;  %v2788_v29 = vmax.f32 %v5302_v43, %v2660_v22  ;;  %v2790_v41 = vmax.f32 %v5366_v15, %v2662_v52 }
 0x2e1   :  { %v2665_v46 = vmul.f32 0.01, %v5305_v33  ;;  %v2667_v56 = vmul.f32 0.01, %v5369_v53  ;;  %3563 = vmatpush1.bf16.msra.mxu0 %v5985_v48  ;;  %v2789_v20 = vmax.f32 %v5303_v45, %v2661_v31  ;;  %v2791_v6 = vmax.f32 %v5367_v47, %v2663_v35  ;;  %v5994_v48 = vld [vmem:[#allocation8 + $0x130] ss:$8 sps:$4 sm:$0xff]  }
 0x2e2   :  { %v2792_v30 = vmax.f32 %v5304_v58, %v2664_v57  ;;  %v2794_v59 = vmax.f32 %v5368_v24, %v2666_v13  ;;  %3564 = vmatprep.subr.bf16.mxu0 %v5990_v51  ;;  %v5999_v24 = vld [vmem:[#allocation8 + $0x144] ss:$8 sps:$4 sm:$0xff]  }
 0x2e3   :  { %v2793_v27 = vmax.f32 %v5305_v33, %v2665_v46  ;;  %v2795_v54 = vmax.f32 %v5369_v53, %v2667_v56  ;;  %v2127_v61 = vpop.f32.mrb[56].mxu0  ;;  %v2513_v63 = vpop.f32.mrb[88].mxu1 }
 0x2e4   :  { %v5306_v2 = vadd.f32 %v2127_v61, %v6916_v49  ;;  %v5370_v19 = vadd.f32 %v2513_v63, %v6920_v25  ;;  %v2129_v3 = vpop.f32.mrb[57].mxu0  ;;  %v2515_v0 = vpop.f32.mrb[89].mxu1  ;;  %v2912_v5 = vpack.c.bf16 %v2792_v30, %v2788_v29  ;;  %v6951_v10 = vpack.c.bf16 %v2794_v59, %v2790_v41 }
 0x2e5   :  { %v5307_v21 = vadd.f32 %v2129_v3, %v6923_v9  ;;  %v5371_v34 = vadd.f32 %v2515_v0, %v6927_v55  ;;  %v2131_v18 = vpop.f32.mrb[58].mxu0  ;;  %v2517_v26 = vpop.f32.mrb[90].mxu1  ;;  %v2913_v62 = vpack.c.bf16 %v2793_v27, %v2789_v20  ;;  %3565 = vmatpush1.bf16.msra.mxu0 %v5988_v38  ;;  %v6955_v40 = vpack.c.bf16 %v2795_v54, %v2791_v6  ;;  %v5997_v6 = vld [vmem:[#allocation8 + $0x140] ss:$8 sps:$4 sm:$0xff]   ;;  %v6002_v27 = vld [vmem:[#allocation8 + $0x154] ss:$8 sps:$4 sm:$0xff]  }
 0x2e6   :  { %v2668_v8 = vmul.f32 0.01, %v5306_v2  ;;  %v2670_v32 = vmul.f32 0.01, %v5370_v19  ;;  %v5308_v12 = vadd.f32 %v2131_v18, %v6916_v49  ;;  %v5372_v4 = vadd.f32 %v2517_v26, %v6920_v25  ;;  %v2133_v14 = vpop.f32.mrb[59].mxu0  ;;  %v2519_v43 = vpop.f32.mrb[91].mxu1  ;;  %3566 = vmatprep.subr.bf16.mxu0 %v5993_v60 }
 0x2e7   :  { %v2669_v15 = vmul.f32 0.01, %v5307_v21  ;;  %v2671_v44 = vmul.f32 0.01, %v5371_v34  ;;  %v5309_v7 = vadd.f32 %v2133_v14, %v6923_v9  ;;  %v5373_v45 = vadd.f32 %v2519_v43, %v6927_v55  ;;  %3411 = vmatprep.mubr.bf16.mxu0 %v2913_v62  ;;  %v6005_v43 = vld [vmem:[#allocation8 + $0x164] ss:$8 sps:$4 sm:$0xff]  }
 0x2e8   :  { %v2672_v47 = vmul.f32 0.01, %v5308_v12  ;;  %v2674_v50 = vmul.f32 0.01, %v5372_v4  ;;  %3412 = vmatmul.mubr.bf16.gmra.mrb[116].mxu0 %v2912_v5  ;;  %v2796_v51 = vmax.f32 %v5306_v2, %v2668_v8  ;;  %v2798_v22 = vmax.f32 %v5370_v19, %v2670_v32  ;;  %v6000_v8 = vld [vmem:[#allocation8 + $0x150] ss:$8 sps:$4 sm:$0xff]  }
 0x2e9   :  { %v2673_v11 = vmul.f32 0.01, %v5309_v7  ;;  %v2675_v1 = vmul.f32 0.01, %v5373_v45  ;;  %3567 = vmatpush1.bf16.msra.mxu0 %v5991_v23  ;;  %v2797_v39 = vmax.f32 %v5307_v21, %v2669_v15  ;;  %v2799_v17 = vmax.f32 %v5371_v34, %v2671_v44 }
 0x2ea   :  { %v2800_v52 = vmax.f32 %v5308_v12, %v2672_v47  ;;  %v2802_v58 = vmax.f32 %v5372_v4, %v2674_v50  ;;  %3568 = vmatprep.subr.bf16.mxu0 %v5996_v16 }
 0x2eb   :  { %v2801_v31 = vmax.f32 %v5309_v7, %v2673_v11  ;;  %v2803_v35 = vmax.f32 %v5373_v45, %v2675_v1  ;;  %v2137_v33 = vpop.f32.mrb[60].mxu0  ;;  %v2523_v53 = vpop.f32.mrb[92].mxu1 }
 0x2ec   :  { %v5310_v57 = vadd.f32 %v2137_v33, %v6916_v49  ;;  %v5374_v13 = vadd.f32 %v2523_v53, %v6920_v25  ;;  %v2139_v46 = vpop.f32.mrb[61].mxu0  ;;  %v2525_v56 = vpop.f32.mrb[93].mxu1  ;;  %v2916_v38 = vpack.c.bf16 %v2800_v52, %v2796_v51  ;;  %v6963_v29 = vpack.c.bf16 %v2802_v58, %v2798_v22  ;;  %v6008_v33 = vld [vmem:[#allocation8 + $0x174] ss:$8 sps:$4 sm:$0xff]  }
 0x2ed   :  { %v5311_v41 = vadd.f32 %v2139_v46, %v6923_v9  ;;  %v5375_v30 = vadd.f32 %v2525_v56, %v6927_v55  ;;  %v2141_v59 = vpop.f32.mrb[62].mxu0  ;;  %v2527_v60 = vpop.f32.mrb[94].mxu1  ;;  %v2917_v20 = vpack.c.bf16 %v2801_v31, %v2797_v39  ;;  %3569 = vmatpush1.bf16.msra.mxu0 %v5994_v48  ;;  %v6967_v54 = vpack.c.bf16 %v2803_v35, %v2799_v17  ;;  %v6003_v35 = vld [vmem:[#allocation8 + $0x160] ss:$8 sps:$4 sm:$0xff]  }
 0x2ee   :  { %v2676_v61 = vmul.f32 0.01, %v5310_v57  ;;  %v2678_v63 = vmul.f32 0.01, %v5374_v13  ;;  %v5312_v2 = vadd.f32 %v2141_v59, %v6916_v49  ;;  %v5376_v19 = vadd.f32 %v2527_v60, %v6920_v25  ;;  %v2143_v3 = vpop.f32.mrb[63].mxu0  ;;  %v2529_v0 = vpop.f32.mrb[95].mxu1  ;;  %3570 = vmatprep.subr.bf16.mxu0 %v5999_v24 }
 0x2ef   :  { %v2677_v5 = vmul.f32 0.01, %v5311_v41  ;;  %v2679_v21 = vmul.f32 0.01, %v5375_v30  ;;  %v5313_v34 = vadd.f32 %v2143_v3, %v6923_v9  ;;  %v5377_v18 = vadd.f32 %v2529_v0, %v6927_v55  ;;  %3421 = vmatprep.mubr.bf16.mxu0 %v2917_v20 }
 0x2f0   :  { %v2680_v26 = vmul.f32 0.01, %v5312_v2  ;;  %v2682_v62 = vmul.f32 0.01, %v5376_v19  ;;  %3422 = vmatmul.mubr.bf16.gmra.mrb[120].mxu0 %v2916_v38  ;;  %v2804_v32 = vmax.f32 %v5310_v57, %v2676_v61  ;;  %v2806_v12 = vmax.f32 %v5374_v13, %v2678_v63 }
 0x2f1   :  { %v2681_v23 = vmul.f32 0.01, %v5313_v34  ;;  %v2683_v16 = vmul.f32 0.01, %v5377_v18  ;;  %3571 = vmatpush1.bf16.msra.mxu0 %v5997_v6  ;;  %v2805_v15 = vmax.f32 %v5311_v41, %v2677_v5  ;;  %v2807_v44 = vmax.f32 %v5375_v30, %v2679_v21  ;;  %v6011_v21 = vld [vmem:[#allocation8 + $0x184] ss:$8 sps:$4 sm:$0xff]  }
 0x2f2   :  { %v2808_v4 = vmax.f32 %v5312_v2, %v2680_v26  ;;  %v2810_v14 = vmax.f32 %v5376_v19, %v2682_v62  ;;  %3572 = vmatprep.subr.bf16.mxu0 %v6002_v27  ;;  %v6006_v2 = vld [vmem:[#allocation8 + $0x170] ss:$8 sps:$4 sm:$0xff]  }
 0x2f3   :  { %v2809_v7 = vmax.f32 %v5313_v34, %v2681_v23  ;;  %v2811_v45 = vmax.f32 %v5377_v18, %v2683_v16  ;;  %v2147_v47 = vpop.f32.mrb[64].mxu0  ;;  %v2533_v50 = vpop.f32.mrb[96].mxu1 }
 0x2f4   :  { %v5314_v11 = vadd.f32 %v2147_v47, %v6916_v49  ;;  %v5378_v1 = vadd.f32 %v2533_v50, %v6920_v25  ;;  %v2149_v48 = vpop.f32.mrb[65].mxu0  ;;  %v2535_v51 = vpop.f32.mrb[97].mxu1  ;;  %v2920_v22 = vpack.c.bf16 %v2808_v4, %v2804_v32  ;;  %v6975_v52 = vpack.c.bf16 %v2810_v14, %v2806_v12  ;;  %v6009_v50 = vld [vmem:[#allocation8 + $0x180] ss:$8 sps:$4 sm:$0xff]  }
 0x2f5   :  { %v5315_v58 = vadd.f32 %v2149_v48, %v6923_v9  ;;  %v5379_v24 = vadd.f32 %v2535_v51, %v6927_v55  ;;  %v2151_v39 = vpop.f32.mrb[66].mxu0  ;;  %v2537_v17 = vpop.f32.mrb[98].mxu1  ;;  %v2921_v31 = vpack.c.bf16 %v2809_v7, %v2805_v15  ;;  %3573 = vmatpush1.bf16.msra.mxu0 %v6000_v8  ;;  %v6979_v53 = vpack.c.bf16 %v2811_v45, %v2807_v44 }
 0x2f6   :  { %v2684_v57 = vmul.f32 0.01, %v5314_v11  ;;  %v2686_v13 = vmul.f32 0.01, %v5378_v1  ;;  %v5316_v46 = vadd.f32 %v2151_v39, %v6916_v49  ;;  %v5380_v56 = vadd.f32 %v2537_v17, %v6920_v25  ;;  %v2153_v38 = vpop.f32.mrb[67].mxu0  ;;  %v2539_v41 = vpop.f32.mrb[99].mxu1  ;;  %3574 = vmatprep.subr.bf16.mxu0 %v6005_v43 }
 0x2f7   :  { %v2685_v30 = vmul.f32 0.01, %v5315_v58  ;;  %v2687_v59 = vmul.f32 0.01, %v5379_v24  ;;  %v5317_v60 = vadd.f32 %v2153_v38, %v6923_v9  ;;  %v5381_v20 = vadd.f32 %v2539_v41, %v6927_v55  ;;  %3431 = vmatprep.mubr.bf16.mxu0 %v2921_v31  ;;  %v6012_v38 = vld [vmem:[#allocation8 + $0x190] ss:$8 sps:$4 sm:$0xff]  }
 0x2f8   :  { %v2688_v6 = vmul.f32 0.01, %v5316_v46  ;;  %v2690_v27 = vmul.f32 0.01, %v5380_v56  ;;  %3432 = vmatmul.mubr.bf16.gmra.mrb[124].mxu0 %v2920_v22  ;;  %v2812_v19 = vmax.f32 %v5314_v11, %v2684_v57  ;;  %v2814_v3 = vmax.f32 %v5378_v1, %v2686_v13  ;;  %v6014_v11 = vld [vmem:[#allocation8 + $0x194] ss:$8 sps:$4 sm:$0xff]  }
 0x2f9   :  { %v2689_v61 = vmul.f32 0.01, %v5317_v60  ;;  %v2691_v63 = vmul.f32 0.01, %v5381_v20  ;;  %3575 = vmatpush1.bf16.msra.mxu0 %v6003_v35  ;;  %v2813_v34 = vmax.f32 %v5315_v58, %v2685_v30  ;;  %v2815_v18 = vmax.f32 %v5379_v24, %v2687_v59 }
 0x2fa   :  { %v2816_v0 = vmax.f32 %v5316_v46, %v2688_v6  ;;  %v2818_v5 = vmax.f32 %v5380_v56, %v2690_v27  ;;  %3576 = vmatprep.subr.bf16.mxu0 %v6008_v33 }
 0x2fb   :  { %v2817_v26 = vmax.f32 %v5317_v60, %v2689_v61  ;;  %v2819_v62 = vmax.f32 %v5381_v20, %v2691_v63  ;;  %v2157_v23 = vpop.f32.mrb[68].mxu0  ;;  %v2543_v16 = vpop.f32.mrb[100].mxu1  ;;  %v6017_v20 = vld [vmem:[#allocation8 + $0x1a4] ss:$8 sps:$4 sm:$0xff]  }
 0x2fc   :  { %v5318_v8 = vadd.f32 %v2157_v23, %v6916_v49  ;;  %v5382_v32 = vadd.f32 %v2543_v16, %v6920_v25  ;;  %v2159_v12 = vpop.f32.mrb[69].mxu0  ;;  %v2545_v4 = vpop.f32.mrb[101].mxu1  ;;  %v2924_v14 = vpack.c.bf16 %v2816_v0, %v2812_v19  ;;  %v6987_v43 = vpack.c.bf16 %v2818_v5, %v2814_v3 }
 0x2fd   :  { %v5319_v15 = vadd.f32 %v2159_v12, %v6923_v9  ;;  %v5383_v44 = vadd.f32 %v2545_v4, %v6927_v55  ;;  %v2161_v7 = vpop.f32.mrb[70].mxu0  ;;  %v2547_v45 = vpop.f32.mrb[102].mxu1  ;;  %v2925_v47 = vpack.c.bf16 %v2817_v26, %v2813_v34  ;;  %3577 = vmatpush1.bf16.msra.mxu0 %v6006_v2  ;;  %v6991_v1 = vpack.c.bf16 %v2819_v62, %v2815_v18  ;;  %v6020_v12 = vld [vmem:[#allocation8 + $0x1b4] ss:$8 sps:$4 sm:$0xff]  }
 0x2fe   :  { %v2692_v48 = vmul.f32 0.01, %v5318_v8  ;;  %v2694_v51 = vmul.f32 0.01, %v5382_v32  ;;  %v5320_v22 = vadd.f32 %v2161_v7, %v6916_v49  ;;  %v5384_v58 = vadd.f32 %v2547_v45, %v6920_v25  ;;  %v2163_v24 = vpop.f32.mrb[71].mxu0  ;;  %v2549_v39 = vpop.f32.mrb[103].mxu1  ;;  %3578 = vmatprep.subr.bf16.mxu0 %v6011_v21 }
 0x2ff   :  { %v2693_v17 = vmul.f32 0.01, %v5319_v15  ;;  %v2695_v31 = vmul.f32 0.01, %v5383_v44  ;;  %v5321_v35 = vadd.f32 %v2163_v24, %v6923_v9  ;;  %v5385_v33 = vadd.f32 %v2549_v39, %v6927_v55  ;;  %3441 = vmatprep.mubr.bf16.mxu0 %v2925_v47 }
 0x300   :  { %v2696_v57 = vmul.f32 0.01, %v5320_v22  ;;  %v2698_v13 = vmul.f32 0.01, %v5384_v58  ;;  %3442 = vmatmul.mubr.bf16.gmra.mrb[128].mxu0 %v2924_v14  ;;  %v2820_v41 = vmax.f32 %v5318_v8, %v2692_v48  ;;  %v2822_v30 = vmax.f32 %v5382_v32, %v2694_v51  ;;  %v6015_v32 = vld [vmem:[#allocation8 + $0x1a0] ss:$8 sps:$4 sm:$0xff]  }
 0x301   :  { %v2697_v46 = vmul.f32 0.01, %v5321_v35  ;;  %v2699_v56 = vmul.f32 0.01, %v5385_v33  ;;  %3579 = vmatpush1.bf16.msra.mxu0 %v6009_v50  ;;  %v2821_v6 = vmax.f32 %v5319_v15, %v2693_v17  ;;  %v2823_v27 = vmax.f32 %v5383_v44, %v2695_v31  ;;  %v6018_v17 = vld [vmem:[#allocation8 + $0x1b0] ss:$8 sps:$4 sm:$0xff]  }
 0x302   :  { %v2824_v59 = vmax.f32 %v5320_v22, %v2696_v57  ;;  %v2826_v60 = vmax.f32 %v5384_v58, %v2698_v13  ;;  %3580 = vmatprep.subr.bf16.mxu0 %v6014_v11  ;;  %v6023_v13 = vld [vmem:[#allocation8 + $0x1c4] ss:$8 sps:$4 sm:$0xff]  }
 0x303   :  { %v2825_v61 = vmax.f32 %v5321_v35, %v2697_v46  ;;  %v2827_v63 = vmax.f32 %v5385_v33, %v2699_v56  ;;  %v2167_v2 = vpop.f32.mrb[72].mxu0  ;;  %v2553_v19 = vpop.f32.mrb[104].mxu1 }
 0x304   :  { %v5322_v3 = vadd.f32 %v2167_v2, %v6916_v49  ;;  %v5386_v0 = vadd.f32 %v2553_v19, %v6920_v25  ;;  %v2169_v5 = vpop.f32.mrb[73].mxu0  ;;  %v2555_v21 = vpop.f32.mrb[105].mxu1  ;;  %v2928_v34 = vpack.c.bf16 %v2824_v59, %v2820_v41  ;;  %v6999_v18 = vpack.c.bf16 %v2826_v60, %v2822_v30 }
 0x305   :  { %v5323_v26 = vadd.f32 %v2169_v5, %v6923_v9  ;;  %v5387_v62 = vadd.f32 %v2555_v21, %v6927_v55  ;;  %v2171_v23 = vpop.f32.mrb[74].mxu0  ;;  %v2557_v16 = vpop.f32.mrb[106].mxu1  ;;  %v2929_v8 = vpack.c.bf16 %v2825_v61, %v2821_v6  ;;  %3581 = vmatpush1.bf16.msra.mxu0 %v6012_v38  ;;  %v7003_v4 = vpack.c.bf16 %v2827_v63, %v2823_v27  ;;  %v6021_v21 = vld [vmem:[#allocation8 + $0x1c0] ss:$8 sps:$4 sm:$0xff]  }
 0x306   :  { %v2700_v14 = vmul.f32 0.01, %v5322_v3  ;;  %v2702_v15 = vmul.f32 0.01, %v5386_v0  ;;  %v5324_v44 = vadd.f32 %v2171_v23, %v6916_v49  ;;  %v5388_v7 = vadd.f32 %v2557_v16, %v6920_v25  ;;  %v2173_v45 = vpop.f32.mrb[75].mxu0  ;;  %v2559_v47 = vpop.f32.mrb[107].mxu1  ;;  %3582 = vmatprep.subr.bf16.mxu0 %v6017_v20 }
 0x307   :  { %v2701_v50 = vmul.f32 0.01, %v5323_v26  ;;  %v2703_v11 = vmul.f32 0.01, %v5387_v62  ;;  %v5325_v48 = vadd.f32 %v2173_v45, %v6923_v9  ;;  %v5389_v51 = vadd.f32 %v2559_v47, %v6927_v55  ;;  %3451 = vmatprep.mubr.bf16.mxu0 %v2929_v8 }
 0x308   :  { %v2704_v22 = vmul.f32 0.01, %v5324_v44  ;;  %v2706_v58 = vmul.f32 0.01, %v5388_v7  ;;  %3452 = vmatmul.mubr.bf16.gmra.mrb[132].mxu0 %v2928_v34  ;;  %v2828_v31 = vmax.f32 %v5322_v3, %v2700_v14  ;;  %v2830_v35 = vmax.f32 %v5386_v0, %v2702_v15  ;;  %v6026_v34 = vld [vmem:[#allocation8 + $0x1d4] ss:$8 sps:$4 sm:$0xff]  }
 0x309   :  { %v2705_v24 = vmul.f32 0.01, %v5325_v48  ;;  %v2707_v39 = vmul.f32 0.01, %v5389_v51  ;;  %3583 = vmatpush1.bf16.msra.mxu0 %v6015_v32  ;;  %v2829_v46 = vmax.f32 %v5323_v26, %v2701_v50  ;;  %v2831_v56 = vmax.f32 %v5387_v62, %v2703_v11 }
 0x30a   :  { %v2832_v33 = vmax.f32 %v5324_v44, %v2704_v22  ;;  %v2834_v57 = vmax.f32 %v5388_v7, %v2706_v58  ;;  %3584 = vmatprep.subr.bf16.mxu0 %v6020_v12 }
 0x30b   :  { %v2833_v38 = vmax.f32 %v5325_v48, %v2705_v24  ;;  %v2835_v41 = vmax.f32 %v5389_v51, %v2707_v39  ;;  %v2177_v30 = vpop.f32.mrb[76].mxu0  ;;  %v2563_v59 = vpop.f32.mrb[108].mxu1  ;;  %v6024_v48 = vld [vmem:[#allocation8 + $0x1d0] ss:$8 sps:$4 sm:$0xff]   ;;  %v6029_v39 = vld [vmem:[#allocation8 + $0x1e4] ss:$8 sps:$4 sm:$0xff]  }
 0x30c   :  { %v5326_v60 = vadd.f32 %v2177_v30, %v6916_v49  ;;  %v5390_v20 = vadd.f32 %v2563_v59, %v6920_v25  ;;  %v2179_v6 = vpop.f32.mrb[77].mxu0  ;;  %v2565_v27 = vpop.f32.mrb[109].mxu1  ;;  %v2932_v61 = vpack.c.bf16 %v2832_v33, %v2828_v31  ;;  %v7011_v63 = vpack.c.bf16 %v2834_v57, %v2830_v35 }
 0x30d   :  { %v5327_v2 = vadd.f32 %v2179_v6, %v6923_v9  ;;  %v5391_v19 = vadd.f32 %v2565_v27, %v6927_v55  ;;  %v2181_v3 = vpop.f32.mrb[78].mxu0  ;;  %v2567_v0 = vpop.f32.mrb[110].mxu1  ;;  %v2933_v5 = vpack.c.bf16 %v2833_v38, %v2829_v46  ;;  %3585 = vmatpush1.bf16.msra.mxu0 %v6018_v17  ;;  %v7015_v26 = vpack.c.bf16 %v2835_v41, %v2831_v56 }
 0x30e   :  { %v2708_v62 = vmul.f32 0.01, %v5326_v60  ;;  %v2710_v23 = vmul.f32 0.01, %v5390_v20  ;;  %v5328_v16 = vadd.f32 %v2181_v3, %v6916_v49  ;;  %v5392_v8 = vadd.f32 %v2567_v0, %v6920_v25  ;;  %v2183_v32 = vpop.f32.mrb[79].mxu0  ;;  %v2569_v12 = vpop.f32.mrb[111].mxu1  ;;  %3586 = vmatprep.subr.bf16.mxu0 %v6023_v13 }
 0x30f   :  { %v2709_v14 = vmul.f32 0.01, %v5327_v2  ;;  %v2711_v15 = vmul.f32 0.01, %v5391_v19  ;;  %v5329_v44 = vadd.f32 %v2183_v32, %v6923_v9  ;;  %v5393_v7 = vadd.f32 %v2569_v12, %v6927_v55  ;;  %3461 = vmatprep.mubr.bf16.mxu0 %v2933_v5 }
 0x310   :  { %v2712_v45 = vmul.f32 0.01, %v5328_v16  ;;  %v2714_v47 = vmul.f32 0.01, %v5392_v8  ;;  %3462 = vmatmul.mubr.bf16.gmra.mrb[136].mxu0 %v2932_v61  ;;  %v2836_v51 = vmax.f32 %v5326_v60, %v2708_v62  ;;  %v2838_v22 = vmax.f32 %v5390_v20, %v2710_v23 }
 0x311   :  { %v2713_v50 = vmul.f32 0.01, %v5329_v44  ;;  %v2715_v11 = vmul.f32 0.01, %v5393_v7  ;;  %3587 = vmatpush1.bf16.msra.mxu0 %v6021_v21  ;;  %v2837_v17 = vmax.f32 %v5327_v2, %v2709_v14  ;;  %v2839_v31 = vmax.f32 %v5391_v19, %v2711_v15  ;;  %v6027_v2 = vld [vmem:[#allocation8 + $0x1e0] ss:$8 sps:$4 sm:$0xff]  }
 0x312   :  { %v2840_v58 = vmax.f32 %v5328_v16, %v2712_v45  ;;  %v2842_v24 = vmax.f32 %v5392_v8, %v2714_v47  ;;  %3588 = vmatprep.subr.bf16.mxu0 %v6026_v34  ;;  %v6032_v19 = vld [vmem:[#allocation8 + $0x1f4] ss:$8 sps:$4 sm:$0xff]   ;;  %v6030_v45 = vld [vmem:[#allocation8 + $0x1f0] ss:$8 sps:$4 sm:$0xff]  }
 0x313   :  { %v2841_v35 = vmax.f32 %v5329_v44, %v2713_v50  ;;  %v2843_v33 = vmax.f32 %v5393_v7, %v2715_v11  ;;  %v2187_v57 = vpop.f32.mrb[80].mxu0  ;;  %v2573_v13 = vpop.f32.mrb[112].mxu1 }
 0x314   :  { %v5330_v46 = vadd.f32 %v2187_v57, %v6916_v49  ;;  %v5394_v56 = vadd.f32 %v2573_v13, %v6920_v25  ;;  %v2189_v38 = vpop.f32.mrb[81].mxu0  ;;  %v2575_v41 = vpop.f32.mrb[113].mxu1  ;;  %v2936_v30 = vpack.c.bf16 %v2840_v58, %v2836_v51  ;;  %v7023_v59 = vpack.c.bf16 %v2842_v24, %v2838_v22 }
 0x315   :  { %v5331_v60 = vadd.f32 %v2189_v38, %v6923_v9  ;;  %v5395_v20 = vadd.f32 %v2575_v41, %v6927_v55  ;;  %v2191_v6 = vpop.f32.mrb[82].mxu0  ;;  %v2577_v27 = vpop.f32.mrb[114].mxu1  ;;  %v2937_v61 = vpack.c.bf16 %v2841_v35, %v2837_v17  ;;  %3589 = vmatpush1.bf16.msra.mxu0 %v6024_v48  ;;  %v7027_v3 = vpack.c.bf16 %v2843_v33, %v2839_v31 }
 0x316   :  { %v2716_v0 = vmul.f32 0.01, %v5330_v46  ;;  %v2718_v5 = vmul.f32 0.01, %v5394_v56  ;;  %v5332_v21 = vadd.f32 %v2191_v6, %v6916_v49  ;;  %v5396_v34 = vadd.f32 %v2577_v27, %v6920_v25  ;;  %v2193_v62 = vpop.f32.mrb[83].mxu0  ;;  %v2579_v23 = vpop.f32.mrb[115].mxu1  ;;  %3590 = vmatprep.subr.bf16.mxu0 %v6029_v39 }
 0x317   :  { %v2717_v16 = vmul.f32 0.01, %v5331_v60  ;;  %v2719_v8 = vmul.f32 0.01, %v5395_v20  ;;  %v5333_v32 = vadd.f32 %v2193_v62, %v6923_v9  ;;  %v5397_v12 = vadd.f32 %v2579_v23, %v6927_v55  ;;  %3471 = vmatprep.mubr.bf16.mxu0 %v2937_v61 }
 0x318   :  { %v2720_v14 = vmul.f32 0.01, %v5332_v21  ;;  %v2722_v15 = vmul.f32 0.01, %v5396_v34  ;;  %3472 = vmatmul.mubr.bf16.gmra.mrb[140].mxu0 %v2936_v30  ;;  %v2844_v47 = vmax.f32 %v5330_v46, %v2716_v0  ;;  %v2846_v50 = vmax.f32 %v5394_v56, %v2718_v5 }
 0x319   :  { %v2721_v44 = vmul.f32 0.01, %v5333_v32  ;;  %v2723_v7 = vmul.f32 0.01, %v5397_v12  ;;  %3591 = vmatpush1.bf16.msra.mxu0 %v6027_v2  ;;  %v2845_v51 = vmax.f32 %v5331_v60, %v2717_v16  ;;  %v2847_v22 = vmax.f32 %v5395_v20, %v2719_v8 }
 0x31a   :  { %v2848_v11 = vmax.f32 %v5332_v21, %v2720_v14  ;;  %v2850_v48 = vmax.f32 %v5396_v34, %v2722_v15  ;;  %3592 = vmatprep.subr.bf16.mxu0 %v6032_v19 }
 0x31b   :  { %v2849_v58 = vmax.f32 %v5333_v32, %v2721_v44  ;;  %v2851_v24 = vmax.f32 %v5397_v12, %v2723_v7  ;;  %v2197_v39 = vpop.f32.mrb[84].mxu0  ;;  %v2583_v17 = vpop.f32.mrb[116].mxu1 }
 0x31c   :  { %v5334_v31 = vadd.f32 %v2197_v39, %v6916_v49  ;;  %v5398_v35 = vadd.f32 %v2583_v17, %v6920_v25  ;;  %v2199_v33 = vpop.f32.mrb[85].mxu0  ;;  %v2585_v57 = vpop.f32.mrb[117].mxu1  ;;  %v2940_v13 = vpack.c.bf16 %v2848_v11, %v2844_v47  ;;  %v7035_v38 = vpack.c.bf16 %v2850_v48, %v2846_v50 }
 0x31d   :  { %v5335_v46 = vadd.f32 %v2199_v33, %v6923_v9  ;;  %v5399_v56 = vadd.f32 %v2585_v57, %v6927_v55  ;;  %v2201_v41 = vpop.f32.mrb[86].mxu0  ;;  %v2587_v30 = vpop.f32.mrb[118].mxu1  ;;  %v2941_v60 = vpack.c.bf16 %v2849_v58, %v2845_v51  ;;  %3593 = vmatpush1.bf16.msra.mxu0 %v6030_v45  ;;  %v7039_v20 = vpack.c.bf16 %v2851_v24, %v2847_v22 }
 0x31e   :  { %v2724_v6 = vmul.f32 0.01, %v5334_v31  ;;  %v2726_v27 = vmul.f32 0.01, %v5398_v35  ;;  %v5336_v61 = vadd.f32 %v2201_v41, %v6916_v49  ;;  %v5400_v2 = vadd.f32 %v2587_v30, %v6920_v25  ;;  %v2203_v19 = vpop.f32.mrb[87].mxu0  ;;  %v2589_v0 = vpop.f32.mrb[119].mxu1 }
 0x31f   :  { %v2725_v5 = vmul.f32 0.01, %v5335_v46  ;;  %v2727_v21 = vmul.f32 0.01, %v5399_v56  ;;  %v5337_v34 = vadd.f32 %v2203_v19, %v6923_v9  ;;  %v5401_v62 = vadd.f32 %v2589_v0, %v6927_v55  ;;  %3481 = vmatprep.mubr.bf16.mxu0 %v2941_v60 }
 0x320   :  { %v2728_v23 = vmul.f32 0.01, %v5336_v61  ;;  %v2730_v16 = vmul.f32 0.01, %v5400_v2  ;;  %3482 = vmatmul.mubr.bf16.gmra.mrb[144].mxu0 %v2940_v13  ;;  %v2852_v12 = vmax.f32 %v5334_v31, %v2724_v6  ;;  %v2854_v14 = vmax.f32 %v5398_v35, %v2726_v27 }
 0x321   :  { %v2729_v8 = vmul.f32 0.01, %v5337_v34  ;;  %v2731_v32 = vmul.f32 0.01, %v5401_v62  ;;  %v2853_v7 = vmax.f32 %v5335_v46, %v2725_v5  ;;  %v2855_v45 = vmax.f32 %v5399_v56, %v2727_v21 }
 0x322   :  { %v2856_v15 = vmax.f32 %v5336_v61, %v2728_v23  ;;  %v2858_v44 = vmax.f32 %v5400_v2, %v2730_v16 }
 0x323   :  { %v2857_v47 = vmax.f32 %v5337_v34, %v2729_v8  ;;  %v2859_v50 = vmax.f32 %v5401_v62, %v2731_v32  ;;  %v2207_v11 = vpop.f32.mrb[88].mxu0  ;;  %v2593_v48 = vpop.f32.mrb[120].mxu1 }
 0x324   :  { %v5338_v51 = vadd.f32 %v2207_v11, %v6916_v49  ;;  %v5402_v22 = vadd.f32 %v2593_v48, %v6920_v25  ;;  %v2209_v58 = vpop.f32.mrb[89].mxu0  ;;  %v2595_v24 = vpop.f32.mrb[121].mxu1  ;;  %v2944_v39 = vpack.c.bf16 %v2856_v15, %v2852_v12  ;;  %v7047_v17 = vpack.c.bf16 %v2858_v44, %v2854_v14 }
 0x325   :  { %v5339_v31 = vadd.f32 %v2209_v58, %v6923_v9  ;;  %v5403_v35 = vadd.f32 %v2595_v24, %v6927_v55  ;;  %v2211_v33 = vpop.f32.mrb[90].mxu0  ;;  %v2597_v57 = vpop.f32.mrb[122].mxu1  ;;  %v2945_v13 = vpack.c.bf16 %v2857_v47, %v2853_v7  ;;  %v7051_v46 = vpack.c.bf16 %v2859_v50, %v2855_v45 }
 0x326   :  { %v2732_v56 = vmul.f32 0.01, %v5338_v51  ;;  %v2734_v41 = vmul.f32 0.01, %v5402_v22  ;;  %v5340_v30 = vadd.f32 %v2211_v33, %v6916_v49  ;;  %v5404_v60 = vadd.f32 %v2597_v57, %v6920_v25  ;;  %v2213_v6 = vpop.f32.mrb[91].mxu0  ;;  %v2599_v27 = vpop.f32.mrb[123].mxu1 }
 0x327   :  { %v2733_v61 = vmul.f32 0.01, %v5339_v31  ;;  %v2735_v2 = vmul.f32 0.01, %v5403_v35  ;;  %v5341_v19 = vadd.f32 %v2213_v6, %v6923_v9  ;;  %v5405_v0 = vadd.f32 %v2599_v27, %v6927_v55  ;;  %3491 = vmatprep.mubr.bf16.mxu0 %v2945_v13 }
 0x328   :  { %v2736_v5 = vmul.f32 0.01, %v5340_v30  ;;  %v2738_v21 = vmul.f32 0.01, %v5404_v60  ;;  %3492 = vmatmul.mubr.bf16.gmra.mrb[148].mxu0 %v2944_v39  ;;  %v2860_v23 = vmax.f32 %v5338_v51, %v2732_v56  ;;  %v2862_v16 = vmax.f32 %v5402_v22, %v2734_v41 }
 0x329   :  { %v2737_v34 = vmul.f32 0.01, %v5341_v19  ;;  %v2739_v62 = vmul.f32 0.01, %v5405_v0  ;;  %v2861_v12 = vmax.f32 %v5339_v31, %v2733_v61  ;;  %v2863_v14 = vmax.f32 %v5403_v35, %v2735_v2 }
 0x32a   :  { %v2864_v8 = vmax.f32 %v5340_v30, %v2736_v5  ;;  %v2866_v32 = vmax.f32 %v5404_v60, %v2738_v21 }
 0x32b   :  { %v2865_v15 = vmax.f32 %v5341_v19, %v2737_v34  ;;  %v2867_v44 = vmax.f32 %v5405_v0, %v2739_v62  ;;  %v2217_v7 = vpop.f32.mrb[92].mxu0  ;;  %v2603_v45 = vpop.f32.mrb[124].mxu1 }
 0x32c   :  { %v5342_v47 = vadd.f32 %v2217_v7, %v6916_v49  ;;  %v5406_v50 = vadd.f32 %v2603_v45, %v6920_v25  ;;  %v2219_v11 = vpop.f32.mrb[93].mxu0  ;;  %v2605_v48 = vpop.f32.mrb[125].mxu1  ;;  %v2948_v58 = vpack.c.bf16 %v2864_v8, %v2860_v23  ;;  %v7059_v24 = vpack.c.bf16 %v2866_v32, %v2862_v16 }
 0x32d   :  { %v5343_v51 = vadd.f32 %v2219_v11, %v6923_v9  ;;  %v5407_v22 = vadd.f32 %v2605_v48, %v6927_v55  ;;  %v2221_v39 = vpop.f32.mrb[94].mxu0  ;;  %v2607_v31 = vpop.f32.mrb[126].mxu1  ;;  %v2949_v35 = vpack.c.bf16 %v2865_v15, %v2861_v12  ;;  %v7063_v33 = vpack.c.bf16 %v2867_v44, %v2863_v14 }
 0x32e   :  { %v2740_v57 = vmul.f32 0.01, %v5342_v47  ;;  %v2742_v13 = vmul.f32 0.01, %v5406_v50  ;;  %v5344_v56 = vadd.f32 %v2221_v39, %v6916_v49  ;;  %v5408_v41 = vadd.f32 %v2607_v31, %v6920_v25  ;;  %v2223_v30 = vpop.f32.mrb[95].mxu0  ;;  %v2609_v60 = vpop.f32.mrb[127].mxu1 }
 0x32f   :  { %v2741_v6 = vmul.f32 0.01, %v5343_v51  ;;  %v2743_v27 = vmul.f32 0.01, %v5407_v22  ;;  %v5345_v61 = vadd.f32 %v2223_v30, %v6923_v9  ;;  %v5409_v2 = vadd.f32 %v2609_v60, %v6927_v55  ;;  %3501 = vmatprep.mubr.bf16.mxu0 %v2949_v35 }
 0x330   :  { %v2744_v19 = vmul.f32 0.01, %v5344_v56  ;;  %v2746_v0 = vmul.f32 0.01, %v5408_v41  ;;  %3502 = vmatmul.mubr.bf16.gmra.mrb[152].mxu0 %v2948_v58  ;;  %v2868_v34 = vmax.f32 %v5342_v47, %v2740_v57  ;;  %v2870_v62 = vmax.f32 %v5406_v50, %v2742_v13 }
 0x331   :  { %v2745_v5 = vmul.f32 0.01, %v5345_v61  ;;  %v2747_v21 = vmul.f32 0.01, %v5409_v2  ;;  %v2869_v8 = vmax.f32 %v5343_v51, %v2741_v6  ;;  %v2871_v32 = vmax.f32 %v5407_v22, %v2743_v27 }
 0x332   :  { %v2872_v23 = vmax.f32 %v5344_v56, %v2744_v19  ;;  %v2874_v16 = vmax.f32 %v5408_v41, %v2746_v0 }
 0x333   :  { %v2873_v12 = vmax.f32 %v5345_v61, %v2745_v5  ;;  %v2875_v14 = vmax.f32 %v5409_v2, %v2747_v21  ;;  %v2227_v15 = vpop.f32.mrb[96].mxu0  ;;  %v2613_v44 = vpop.f32.mrb[128].mxu1 }
 0x334   :  { %v5346_v7 = vadd.f32 %v2227_v15, %v6916_v49  ;;  %v5410_v45 = vadd.f32 %v2613_v44, %v6920_v25  ;;  %v2229_v11 = vpop.f32.mrb[97].mxu0  ;;  %v2615_v48 = vpop.f32.mrb[129].mxu1  ;;  %v2952_v39 = vpack.c.bf16 %v2872_v23, %v2868_v34  ;;  %v7071_v58 = vpack.c.bf16 %v2874_v16, %v2870_v62  ;;  %v6033_v34 = vld [vmem:[#allocation10 + $0x40] sm:$0xff]  }
 0x335   :  { %v5347_v47 = vadd.f32 %v2229_v11, %v6923_v9  ;;  %v5411_v50 = vadd.f32 %v2615_v48, %v6927_v55  ;;  %v2231_v31 = vpop.f32.mrb[98].mxu0  ;;  %v2617_v51 = vpop.f32.mrb[130].mxu1  ;;  %v2953_v22 = vpack.c.bf16 %v2873_v12, %v2869_v8  ;;  %v7075_v35 = vpack.c.bf16 %v2875_v14, %v2871_v32  ;;  %5098 = vmatprep.subr.bf16.mxu1 %v6033_v34 }
 0x336   :  { %v2748_v57 = vmul.f32 0.01, %v5346_v7  ;;  %v2750_v13 = vmul.f32 0.01, %v5410_v45  ;;  %v5348_v56 = vadd.f32 %v2231_v31, %v6916_v49  ;;  %v5412_v41 = vadd.f32 %v2617_v51, %v6920_v25  ;;  %v2233_v30 = vpop.f32.mrb[99].mxu0  ;;  %v2619_v60 = vpop.f32.mrb[131].mxu1 }
 0x337   :  { %v2749_v6 = vmul.f32 0.01, %v5347_v47  ;;  %v2751_v27 = vmul.f32 0.01, %v5411_v50  ;;  %v5349_v61 = vadd.f32 %v2233_v30, %v6923_v9  ;;  %v5413_v2 = vadd.f32 %v2619_v60, %v6927_v55  ;;  %3511 = vmatprep.mubr.bf16.mxu0 %v2953_v22 }
 0x338   :  { %v2752_v19 = vmul.f32 0.01, %v5348_v56  ;;  %v2754_v0 = vmul.f32 0.01, %v5412_v41  ;;  %3512 = vmatmul.mubr.bf16.gmra.mrb[156].mxu0 %v2952_v39  ;;  %v2876_v62 = vmax.f32 %v5346_v7, %v2748_v57  ;;  %v2878_v23 = vmax.f32 %v5410_v45, %v2750_v13 }
 0x339   :  { %v2753_v5 = vmul.f32 0.01, %v5349_v61  ;;  %v2755_v21 = vmul.f32 0.01, %v5413_v2  ;;  %v2877_v32 = vmax.f32 %v5347_v47, %v2749_v6  ;;  %v2879_v12 = vmax.f32 %v5411_v50, %v2751_v27 }
 0x33a   :  { %v2880_v16 = vmax.f32 %v5348_v56, %v2752_v19  ;;  %v2882_v8 = vmax.f32 %v5412_v41, %v2754_v0 }
 0x33b   :  { %v2881_v14 = vmax.f32 %v5349_v61, %v2753_v5  ;;  %v2883_v15 = vmax.f32 %v5413_v2, %v2755_v21  ;;  %v2237_v44 = vpop.f32.mrb[100].mxu0  ;;  %v2623_v11 = vpop.f32.mrb[132].mxu1 }
 0x33c   :  { %v5350_v48 = vadd.f32 %v2237_v44, %v6916_v49  ;;  %v5414_v31 = vadd.f32 %v2623_v11, %v6920_v25  ;;  %v2239_v51 = vpop.f32.mrb[101].mxu0  ;;  %v2625_v39 = vpop.f32.mrb[133].mxu1  ;;  %v2956_v22 = vpack.c.bf16 %v2880_v16, %v2876_v62  ;;  %v7083_v30 = vpack.c.bf16 %v2882_v8, %v2878_v23  ;;  %v6034_v62 = vld [vmem:[#allocation10] sm:$0xff]  }
 0x33d   :  { %v5351_v7 = vadd.f32 %v2239_v51, %v6923_v9  ;;  %v5415_v45 = vadd.f32 %v2625_v39, %v6927_v55  ;;  %v2241_v47 = vpop.f32.mrb[102].mxu0  ;;  %v2627_v50 = vpop.f32.mrb[134].mxu1  ;;  %v2957_v57 = vpack.c.bf16 %v2881_v14, %v2877_v32  ;;  %v7087_v13 = vpack.c.bf16 %v2883_v15, %v2879_v12  ;;  %5099 = vmatpush3.bf16.msra.mxu1 %v6034_v62 }
 0x33e   :  { %v2756_v56 = vmul.f32 0.01, %v5350_v48  ;;  %v2758_v41 = vmul.f32 0.01, %v5414_v31  ;;  %v5352_v60 = vadd.f32 %v2241_v47, %v6916_v49  ;;  %v5416_v6 = vadd.f32 %v2627_v50, %v6920_v25  ;;  %v2243_v27 = vpop.f32.mrb[103].mxu0  ;;  %v2629_v61 = vpop.f32.mrb[135].mxu1 }
 0x33f   :  { %v2757_v2 = vmul.f32 0.01, %v5351_v7  ;;  %v2759_v19 = vmul.f32 0.01, %v5415_v45  ;;  %v5353_v0 = vadd.f32 %v2243_v27, %v6923_v9  ;;  %v5417_v5 = vadd.f32 %v2629_v61, %v6927_v55  ;;  %3521 = vmatprep.mubr.bf16.mxu0 %v2957_v57 }
 0x340   :  { %v2760_v21 = vmul.f32 0.01, %v5352_v60  ;;  %v2762_v34 = vmul.f32 0.01, %v5416_v6  ;;  %3522 = vmatmul.mubr.bf16.gmra.mrb[160].mxu0 %v2956_v22  ;;  %v2884_v8 = vmax.f32 %v5350_v48, %v2756_v56  ;;  %v2886_v32 = vmax.f32 %v5414_v31, %v2758_v41 }
 0x341   :  { %v2761_v23 = vmul.f32 0.01, %v5353_v0  ;;  %v2763_v16 = vmul.f32 0.01, %v5417_v5  ;;  %v2885_v15 = vmax.f32 %v5351_v7, %v2757_v2  ;;  %v2887_v44 = vmax.f32 %v5415_v45, %v2759_v19 }
 0x342   :  { %v2888_v12 = vmax.f32 %v5352_v60, %v2760_v21  ;;  %v2890_v14 = vmax.f32 %v5416_v6, %v2762_v34 }
 0x343   :  { %v2889_v11 = vmax.f32 %v5353_v0, %v2761_v23  ;;  %v2891_v51 = vmax.f32 %v5417_v5, %v2763_v16  ;;  %v2247_v39 = vpop.f32.mrb[104].mxu0  ;;  %v2633_v47 = vpop.f32.mrb[136].mxu1 }
 0x344   :  { %v5354_v50 = vadd.f32 %v2247_v39, %v6916_v49  ;;  %v5418_v57 = vadd.f32 %v2633_v47, %v6920_v25  ;;  %v2249_v27 = vpop.f32.mrb[105].mxu0  ;;  %v2635_v22 = vpop.f32.mrb[137].mxu1  ;;  %v2960_v61 = vpack.c.bf16 %v2888_v12, %v2884_v8  ;;  %v7095_v36 = vpack.c.bf16 %v2890_v14, %v2886_v32  ;;  %v6035_v14 = vld [vmem:[#allocation10 + $0x48] sm:$0xff]  }
 0x345   :  { %v5355_v48 = vadd.f32 %v2249_v27, %v6923_v9  ;;  %v5419_v31 = vadd.f32 %v2635_v22, %v6927_v55  ;;  %v2251_v56 = vpop.f32.mrb[106].mxu0  ;;  %v2637_v7 = vpop.f32.mrb[138].mxu1  ;;  %v2961_v45 = vpack.c.bf16 %v2889_v11, %v2885_v15  ;;  %v7099_v41 = vpack.c.bf16 %v2891_v51, %v2887_v44  ;;  %5100 = vmatprep.subr.bf16.mxu1 %v6035_v14 }
 0x346   :  { %7312 = vst [vmem:[#allocation22_spill] sm:$0xff] %v7095_v36  ;;  %v2764_v60 = vmul.f32 0.01, %v5354_v50  ;;  %v2766_v6 = vmul.f32 0.01, %v5418_v57  ;;  %v5356_v2 = vadd.f32 %v2251_v56, %v6916_v49  ;;  %v5420_v19 = vadd.f32 %v2637_v7, %v6920_v25  ;;  %v2253_v0 = vpop.f32.mrb[107].mxu0 }
 0x347   :  { %v2639_v5 = vpop.f32.mrb[139].mxu1  ;;  %v2765_v21 = vmul.f32 0.01, %v5355_v48  ;;  %v2767_v34 = vmul.f32 0.01, %v5419_v31  ;;  %v5357_v62 = vadd.f32 %v2253_v0, %v6923_v9  ;;  %3531 = vmatprep.mubr.bf16.mxu0 %v2961_v45 }
 0x348   :  { %v5421_v23 = vadd.f32 %v2639_v5, %v6927_v55  ;;  %v2768_v16 = vmul.f32 0.01, %v5356_v2  ;;  %v2770_v8 = vmul.f32 0.01, %v5420_v19  ;;  %3532 = vmatmul.mubr.bf16.gmra.mrb[164].mxu0 %v2960_v61  ;;  %v2892_v15 = vmax.f32 %v5354_v50, %v2764_v60 }
 0x349   :  { %v2769_v32 = vmul.f32 0.01, %v5357_v62  ;;  %v2894_v44 = vmax.f32 %v5418_v57, %v2766_v6  ;;  %v2893_v39 = vmax.f32 %v5355_v48, %v2765_v21  ;;  %v2895_v47 = vmax.f32 %v5419_v31, %v2767_v34 }
 0x34a   :  { %v2771_v12 = vmul.f32 0.01, %v5421_v23  ;;  %v2896_v11 = vmax.f32 %v5356_v2, %v2768_v16  ;;  %v2898_v51 = vmax.f32 %v5420_v19, %v2770_v8 }
 0x34b   :  { %v2897_v27 = vmax.f32 %v5357_v62, %v2769_v32  ;;  %v2257_v56 = vpop.f32.mrb[108].mxu0  ;;  %v2643_v7 = vpop.f32.mrb[140].mxu1 }
 0x34c   :  { %v2899_v22 = vmax.f32 %v5421_v23, %v2771_v12  ;;  %v5358_v0 = vadd.f32 %v2257_v56, %v6916_v49  ;;  %v5422_v45 = vadd.f32 %v2643_v7, %v6920_v25  ;;  %v2259_v5 = vpop.f32.mrb[109].mxu0  ;;  %v2645_v61 = vpop.f32.mrb[141].mxu1  ;;  %v2964_v28 = vpack.c.bf16 %v2896_v11, %v2892_v15 }
 0x34d   :  { %v7107_v36 = vpack.c.bf16 %v2898_v51, %v2894_v44  ;;  %v5359_v50 = vadd.f32 %v2259_v5, %v6923_v9  ;;  %v5423_v57 = vadd.f32 %v2645_v61, %v6927_v55  ;;  %v2261_v48 = vpop.f32.mrb[110].mxu0  ;;  %v2647_v31 = vpop.f32.mrb[142].mxu1  ;;  %v2965_v60 = vpack.c.bf16 %v2897_v27, %v2893_v39  ;;  %v6036_v44 = vld [vmem:[#allocation10 + $0x8] sm:$0xff]  }
 0x34e   :  { %v7111_v6 = vpack.c.bf16 %v2899_v22, %v2895_v47  ;;  %v2772_v2 = vmul.f32 0.01, %v5358_v0  ;;  %v2774_v19 = vmul.f32 0.01, %v5422_v45  ;;  %v5360_v21 = vadd.f32 %v2261_v48, %v6916_v49  ;;  %v2263_v62 = vpop.f32.mrb[111].mxu0  ;;  %v2649_v23 = vpop.f32.mrb[143].mxu1  ;;  %5101 = vmatpush3.bf16.msra.mxu1 %v6036_v44 }
 0x34f   :  { %v5424_v34 = vadd.f32 %v2647_v31, %v6920_v25  ;;  %v2773_v16 = vmul.f32 0.01, %v5359_v50  ;;  %v2775_v8 = vmul.f32 0.01, %v5423_v57  ;;  %v5361_v32 = vadd.f32 %v2263_v62, %v6923_v9  ;;  %3541 = vmatprep.mubr.bf16.mxu0 %v2965_v60  ;;  %v6037_v48 = vld [vmem:[#allocation10 + $0x50] sm:$0xff]   ;;  %v6039_v31 = vld [vmem:[#allocation10 + $0x58] sm:$0xff]  }
 0x350   :  { %v5425_v12 = vadd.f32 %v2649_v23, %v6927_v55  ;;  %v2776_v14 = vmul.f32 0.01, %v5360_v21  ;;  %3542 = vmatmul.mubr.bf16.gmra.mrb[168].mxu0 %v2964_v28  ;;  %v2900_v39 = vmax.f32 %v5358_v0, %v2772_v2  ;;  %v2902_v47 = vmax.f32 %v5422_v45, %v2774_v19  ;;  %v6038_v28 = vld [vmem:[#allocation10 + $0x10] sm:$0xff]   ;;  %5102 = vmatprep.subr.bf16.mxu1 %v6037_v48  ;;  %v6040_v0 = vld [vmem:[#allocation10 + $0x18] sm:$0xff]   ;;  %v6041_v45 = vld [vmem:[#allocation10 + $0x60] sm:$0xff]  }
 0x351   :  { %v2778_v15 = vmul.f32 0.01, %v5424_v34  ;;  %v2777_v11 = vmul.f32 0.01, %v5361_v32  ;;  %v2901_v25 = vmax.f32 %v5359_v50, %v2773_v16  ;;  %v2903_v22 = vmax.f32 %v5423_v57, %v2775_v8  ;;  %v6042_v50 = vld [vmem:[#allocation10 + $0x20] sm:$0xff]   ;;  %v6043_v57 = vld [vmem:[#allocation10 + $0x68] sm:$0xff]  }
 0x352   :  { %v2779_v51 = vmul.f32 0.01, %v5425_v12  ;;  %v2904_v49 = vmax.f32 %v5360_v21, %v2776_v14  ;;  %5103 = vmatpush3.bf16.msra.mxu1 %v6038_v28  ;;  %v6044_v60 = vld [vmem:[#allocation10 + $0x28] sm:$0xff]   ;;  %v6045_v2 = vld [vmem:[#allocation10 + $0x70] sm:$0xff]   ;;  %v6048_v21 = vld [vmem:[#allocation10 + $0x38] sm:$0xff]  }
 0x353   :  { %v2906_v27 = vmax.f32 %v5424_v34, %v2778_v15  ;;  %v2905_v56 = vmax.f32 %v5361_v32, %v2777_v11  ;;  %5104 = vmatprep.subr.bf16.mxu1 %v6039_v31  ;;  %v6046_v19 = vld [vmem:[#allocation10 + $0x30] sm:$0xff]   ;;  %v6050_v32 = vld [vmem:[#allocation11 + $0x8] sm:$0xff]   ;;  %v6052_v28 = vld [vmem:[#allocation11 + $0x18] sm:$0xff]  }
 0x354   :  { %v2907_v7 = vmax.f32 %v5425_v12, %v2779_v51  ;;  %v2968_v5 = vpack.c.bf16 %v2904_v49, %v2900_v39  ;;  %v6051_v39 = vld [vmem:[#allocation11 + $0x10] sm:$0xff]  }
 0x355   :  { %v2970_v9 = vpack.c.bf16 %v2906_v27, %v2902_v47  ;;  %v2969_v61 = vpack.c.bf16 %v2905_v56, %v2901_v25 }
 0x356   :  { %v2971_v55 = vpack.c.bf16 %v2907_v7, %v2903_v22  ;;  %5105 = vmatpush3.bf16.msra.mxu1 %v6040_v0 }
 0x357   :  { %3551 = vmatprep.mubr.bf16.mxu0 %v2969_v61  ;;  %5106 = vmatprep.subr.bf16.mxu1 %v6041_v45 }
 0x358   :  { %3552 = vmatmul.mubr.bf16.gmra.mrb[172].mxu0 %v2968_v5 }
 0x359   :  { %3594 = vmatprep.mubr.bf16.mxu0 %v6943_v37  ;;  %v6047_v37 = vld [vmem:[#allocation10 + $0x78] sm:$0xff]  }
 0x35a   :  { %5107 = vmatpush3.bf16.msra.mxu1 %v6042_v50 }
 0x35b   :  { %5108 = vmatprep.subr.bf16.mxu1 %v6043_v57 }
 0x35e   :  { %5109 = vmatpush3.bf16.msra.mxu1 %v6044_v60 }
 0x35f   :  { %5110 = vmatprep.subr.bf16.mxu1 %v6045_v2 }
 0x360   :  { %3595 = vmatmul.mubr.bf16.vlgmr.msra.gmra.mrb[112].mxu0 %v6937_v42  ;;  %v7313_v42 = vld [vmem:[#allocation22_spill] sm:$0xff] }
 0x361   :  { %3604 = vmatprep.mubr.bf16.mxu0 %v6955_v40  ;;  %v7314_v40 = vld [vmem:[#allocation20_spill] sm:$0xff] }
 0x362   :  { %5111 = vmatpush3.bf16.msra.mxu1 %v6046_v19 }
 0x363   :  { %5112 = vmatprep.subr.bf16.mxu1 %v6047_v37 }
 0x366   :  { %5113 = vmatpush3.bf16.msra.mxu1 %v6048_v21 }
 0x368   :  { %3605 = vmatmul.mubr.bf16.gmra.mrb[116].mxu0 %v6951_v10  ;;  %v3037_v10 = vld [vmem:[#allocation13 + $0x2] ss:$8 sm:$0x3] }
 0x369   :  { %3614 = vmatprep.mubr.bf16.mxu0 %v6967_v54  ;;  %v7315_v54 = vld [vmem:[#allocation21_spill] sm:$0xff] }
 0x370   :  { %3615 = vmatmul.mubr.bf16.gmra.mrb[120].mxu0 %v6963_v29  ;;  %v7148_v29 = vrot.slane %v3037_v10, %v7314_v40 }
 0x371   :  { %3624 = vmatprep.mubr.bf16.mxu0 %v6979_v53 }
 0x378   :  { %3625 = vmatmul.mubr.bf16.gmra.mrb[124].mxu0 %v6975_v52  ;;  %v7151_v52 = vrot.slane %v3037_v10, %v7315_v54 }
 0x379   :  { %3634 = vmatprep.mubr.bf16.mxu0 %v6991_v1 }
 0x380   :  { %3635 = vmatmul.mubr.bf16.gmra.mrb[128].mxu0 %v6987_v43 }
 0x381   :  { %3644 = vmatprep.mubr.bf16.mxu0 %v7003_v4 }
 0x388   :  { %3645 = vmatmul.mubr.bf16.gmra.mrb[132].mxu0 %v6999_v18 }
 0x389   :  { %3654 = vmatprep.mubr.bf16.mxu0 %v7015_v26 }
 0x390   :  { %3655 = vmatmul.mubr.bf16.gmra.mrb[136].mxu0 %v7011_v63 }
 0x391   :  { %3664 = vmatprep.mubr.bf16.mxu0 %v7027_v3 }
 0x398   :  { %3665 = vmatmul.mubr.bf16.gmra.mrb[140].mxu0 %v7023_v59 }
 0x399   :  { %3674 = vmatprep.mubr.bf16.mxu0 %v7039_v20  ;;  %v6049_v20 = vld [vmem:[#allocation11] sm:$0xff]  }
 0x39a   :  { %5234 = vmatprep.subr.bf16.mxu1 %v6049_v20 }
 0x3a0   :  { %3675 = vmatmul.mubr.bf16.gmra.mrb[144].mxu0 %v7035_v38 }
 0x3a1   :  { %3684 = vmatprep.mubr.bf16.mxu0 %v7051_v46 }
 0x3a8   :  { %3685 = vmatmul.mubr.bf16.gmra.mrb[148].mxu0 %v7047_v17 }
 0x3a9   :  { %3694 = vmatprep.mubr.bf16.mxu0 %v7063_v33 }
 0x3b0   :  { %3695 = vmatmul.mubr.bf16.gmra.mrb[152].mxu0 %v7059_v24 }
 0x3b1   :  { %3704 = vmatprep.mubr.bf16.mxu0 %v7075_v35 }
 0x3b8   :  { %3705 = vmatmul.mubr.bf16.gmra.mrb[156].mxu0 %v7071_v58 }
 0x3b9   :  { %3714 = vmatprep.mubr.bf16.mxu0 %v7087_v13 }
 0x3c0   :  { %3715 = vmatmul.mubr.bf16.gmra.mrb[160].mxu0 %v7083_v30 }
 0x3c1   :  { %3724 = vmatprep.mubr.bf16.mxu0 %v7099_v41 }
 0x3c8   :  { %3725 = vmatmul.mubr.bf16.gmra.mrb[164].mxu0 %v7313_v42 }
 0x3c9   :  { %3734 = vmatprep.mubr.bf16.mxu0 %v7111_v6 }
 0x3d0   :  { %3735 = vmatmul.mubr.bf16.gmra.mrb[168].mxu0 %v7107_v36 }
 0x3d1   :  { %3744 = vmatprep.mubr.bf16.mxu0 %v2971_v55 }
 0x3d8   :  { %3745 = vmatmul.mubr.bf16.gmra.mrb[172].mxu0 %v2970_v9 }
 0x433   :  { %v3596_v53 = vpop.f32.mrb[112].mxu0 }
 0x434   :  { %v5426_v43 = vadd.f32 %v3596_v53, %v7148_v29  ;;  %v3598_v1 = vpop.f32.mrb[113].mxu0 }
 0x435   :  { %v5427_v18 = vadd.f32 %v3598_v1, %v7151_v52  ;;  %v3600_v4 = vpop.f32.mrb[114].mxu0 }
 0x436   :  { %v3755_v63 = vmul.f32 0.01, %v5426_v43  ;;  %v5428_v26 = vadd.f32 %v3600_v4, %v7148_v29  ;;  %v3602_v36 = vpop.f32.mrb[115].mxu0 }
 0x437   :  { %v3756_v59 = vmul.f32 0.01, %v5427_v18  ;;  %v5429_v3 = vadd.f32 %v3602_v36, %v7151_v52 }
 0x438   :  { %v3757_v38 = vmul.f32 0.01, %v5428_v26  ;;  %v3819_v46 = vmax.f32 %v5426_v43, %v3755_v63 }
 0x439   :  { %v3758_v17 = vmul.f32 0.01, %v5429_v3  ;;  %v3820_v33 = vmax.f32 %v5427_v18, %v3756_v59 }
 0x43a   :  { %v3821_v24 = vmax.f32 %v5428_v26, %v3757_v38 }
 0x43b   :  { %v3822_v58 = vmax.f32 %v5429_v3, %v3758_v17  ;;  %v3606_v35 = vpop.f32.mrb[116].mxu0 }
 0x43c   :  { %v3883_v30 = vpack.c.bf16 %v3821_v24, %v3819_v46  ;;  %v5430_v13 = vadd.f32 %v3606_v35, %v7148_v29  ;;  %v3608_v41 = vpop.f32.mrb[117].mxu0 }
 0x43d   :  { %v5431_v6 = vadd.f32 %v3608_v41, %v7151_v52  ;;  %v3610_v34 = vpop.f32.mrb[118].mxu0  ;;  %v3884_v62 = vpack.c.bf16 %v3822_v58, %v3820_v33 }
 0x43e   :  { %v3759_v23 = vmul.f32 0.01, %v5430_v13  ;;  %v5432_v16 = vadd.f32 %v3610_v34, %v7148_v29  ;;  %v3612_v8 = vpop.f32.mrb[119].mxu0 }
 0x43f   :  { %v3760_v12 = vmul.f32 0.01, %v5431_v6  ;;  %v5433_v14 = vadd.f32 %v3612_v8, %v7151_v52  ;;  %4076 = vmatprep.mubr.bf16.mxu1 %v3884_v62 }
 0x440   :  { %v3761_v15 = vmul.f32 0.01, %v5432_v16  ;;  %4077 = vmatmul.mubr.bf16.vlgmr.msra.gmra.mrb[144].mxu1 %v3883_v30  ;;  %v3823_v11 = vmax.f32 %v5430_v13, %v3759_v23 }
 0x441   :  { %v3762_v44 = vmul.f32 0.01, %v5433_v14  ;;  %5235 = vmatpush3.bf16.msra.mxu1 %v6049_v20  ;;  %v3824_v47 = vmax.f32 %v5431_v6, %v3760_v12 }
 0x442   :  { %v3825_v51 = vmax.f32 %v5432_v16, %v3761_v15  ;;  %5236 = vmatprep.subr.bf16.mxu1 %v6050_v32 }
 0x443   :  { %v3826_v49 = vmax.f32 %v5433_v14, %v3762_v44  ;;  %v3616_v27 = vpop.f32.mrb[120].mxu0 }
 0x444   :  { %v5434_v25 = vadd.f32 %v3616_v27, %v7148_v29  ;;  %v3618_v22 = vpop.f32.mrb[121].mxu0  ;;  %v3885_v56 = vpack.c.bf16 %v3825_v51, %v3823_v11 }
 0x445   :  { %v5435_v7 = vadd.f32 %v3618_v22, %v7151_v52  ;;  %v3620_v5 = vpop.f32.mrb[122].mxu0  ;;  %v3886_v9 = vpack.c.bf16 %v3826_v49, %v3824_v47  ;;  %5237 = vmatpush3.bf16.msra.mxu1 %v6050_v32 }
 0x446   :  { %v3763_v61 = vmul.f32 0.01, %v5434_v25  ;;  %v5436_v55 = vadd.f32 %v3620_v5, %v7148_v29  ;;  %v3622_v48 = vpop.f32.mrb[123].mxu0  ;;  %5238 = vmatprep.subr.bf16.mxu1 %v6051_v39 }
 0x447   :  { %v3764_v31 = vmul.f32 0.01, %v5435_v7  ;;  %v5437_v0 = vadd.f32 %v3622_v48, %v7151_v52  ;;  %4084 = vmatprep.mubr.bf16.mxu1 %v3886_v9 }
 0x448   :  { %v3765_v45 = vmul.f32 0.01, %v5436_v55  ;;  %4085 = vmatmul.mubr.bf16.gmra.mrb[148].mxu1 %v3885_v56  ;;  %v3827_v57 = vmax.f32 %v5434_v25, %v3763_v61 }
 0x449   :  { %v3766_v50 = vmul.f32 0.01, %v5437_v0  ;;  %5239 = vmatpush3.bf16.msra.mxu1 %v6051_v39  ;;  %v3828_v2 = vmax.f32 %v5435_v7, %v3764_v31 }
 0x44a   :  { %v3829_v60 = vmax.f32 %v5436_v55, %v3765_v45  ;;  %5240 = vmatprep.subr.bf16.mxu1 %v6052_v28 }
 0x44b   :  { %v3830_v19 = vmax.f32 %v5437_v0, %v3766_v50  ;;  %v3626_v37 = vpop.f32.mrb[124].mxu0 }
 0x44c   :  { %v5438_v21 = vadd.f32 %v3626_v37, %v7148_v29  ;;  %v3628_v42 = vpop.f32.mrb[125].mxu0  ;;  %v3887_v10 = vpack.c.bf16 %v3829_v60, %v3827_v57 }
 0x44d   :  { %v5439_v40 = vadd.f32 %v3628_v42, %v7151_v52  ;;  %v3630_v54 = vpop.f32.mrb[126].mxu0  ;;  %v3888_v53 = vpack.c.bf16 %v3830_v19, %v3828_v2  ;;  %5241 = vmatpush3.bf16.msra.mxu1 %v6052_v28 }
 0x44e   :  { %v3767_v43 = vmul.f32 0.01, %v5438_v21  ;;  %v5440_v1 = vadd.f32 %v3630_v54, %v7148_v29  ;;  %v3632_v18 = vpop.f32.mrb[127].mxu0 }
 0x44f   :  { %v3768_v4 = vmul.f32 0.01, %v5439_v40  ;;  %v5441_v63 = vadd.f32 %v3632_v18, %v7151_v52  ;;  %4092 = vmatprep.mubr.bf16.mxu1 %v3888_v53 }
 0x450   :  { %v3769_v26 = vmul.f32 0.01, %v5440_v1  ;;  %4093 = vmatmul.mubr.bf16.gmra.mrb[152].mxu1 %v3887_v10  ;;  %v3831_v59 = vmax.f32 %v5438_v21, %v3767_v43 }
 0x451   :  { %v3770_v36 = vmul.f32 0.01, %v5441_v63  ;;  %v3832_v38 = vmax.f32 %v5439_v40, %v3768_v4 }
 0x452   :  { %v3833_v3 = vmax.f32 %v5440_v1, %v3769_v26 }
 0x453   :  { %v3834_v20 = vmax.f32 %v5441_v63, %v3770_v36  ;;  %v3636_v17 = vpop.f32.mrb[128].mxu0 }
 0x454   :  { %v5442_v46 = vadd.f32 %v3636_v17, %v7148_v29  ;;  %v3638_v24 = vpop.f32.mrb[129].mxu0  ;;  %v3889_v33 = vpack.c.bf16 %v3833_v3, %v3831_v59 }
 0x455   :  { %v5443_v58 = vadd.f32 %v3638_v24, %v7151_v52  ;;  %v3640_v35 = vpop.f32.mrb[130].mxu0  ;;  %v3890_v30 = vpack.c.bf16 %v3834_v20, %v3832_v38 }
 0x456   :  { %v3771_v13 = vmul.f32 0.01, %v5442_v46  ;;  %v5444_v41 = vadd.f32 %v3640_v35, %v7148_v29  ;;  %v3642_v6 = vpop.f32.mrb[131].mxu0 }
 0x457   :  { %v3772_v34 = vmul.f32 0.01, %v5443_v58  ;;  %v5445_v62 = vadd.f32 %v3642_v6, %v7151_v52  ;;  %4100 = vmatprep.mubr.bf16.mxu1 %v3890_v30 }
 0x458   :  { %v3773_v23 = vmul.f32 0.01, %v5444_v41  ;;  %4101 = vmatmul.mubr.bf16.gmra.mrb[156].mxu1 %v3889_v33  ;;  %v3835_v8 = vmax.f32 %v5442_v46, %v3771_v13 }
 0x459   :  { %v3774_v16 = vmul.f32 0.01, %v5445_v62  ;;  %v3836_v12 = vmax.f32 %v5443_v58, %v3772_v34 }
 0x45a   :  { %v3837_v32 = vmax.f32 %v5444_v41, %v3773_v23 }
 0x45b   :  { %v3838_v14 = vmax.f32 %v5445_v62, %v3774_v16  ;;  %v3646_v15 = vpop.f32.mrb[132].mxu0 }
 0x45c   :  { %v5446_v44 = vadd.f32 %v3646_v15, %v7148_v29  ;;  %v3648_v11 = vpop.f32.mrb[133].mxu0  ;;  %v3891_v51 = vpack.c.bf16 %v3837_v32, %v3835_v8 }
 0x45d   :  { %v5447_v39 = vadd.f32 %v3648_v11, %v7151_v52  ;;  %v3650_v47 = vpop.f32.mrb[134].mxu0  ;;  %v3892_v49 = vpack.c.bf16 %v3838_v14, %v3836_v12 }
 0x45e   :  { %v3775_v27 = vmul.f32 0.01, %v5446_v44  ;;  %v5448_v25 = vadd.f32 %v3650_v47, %v7148_v29  ;;  %v3652_v22 = vpop.f32.mrb[135].mxu0 }
 0x45f   :  { %v3776_v56 = vmul.f32 0.01, %v5447_v39  ;;  %v5449_v7 = vadd.f32 %v3652_v22, %v7151_v52  ;;  %4108 = vmatprep.mubr.bf16.mxu1 %v3892_v49 }
 0x460   :  { %v3777_v5 = vmul.f32 0.01, %v5448_v25  ;;  %4109 = vmatmul.mubr.bf16.gmra.mrb[160].mxu1 %v3891_v51  ;;  %v3839_v61 = vmax.f32 %v5446_v44, %v3775_v27 }
 0x461   :  { %v3778_v9 = vmul.f32 0.01, %v5449_v7  ;;  %v3840_v48 = vmax.f32 %v5447_v39, %v3776_v56 }
 0x462   :  { %v3841_v55 = vmax.f32 %v5448_v25, %v3777_v5 }
 0x463   :  { %v3842_v28 = vmax.f32 %v5449_v7, %v3778_v9  ;;  %v3656_v31 = vpop.f32.mrb[136].mxu0 }
 0x464   :  { %v5450_v0 = vadd.f32 %v3656_v31, %v7148_v29  ;;  %v3658_v45 = vpop.f32.mrb[137].mxu0  ;;  %v3893_v50 = vpack.c.bf16 %v3841_v55, %v3839_v61 }
 0x465   :  { %v5451_v57 = vadd.f32 %v3658_v45, %v7151_v52  ;;  %v3660_v60 = vpop.f32.mrb[138].mxu0  ;;  %v3894_v2 = vpack.c.bf16 %v3842_v28, %v3840_v48 }
 0x466   :  { %v3779_v19 = vmul.f32 0.01, %v5450_v0  ;;  %v5452_v37 = vadd.f32 %v3660_v60, %v7148_v29  ;;  %v3662_v21 = vpop.f32.mrb[139].mxu0 }
 0x467   :  { %v3780_v42 = vmul.f32 0.01, %v5451_v57  ;;  %v5453_v10 = vadd.f32 %v3662_v21, %v7151_v52  ;;  %4116 = vmatprep.mubr.bf16.mxu1 %v3894_v2 }
 0x468   :  { %v3781_v40 = vmul.f32 0.01, %v5452_v37  ;;  %4117 = vmatmul.mubr.bf16.gmra.mrb[164].mxu1 %v3893_v50  ;;  %v3843_v53 = vmax.f32 %v5450_v0, %v3779_v19 }
 0x469   :  { %v3782_v54 = vmul.f32 0.01, %v5453_v10  ;;  %v3844_v1 = vmax.f32 %v5451_v57, %v3780_v42 }
 0x46a   :  { %v3845_v43 = vmax.f32 %v5452_v37, %v3781_v40 }
 0x46b   :  { %v3846_v18 = vmax.f32 %v5453_v10, %v3782_v54  ;;  %v3666_v4 = vpop.f32.mrb[140].mxu0 }
 0x46c   :  { %v5454_v63 = vadd.f32 %v3666_v4, %v7148_v29  ;;  %v3668_v26 = vpop.f32.mrb[141].mxu0  ;;  %v3895_v36 = vpack.c.bf16 %v3845_v43, %v3843_v53 }
 0x46d   :  { %v5455_v59 = vadd.f32 %v3668_v26, %v7151_v52  ;;  %v3670_v3 = vpop.f32.mrb[142].mxu0  ;;  %v3896_v38 = vpack.c.bf16 %v3846_v18, %v3844_v1 }
 0x46e   :  { %v3783_v20 = vmul.f32 0.01, %v5454_v63  ;;  %v5456_v17 = vadd.f32 %v3670_v3, %v7148_v29  ;;  %v3672_v46 = vpop.f32.mrb[143].mxu0 }
 0x46f   :  { %v3784_v24 = vmul.f32 0.01, %v5455_v59  ;;  %v5457_v33 = vadd.f32 %v3672_v46, %v7151_v52  ;;  %4124 = vmatprep.mubr.bf16.mxu1 %v3896_v38 }
 0x470   :  { %v3785_v58 = vmul.f32 0.01, %v5456_v17  ;;  %4125 = vmatmul.mubr.bf16.gmra.mrb[168].mxu1 %v3895_v36  ;;  %v3847_v30 = vmax.f32 %v5454_v63, %v3783_v20 }
 0x471   :  { %v3786_v35 = vmul.f32 0.01, %v5457_v33  ;;  %v3848_v41 = vmax.f32 %v5455_v59, %v3784_v24 }
 0x472   :  { %v3849_v13 = vmax.f32 %v5456_v17, %v3785_v58 }
 0x473   :  { %v3850_v6 = vmax.f32 %v5457_v33, %v3786_v35  ;;  %v3676_v34 = vpop.f32.mrb[144].mxu0 }
 0x474   :  { %v5458_v62 = vadd.f32 %v3676_v34, %v7148_v29  ;;  %v3678_v23 = vpop.f32.mrb[145].mxu0  ;;  %v3897_v16 = vpack.c.bf16 %v3849_v13, %v3847_v30 }
 0x475   :  { %v5459_v8 = vadd.f32 %v3678_v23, %v7151_v52  ;;  %v3680_v32 = vpop.f32.mrb[146].mxu0  ;;  %v3898_v12 = vpack.c.bf16 %v3850_v6, %v3848_v41 }
 0x476   :  { %v3787_v14 = vmul.f32 0.01, %v5458_v62  ;;  %v5460_v15 = vadd.f32 %v3680_v32, %v7148_v29  ;;  %v3682_v44 = vpop.f32.mrb[147].mxu0 }
 0x477   :  { %v3788_v11 = vmul.f32 0.01, %v5459_v8  ;;  %v5461_v51 = vadd.f32 %v3682_v44, %v7151_v52  ;;  %4132 = vmatprep.mubr.bf16.mxu1 %v3898_v12 }
 0x478   :  { %v3789_v39 = vmul.f32 0.01, %v5460_v15  ;;  %4133 = vmatmul.mubr.bf16.gmra.mrb[172].mxu1 %v3897_v16  ;;  %v3851_v49 = vmax.f32 %v5458_v62, %v3787_v14 }
 0x479   :  { %v3790_v47 = vmul.f32 0.01, %v5461_v51  ;;  %v3852_v25 = vmax.f32 %v5459_v8, %v3788_v11 }
 0x47a   :  { %v3853_v27 = vmax.f32 %v5460_v15, %v3789_v39 }
 0x47b   :  { %v3854_v22 = vmax.f32 %v5461_v51, %v3790_v47  ;;  %v3686_v56 = vpop.f32.mrb[148].mxu0 }
 0x47c   :  { %v5462_v7 = vadd.f32 %v3686_v56, %v7148_v29  ;;  %v3688_v5 = vpop.f32.mrb[149].mxu0  ;;  %v3899_v9 = vpack.c.bf16 %v3853_v27, %v3851_v49 }
 0x47d   :  { %v5463_v61 = vadd.f32 %v3688_v5, %v7151_v52  ;;  %v3690_v55 = vpop.f32.mrb[150].mxu0  ;;  %v3900_v48 = vpack.c.bf16 %v3854_v22, %v3852_v25 }
 0x47e   :  { %v3791_v28 = vmul.f32 0.01, %v5462_v7  ;;  %v5464_v31 = vadd.f32 %v3690_v55, %v7148_v29  ;;  %v3692_v0 = vpop.f32.mrb[151].mxu0 }
 0x47f   :  { %v3792_v45 = vmul.f32 0.01, %v5463_v61  ;;  %v5465_v50 = vadd.f32 %v3692_v0, %v7151_v52  ;;  %4140 = vmatprep.mubr.bf16.mxu1 %v3900_v48 }
 0x480   :  { %v3793_v57 = vmul.f32 0.01, %v5464_v31  ;;  %4141 = vmatmul.mubr.bf16.gmra.mrb[176].mxu1 %v3899_v9  ;;  %v3855_v2 = vmax.f32 %v5462_v7, %v3791_v28 }
 0x481   :  { %v3794_v60 = vmul.f32 0.01, %v5465_v50  ;;  %v3856_v37 = vmax.f32 %v5463_v61, %v3792_v45  ;;  %v6053_v61 = vld [vmem:[#allocation11 + $0x20] sm:$0xff]  }
 0x482   :  { %v3857_v19 = vmax.f32 %v5464_v31, %v3793_v57  ;;  %5242 = vmatprep.subr.bf16.mxu1 %v6053_v61  ;;  %v6054_v57 = vld [vmem:[#allocation11 + $0x28] sm:$0xff]  }
 0x483   :  { %v3858_v21 = vmax.f32 %v5465_v50, %v3794_v60  ;;  %v3696_v42 = vpop.f32.mrb[152].mxu0  ;;  %5243 = vmatpush3.bf16.msra.mxu1 %v6053_v61 }
 0x484   :  { %v5466_v10 = vadd.f32 %v3696_v42, %v7148_v29  ;;  %v3698_v40 = vpop.f32.mrb[153].mxu0  ;;  %v3901_v54 = vpack.c.bf16 %v3857_v19, %v3855_v2  ;;  %5244 = vmatprep.subr.bf16.mxu1 %v6054_v57 }
 0x485   :  { %v5467_v53 = vadd.f32 %v3698_v40, %v7151_v52  ;;  %v3700_v43 = vpop.f32.mrb[154].mxu0  ;;  %v3902_v1 = vpack.c.bf16 %v3858_v21, %v3856_v37 }
 0x486   :  { %v3795_v18 = vmul.f32 0.01, %v5466_v10  ;;  %v5468_v4 = vadd.f32 %v3700_v43, %v7148_v29  ;;  %v3702_v63 = vpop.f32.mrb[155].mxu0 }
 0x487   :  { %v3796_v26 = vmul.f32 0.01, %v5467_v53  ;;  %v5469_v36 = vadd.f32 %v3702_v63, %v7151_v52  ;;  %4148 = vmatprep.mubr.bf16.mxu1 %v3902_v1  ;;  %5245 = vmatpush3.bf16.msra.mxu1 %v6054_v57  ;;  %v6055_v1 = vld [vmem:[#allocation11 + $0x30] sm:$0xff]  }
 0x488   :  { %v3797_v59 = vmul.f32 0.01, %v5468_v4  ;;  %4149 = vmatmul.mubr.bf16.gmra.mrb[180].mxu1 %v3901_v54  ;;  %v3859_v38 = vmax.f32 %v5466_v10, %v3795_v18  ;;  %5246 = vmatprep.subr.bf16.mxu1 %v6055_v1 }
 0x489   :  { %v3798_v3 = vmul.f32 0.01, %v5469_v36  ;;  %v3860_v17 = vmax.f32 %v5467_v53, %v3796_v26 }
 0x48a   :  { %v3861_v20 = vmax.f32 %v5468_v4, %v3797_v59 }
 0x48b   :  { %v3862_v46 = vmax.f32 %v5469_v36, %v3798_v3  ;;  %v3706_v24 = vpop.f32.mrb[156].mxu0  ;;  %5247 = vmatpush3.bf16.msra.mxu1 %v6055_v1 }
 0x48c   :  { %v5470_v33 = vadd.f32 %v3706_v24, %v7148_v29  ;;  %v3708_v58 = vpop.f32.mrb[157].mxu0  ;;  %v3903_v35 = vpack.c.bf16 %v3861_v20, %v3859_v38  ;;  %v6056_v38 = vld [vmem:[#allocation11 + $0x38] sm:$0xff]  }
 0x48d   :  { %v5471_v30 = vadd.f32 %v3708_v58, %v7151_v52  ;;  %v3710_v13 = vpop.f32.mrb[158].mxu0  ;;  %v3904_v41 = vpack.c.bf16 %v3862_v46, %v3860_v17  ;;  %5248 = vmatprep.subr.bf16.mxu1 %v6056_v38 }
 0x48e   :  { %v3799_v6 = vmul.f32 0.01, %v5470_v33  ;;  %v5472_v34 = vadd.f32 %v3710_v13, %v7148_v29  ;;  %v3712_v62 = vpop.f32.mrb[159].mxu0 }
 0x48f   :  { %v3800_v23 = vmul.f32 0.01, %v5471_v30  ;;  %v5473_v16 = vadd.f32 %v3712_v62, %v7151_v52  ;;  %4156 = vmatprep.mubr.bf16.mxu1 %v3904_v41  ;;  %5249 = vmatpush3.bf16.msra.mxu1 %v6056_v38 }
 0x490   :  { %v3801_v8 = vmul.f32 0.01, %v5472_v34  ;;  %4157 = vmatmul.mubr.bf16.gmra.mrb[184].mxu1 %v3903_v35  ;;  %v3863_v12 = vmax.f32 %v5470_v33, %v3799_v6 }
 0x491   :  { %v3802_v32 = vmul.f32 0.01, %v5473_v16  ;;  %v3864_v15 = vmax.f32 %v5471_v30, %v3800_v23 }
 0x492   :  { %v3865_v14 = vmax.f32 %v5472_v34, %v3801_v8 }
 0x493   :  { %v3866_v44 = vmax.f32 %v5473_v16, %v3802_v32  ;;  %v3716_v11 = vpop.f32.mrb[160].mxu0 }
 0x494   :  { %v5474_v51 = vadd.f32 %v3716_v11, %v7148_v29  ;;  %v3718_v39 = vpop.f32.mrb[161].mxu0  ;;  %v3905_v47 = vpack.c.bf16 %v3865_v14, %v3863_v12 }
 0x495   :  { %v5475_v49 = vadd.f32 %v3718_v39, %v7151_v52  ;;  %v3720_v27 = vpop.f32.mrb[162].mxu0  ;;  %v3906_v25 = vpack.c.bf16 %v3866_v44, %v3864_v15 }
 0x496   :  { %v3803_v22 = vmul.f32 0.01, %v5474_v51  ;;  %v5476_v56 = vadd.f32 %v3720_v27, %v7148_v29  ;;  %v3722_v7 = vpop.f32.mrb[163].mxu0 }
 0x497   :  { %v3804_v5 = vmul.f32 0.01, %v5475_v49  ;;  %v5477_v9 = vadd.f32 %v3722_v7, %v7151_v52  ;;  %4164 = vmatprep.mubr.bf16.mxu1 %v3906_v25 }
 0x498   :  { %v3805_v55 = vmul.f32 0.01, %v5476_v56  ;;  %4165 = vmatmul.mubr.bf16.gmra.mrb[188].mxu1 %v3905_v47  ;;  %v3867_v28 = vmax.f32 %v5474_v51, %v3803_v22 }
 0x499   :  { %v3806_v48 = vmul.f32 0.01, %v5477_v9  ;;  %v3868_v0 = vmax.f32 %v5475_v49, %v3804_v5 }
 0x49a   :  { %v3869_v31 = vmax.f32 %v5476_v56, %v3805_v55 }
 0x49b   :  { %v3870_v45 = vmax.f32 %v5477_v9, %v3806_v48  ;;  %v3726_v50 = vpop.f32.mrb[164].mxu0 }
 0x49c   :  { %v5478_v60 = vadd.f32 %v3726_v50, %v7148_v29  ;;  %v3728_v2 = vpop.f32.mrb[165].mxu0  ;;  %v3907_v19 = vpack.c.bf16 %v3869_v31, %v3867_v28 }
 0x49d   :  { %v5479_v37 = vadd.f32 %v3728_v2, %v7151_v52  ;;  %v3730_v21 = vpop.f32.mrb[166].mxu0  ;;  %v3908_v42 = vpack.c.bf16 %v3870_v45, %v3868_v0  ;;  %v7217_v0 = vld [vmem:[#allocation13 + $0x3] ss:$0 sm:$0xff] }
 0x49e   :  { %v3807_v10 = vmul.f32 0.01, %v5478_v60  ;;  %v5480_v40 = vadd.f32 %v3730_v21, %v7148_v29  ;;  %v3732_v54 = vpop.f32.mrb[167].mxu0 }
 0x49f   :  { %v3808_v53 = vmul.f32 0.01, %v5479_v37  ;;  %v5481_v43 = vadd.f32 %v3732_v54, %v7151_v52  ;;  %4172 = vmatprep.mubr.bf16.mxu1 %v3908_v42 }
 0x4a0   :  { %v3809_v18 = vmul.f32 0.01, %v5480_v40  ;;  %4173 = vmatmul.mubr.bf16.gmra.mrb[192].mxu1 %v3907_v19  ;;  %v3871_v63 = vmax.f32 %v5478_v60, %v3807_v10 }
 0x4a1   :  { %v3810_v4 = vmul.f32 0.01, %v5481_v43  ;;  %v3872_v36 = vmax.f32 %v5479_v37, %v3808_v53 }
 0x4a2   :  { %v3873_v26 = vmax.f32 %v5480_v40, %v3809_v18 }
 0x4a3   :  { %v3874_v59 = vmax.f32 %v5481_v43, %v3810_v4  ;;  %v3736_v3 = vpop.f32.mrb[168].mxu0 }
 0x4a4   :  { %v5482_v20 = vadd.f32 %v3736_v3, %v7148_v29  ;;  %v3738_v17 = vpop.f32.mrb[169].mxu0  ;;  %v3909_v46 = vpack.c.bf16 %v3873_v26, %v3871_v63 }
 0x4a5   :  { %v5483_v24 = vadd.f32 %v3738_v17, %v7151_v52  ;;  %v3740_v33 = vpop.f32.mrb[170].mxu0  ;;  %v3910_v58 = vpack.c.bf16 %v3874_v59, %v3872_v36 }
 0x4a6   :  { %v3811_v35 = vmul.f32 0.01, %v5482_v20  ;;  %v5484_v30 = vadd.f32 %v3740_v33, %v7148_v29  ;;  %v3742_v13 = vpop.f32.mrb[171].mxu0 }
 0x4a7   :  { %v3812_v41 = vmul.f32 0.01, %v5483_v24  ;;  %v5485_v6 = vadd.f32 %v3742_v13, %v7151_v52  ;;  %4180 = vmatprep.mubr.bf16.mxu1 %v3910_v58 }
 0x4a8   :  { %v3813_v34 = vmul.f32 0.01, %v5484_v30  ;;  %4181 = vmatmul.mubr.bf16.gmra.mrb[196].mxu1 %v3909_v46  ;;  %v3875_v23 = vmax.f32 %v5482_v20, %v3811_v35 }
 0x4a9   :  { %v3814_v62 = vmul.f32 0.01, %v5485_v6  ;;  %v3876_v8 = vmax.f32 %v5483_v24, %v3812_v41 }
 0x4aa   :  { %v3877_v16 = vmax.f32 %v5484_v30, %v3813_v34 }
 0x4ab   :  { %v3878_v32 = vmax.f32 %v5485_v6, %v3814_v62  ;;  %v3746_v12 = vpop.f32.mrb[172].mxu0 }
 0x4ac   :  { %v5486_v14 = vadd.f32 %v3746_v12, %v7148_v29  ;;  %v3748_v15 = vpop.f32.mrb[173].mxu0  ;;  %v3911_v44 = vpack.c.bf16 %v3877_v16, %v3875_v23 }
 0x4ad   :  { %v5487_v11 = vadd.f32 %v3748_v15, %v7151_v52  ;;  %v3750_v51 = vpop.f32.mrb[174].mxu0  ;;  %v3912_v39 = vpack.c.bf16 %v3878_v32, %v3876_v8 }
 0x4ae   :  { %v3815_v47 = vmul.f32 0.01, %v5486_v14  ;;  %v5488_v49 = vadd.f32 %v3750_v51, %v7148_v29  ;;  %v3752_v27 = vpop.f32.mrb[175].mxu0 }
 0x4af   :  { %v3816_v25 = vmul.f32 0.01, %v5487_v11  ;;  %v5489_v22 = vadd.f32 %v3752_v27, %v7151_v52  ;;  %4188 = vmatprep.mubr.bf16.mxu1 %v3912_v39 }
 0x4b0   :  { %v3817_v56 = vmul.f32 0.01, %v5488_v49  ;;  %4189 = vmatmul.mubr.bf16.gmra.mrb[200].mxu1 %v3911_v44  ;;  %v3879_v5 = vmax.f32 %v5486_v14, %v3815_v47 }
 0x4b1   :  { %v3818_v7 = vmul.f32 0.01, %v5489_v22  ;;  %v3880_v61 = vmax.f32 %v5487_v11, %v3816_v25 }
 0x4b2   :  { %v3881_v9 = vmax.f32 %v5488_v49, %v3817_v56 }
 0x4b3   :  { %v3882_v55 = vmax.f32 %v5489_v22, %v3818_v7 }
 0x4b4   :  { %v3913_v48 = vpack.c.bf16 %v3881_v9, %v3879_v5 }
 0x4b5   :  { %v3914_v28 = vpack.c.bf16 %v3882_v55, %v3880_v61 }
 0x4b7   :  { %4196 = vmatprep.mubr.bf16.mxu1 %v3914_v28 }
 0x4b8   :  { %4197 = vmatmul.mubr.bf16.gmra.mrb[204].mxu1 %v3913_v48 }
 0x513   :  { %v5114_v31 = vpop.f32.mrb[144].mxu1 }
 0x514   :  { %v5115_v29 = vpop.f32.mrb[145].mxu1 }
 0x515   :  { %v5116_v45 = vadd.f32 %v5115_v29, %v5114_v31  ;;  %v5117_v50 = vpop.f32.mrb[146].mxu1 }
 0x516   :  { %v5118_v57 = vpop.f32.mrb[147].mxu1 }
 0x517   :  { %v4079_v52 = vadd.f32 %v5116_v45, %v7217_v0  ;;  %v5119_v60 = vadd.f32 %v5118_v57, %v5117_v50 }
 0x519   :  { %v4205_v2 = vmul.f32 0.01, %v4079_v52  ;;  %v4082_v19 = vadd.f32 %v5119_v60, %v7217_v0 }
 0x51b   :  { %v4206_v37 = vmul.f32 0.01, %v4082_v19  ;;  %v5120_v21 = vpop.f32.mrb[148].mxu1  ;;  %v4237_v10 = vmax.f32 %v4079_v52, %v4205_v2 }
 0x51c   :  { %v5121_v42 = vpop.f32.mrb[149].mxu1 }
 0x51d   :  { %v4238_v40 = vmax.f32 %v4082_v19, %v4206_v37  ;;  %v5122_v54 = vadd.f32 %v5121_v42, %v5120_v21  ;;  %v5123_v53 = vpop.f32.mrb[150].mxu1 }
 0x51e   :  { %v5124_v43 = vpop.f32.mrb[151].mxu1 }
 0x51f   :  { %v4087_v1 = vadd.f32 %v5122_v54, %v7217_v0  ;;  %v5125_v18 = vadd.f32 %v5124_v43, %v5123_v53  ;;  %v4269_v4 = vpack.c.bf16 %v4238_v40, %v4237_v10 }
 0x521   :  { %v4207_v63 = vmul.f32 0.01, %v4087_v1  ;;  %v4090_v26 = vadd.f32 %v5125_v18, %v7217_v0  ;;  %5250 = vmatprep.mubr.bf16.mxu1 %v4269_v4 }
 0x523   :  { %v4208_v36 = vmul.f32 0.01, %v4090_v26  ;;  %v5126_v59 = vpop.f32.mrb[152].mxu1  ;;  %v4239_v38 = vmax.f32 %v4087_v1, %v4207_v63 }
 0x524   :  { %v5127_v3 = vpop.f32.mrb[153].mxu1 }
 0x525   :  { %v4240_v20 = vmax.f32 %v4090_v26, %v4208_v36  ;;  %v5128_v17 = vadd.f32 %v5127_v3, %v5126_v59  ;;  %v5129_v46 = vpop.f32.mrb[154].mxu1 }
 0x526   :  { %v5130_v24 = vpop.f32.mrb[155].mxu1 }
 0x527   :  { %v4270_v33 = vpack.c.bf16 %v4240_v20, %v4239_v38  ;;  %v4095_v58 = vadd.f32 %v5128_v17, %v7217_v0  ;;  %v5131_v35 = vadd.f32 %v5130_v24, %v5129_v46 }
 0x529   :  { %v4209_v30 = vmul.f32 0.01, %v4095_v58  ;;  %v4098_v13 = vadd.f32 %v5131_v35, %v7217_v0  ;;  %5251 = vmatmul.mubr.bf16.vlgmr.msra.gmra.mrb[208].mxu1 %v4270_v33 }
 0x52b   :  { %v4210_v41 = vmul.f32 0.01, %v4098_v13  ;;  %v5132_v6 = vpop.f32.mrb[156].mxu1  ;;  %v4241_v62 = vmax.f32 %v4095_v58, %v4209_v30 }
 0x52c   :  { %v5133_v34 = vpop.f32.mrb[157].mxu1 }
 0x52d   :  { %v4242_v23 = vmax.f32 %v4098_v13, %v4210_v41  ;;  %v5134_v16 = vadd.f32 %v5133_v34, %v5132_v6  ;;  %v5135_v8 = vpop.f32.mrb[158].mxu1 }
 0x52e   :  { %v5136_v32 = vpop.f32.mrb[159].mxu1 }
 0x52f   :  { %v4103_v12 = vadd.f32 %v5134_v16, %v7217_v0  ;;  %v5137_v14 = vadd.f32 %v5136_v32, %v5135_v8  ;;  %v4271_v15 = vpack.c.bf16 %v4242_v23, %v4241_v62 }
 0x531   :  { %v4211_v44 = vmul.f32 0.01, %v4103_v12  ;;  %v4106_v11 = vadd.f32 %v5137_v14, %v7217_v0  ;;  %5254 = vmatprep.mubr.bf16.mxu1 %v4271_v15 }
 0x533   :  { %v4212_v51 = vmul.f32 0.01, %v4106_v11  ;;  %v5138_v39 = vpop.f32.mrb[160].mxu1  ;;  %v4243_v49 = vmax.f32 %v4103_v12, %v4211_v44 }
 0x534   :  { %v5139_v47 = vpop.f32.mrb[161].mxu1 }
 0x535   :  { %v4244_v27 = vmax.f32 %v4106_v11, %v4212_v51  ;;  %v5140_v25 = vadd.f32 %v5139_v47, %v5138_v39  ;;  %v5141_v22 = vpop.f32.mrb[162].mxu1 }
 0x536   :  { %v5142_v56 = vpop.f32.mrb[163].mxu1 }
 0x537   :  { %v4111_v7 = vadd.f32 %v5140_v25, %v7217_v0  ;;  %v5143_v5 = vadd.f32 %v5142_v56, %v5141_v22  ;;  %v4272_v9 = vpack.c.bf16 %v4244_v27, %v4243_v49 }
 0x539   :  { %v4213_v61 = vmul.f32 0.01, %v4111_v7  ;;  %v4114_v55 = vadd.f32 %v5143_v5, %v7217_v0  ;;  %5255 = vmatmul.mubr.bf16.gmra.mrb[212].mxu1 %v4272_v9 }
 0x53b   :  { %v4214_v48 = vmul.f32 0.01, %v4114_v55  ;;  %v5144_v28 = vpop.f32.mrb[164].mxu1  ;;  %v4245_v29 = vmax.f32 %v4111_v7, %v4213_v61 }
 0x53c   :  { %v5145_v31 = vpop.f32.mrb[165].mxu1 }
 0x53d   :  { %v4246_v45 = vmax.f32 %v4114_v55, %v4214_v48  ;;  %v5146_v50 = vadd.f32 %v5145_v31, %v5144_v28  ;;  %v5147_v57 = vpop.f32.mrb[166].mxu1 }
 0x53e   :  { %v5148_v52 = vpop.f32.mrb[167].mxu1 }
 0x53f   :  { %v4119_v60 = vadd.f32 %v5146_v50, %v7217_v0  ;;  %v5149_v2 = vadd.f32 %v5148_v52, %v5147_v57  ;;  %v4273_v19 = vpack.c.bf16 %v4246_v45, %v4245_v29 }
 0x541   :  { %v4215_v37 = vmul.f32 0.01, %v4119_v60  ;;  %v4122_v21 = vadd.f32 %v5149_v2, %v7217_v0  ;;  %5258 = vmatprep.mubr.bf16.mxu1 %v4273_v19 }
 0x543   :  { %v4216_v42 = vmul.f32 0.01, %v4122_v21  ;;  %v5150_v10 = vpop.f32.mrb[168].mxu1  ;;  %v4247_v54 = vmax.f32 %v4119_v60, %v4215_v37 }
 0x544   :  { %v5151_v40 = vpop.f32.mrb[169].mxu1 }
 0x545   :  { %v4248_v53 = vmax.f32 %v4122_v21, %v4216_v42  ;;  %v5152_v43 = vadd.f32 %v5151_v40, %v5150_v10  ;;  %v5153_v1 = vpop.f32.mrb[170].mxu1 }
 0x546   :  { %v5154_v18 = vpop.f32.mrb[171].mxu1 }
 0x547   :  { %v4127_v4 = vadd.f32 %v5152_v43, %v7217_v0  ;;  %v5155_v63 = vadd.f32 %v5154_v18, %v5153_v1  ;;  %v4274_v26 = vpack.c.bf16 %v4248_v53, %v4247_v54 }
 0x549   :  { %v4217_v36 = vmul.f32 0.01, %v4127_v4  ;;  %v4130_v59 = vadd.f32 %v5155_v63, %v7217_v0  ;;  %5259 = vmatmul.mubr.bf16.gmra.mrb[216].mxu1 %v4274_v26 }
 0x54b   :  { %v4218_v3 = vmul.f32 0.01, %v4130_v59  ;;  %v5156_v38 = vpop.f32.mrb[172].mxu1  ;;  %v4249_v17 = vmax.f32 %v4127_v4, %v4217_v36 }
 0x54c   :  { %v5157_v20 = vpop.f32.mrb[173].mxu1 }
 0x54d   :  { %v4250_v46 = vmax.f32 %v4130_v59, %v4218_v3  ;;  %v5158_v24 = vadd.f32 %v5157_v20, %v5156_v38  ;;  %v5159_v33 = vpop.f32.mrb[174].mxu1 }
 0x54e   :  { %v5160_v58 = vpop.f32.mrb[175].mxu1 }
 0x54f   :  { %v4135_v35 = vadd.f32 %v5158_v24, %v7217_v0  ;;  %v5161_v30 = vadd.f32 %v5160_v58, %v5159_v33  ;;  %v4275_v13 = vpack.c.bf16 %v4250_v46, %v4249_v17 }
 0x551   :  { %v4219_v41 = vmul.f32 0.01, %v4135_v35  ;;  %v4138_v6 = vadd.f32 %v5161_v30, %v7217_v0  ;;  %5262 = vmatprep.mubr.bf16.mxu1 %v4275_v13 }
 0x553   :  { %v4220_v34 = vmul.f32 0.01, %v4138_v6  ;;  %v5162_v62 = vpop.f32.mrb[176].mxu1  ;;  %v4251_v16 = vmax.f32 %v4135_v35, %v4219_v41 }
 0x554   :  { %v5163_v23 = vpop.f32.mrb[177].mxu1 }
 0x555   :  { %v4252_v8 = vmax.f32 %v4138_v6, %v4220_v34  ;;  %v5164_v32 = vadd.f32 %v5163_v23, %v5162_v62  ;;  %v5165_v12 = vpop.f32.mrb[178].mxu1 }
 0x556   :  { %v5166_v14 = vpop.f32.mrb[179].mxu1 }
 0x557   :  { %v4143_v15 = vadd.f32 %v5164_v32, %v7217_v0  ;;  %v5167_v44 = vadd.f32 %v5166_v14, %v5165_v12  ;;  %v4276_v11 = vpack.c.bf16 %v4252_v8, %v4251_v16 }
 0x559   :  { %v4221_v51 = vmul.f32 0.01, %v4143_v15  ;;  %v4146_v39 = vadd.f32 %v5167_v44, %v7217_v0  ;;  %5263 = vmatmul.mubr.bf16.gmra.mrb[220].mxu1 %v4276_v11 }
 0x55b   :  { %v4222_v47 = vmul.f32 0.01, %v4146_v39  ;;  %v5168_v49 = vpop.f32.mrb[180].mxu1  ;;  %v4253_v25 = vmax.f32 %v4143_v15, %v4221_v51 }
 0x55c   :  { %v5169_v27 = vpop.f32.mrb[181].mxu1 }
 0x55d   :  { %v4254_v22 = vmax.f32 %v4146_v39, %v4222_v47  ;;  %v5170_v56 = vadd.f32 %v5169_v27, %v5168_v49  ;;  %v5171_v7 = vpop.f32.mrb[182].mxu1 }
 0x55e   :  { %v5172_v5 = vpop.f32.mrb[183].mxu1 }
 0x55f   :  { %v4151_v9 = vadd.f32 %v5170_v56, %v7217_v0  ;;  %v5173_v61 = vadd.f32 %v5172_v5, %v5171_v7  ;;  %v4277_v55 = vpack.c.bf16 %v4254_v22, %v4253_v25 }
 0x561   :  { %v4223_v48 = vmul.f32 0.01, %v4151_v9  ;;  %v4154_v28 = vadd.f32 %v5173_v61, %v7217_v0  ;;  %5266 = vmatprep.mubr.bf16.mxu1 %v4277_v55 }
 0x563   :  { %v4224_v31 = vmul.f32 0.01, %v4154_v28  ;;  %v5174_v29 = vpop.f32.mrb[184].mxu1  ;;  %v4255_v50 = vmax.f32 %v4151_v9, %v4223_v48 }
 0x564   :  { %v5175_v45 = vpop.f32.mrb[185].mxu1 }
 0x565   :  { %v4256_v57 = vmax.f32 %v4154_v28, %v4224_v31  ;;  %v5176_v52 = vadd.f32 %v5175_v45, %v5174_v29  ;;  %v5177_v60 = vpop.f32.mrb[186].mxu1 }
 0x566   :  { %v5178_v2 = vpop.f32.mrb[187].mxu1 }
 0x567   :  { %v4159_v19 = vadd.f32 %v5176_v52, %v7217_v0  ;;  %v5179_v37 = vadd.f32 %v5178_v2, %v5177_v60  ;;  %v4278_v21 = vpack.c.bf16 %v4256_v57, %v4255_v50 }
 0x569   :  { %v4225_v42 = vmul.f32 0.01, %v4159_v19  ;;  %v4162_v10 = vadd.f32 %v5179_v37, %v7217_v0  ;;  %5267 = vmatmul.mubr.bf16.gmra.mrb[224].mxu1 %v4278_v21 }
 0x56b   :  { %v4226_v40 = vmul.f32 0.01, %v4162_v10  ;;  %v5180_v54 = vpop.f32.mrb[188].mxu1  ;;  %v4257_v43 = vmax.f32 %v4159_v19, %v4225_v42 }
 0x56c   :  { %v5181_v53 = vpop.f32.mrb[189].mxu1 }
 0x56d   :  { %v4258_v1 = vmax.f32 %v4162_v10, %v4226_v40  ;;  %v5182_v18 = vadd.f32 %v5181_v53, %v5180_v54  ;;  %v5183_v4 = vpop.f32.mrb[190].mxu1 }
 0x56e   :  { %v5184_v63 = vpop.f32.mrb[191].mxu1 }
 0x56f   :  { %v4167_v26 = vadd.f32 %v5182_v18, %v7217_v0  ;;  %v5185_v36 = vadd.f32 %v5184_v63, %v5183_v4  ;;  %v4279_v59 = vpack.c.bf16 %v4258_v1, %v4257_v43  ;;  %v7251_v63 = vld [vmem:[#allocation13 + $0x4] ss:$0 sm:$0xff] }
 0x571   :  { %v4227_v3 = vmul.f32 0.01, %v4167_v26  ;;  %v4170_v38 = vadd.f32 %v5185_v36, %v7217_v0  ;;  %5270 = vmatprep.mubr.bf16.mxu1 %v4279_v59 }
 0x573   :  { %v4228_v20 = vmul.f32 0.01, %v4170_v38  ;;  %v5186_v17 = vpop.f32.mrb[192].mxu1  ;;  %v4259_v24 = vmax.f32 %v4167_v26, %v4227_v3 }
 0x574   :  { %v5187_v46 = vpop.f32.mrb[193].mxu1 }
 0x575   :  { %v4260_v33 = vmax.f32 %v4170_v38, %v4228_v20  ;;  %v5188_v58 = vadd.f32 %v5187_v46, %v5186_v17  ;;  %v5189_v35 = vpop.f32.mrb[194].mxu1 }
 0x576   :  { %v5190_v30 = vpop.f32.mrb[195].mxu1 }
 0x577   :  { %v4175_v13 = vadd.f32 %v5188_v58, %v7217_v0  ;;  %v5191_v41 = vadd.f32 %v5190_v30, %v5189_v35  ;;  %v4280_v6 = vpack.c.bf16 %v4260_v33, %v4259_v24 }
 0x579   :  { %v4229_v34 = vmul.f32 0.01, %v4175_v13  ;;  %v4178_v62 = vadd.f32 %v5191_v41, %v7217_v0  ;;  %5271 = vmatmul.mubr.bf16.gmra.mrb[228].mxu1 %v4280_v6 }
 0x57b   :  { %v4230_v23 = vmul.f32 0.01, %v4178_v62  ;;  %v5192_v16 = vpop.f32.mrb[196].mxu1  ;;  %v4261_v32 = vmax.f32 %v4175_v13, %v4229_v34 }
 0x57c   :  { %v5193_v8 = vpop.f32.mrb[197].mxu1 }
 0x57d   :  { %v4262_v12 = vmax.f32 %v4178_v62, %v4230_v23  ;;  %v5194_v14 = vadd.f32 %v5193_v8, %v5192_v16  ;;  %v5195_v15 = vpop.f32.mrb[198].mxu1 }
 0x57e   :  { %v5196_v44 = vpop.f32.mrb[199].mxu1 }
 0x57f   :  { %v4183_v11 = vadd.f32 %v5194_v14, %v7217_v0  ;;  %v5197_v51 = vadd.f32 %v5196_v44, %v5195_v15  ;;  %v4281_v39 = vpack.c.bf16 %v4262_v12, %v4261_v32 }
 0x581   :  { %v4231_v47 = vmul.f32 0.01, %v4183_v11  ;;  %v4186_v49 = vadd.f32 %v5197_v51, %v7217_v0  ;;  %5274 = vmatprep.mubr.bf16.mxu1 %v4281_v39 }
 0x583   :  { %v4232_v27 = vmul.f32 0.01, %v4186_v49  ;;  %v5198_v25 = vpop.f32.mrb[200].mxu1  ;;  %v4263_v56 = vmax.f32 %v4183_v11, %v4231_v47 }
 0x584   :  { %v5199_v22 = vpop.f32.mrb[201].mxu1 }
 0x585   :  { %v4264_v7 = vmax.f32 %v4186_v49, %v4232_v27  ;;  %v5200_v5 = vadd.f32 %v5199_v22, %v5198_v25  ;;  %v5201_v9 = vpop.f32.mrb[202].mxu1 }
 0x586   :  { %v5202_v61 = vpop.f32.mrb[203].mxu1 }
 0x587   :  { %v4191_v55 = vadd.f32 %v5200_v5, %v7217_v0  ;;  %v5203_v48 = vadd.f32 %v5202_v61, %v5201_v9  ;;  %v4282_v28 = vpack.c.bf16 %v4264_v7, %v4263_v56 }
 0x589   :  { %v4233_v31 = vmul.f32 0.01, %v4191_v55  ;;  %v4194_v29 = vadd.f32 %v5203_v48, %v7217_v0  ;;  %5275 = vmatmul.mubr.bf16.gmra.mrb[232].mxu1 %v4282_v28 }
 0x58b   :  { %v4234_v45 = vmul.f32 0.01, %v4194_v29  ;;  %v5204_v50 = vpop.f32.mrb[204].mxu1  ;;  %v4265_v52 = vmax.f32 %v4191_v55, %v4233_v31 }
 0x58c   :  { %v5205_v57 = vpop.f32.mrb[205].mxu1 }
 0x58d   :  { %v4266_v60 = vmax.f32 %v4194_v29, %v4234_v45  ;;  %v5206_v2 = vadd.f32 %v5205_v57, %v5204_v50  ;;  %v5207_v19 = vpop.f32.mrb[206].mxu1 }
 0x58e   :  { %v5208_v37 = vpop.f32.mrb[207].mxu1 }
 0x58f   :  { %v4199_v21 = vadd.f32 %v5206_v2, %v7217_v0  ;;  %v5209_v42 = vadd.f32 %v5208_v37, %v5207_v19  ;;  %v4283_v10 = vpack.c.bf16 %v4266_v60, %v4265_v52 }
 0x591   :  { %v4235_v40 = vmul.f32 0.01, %v4199_v21  ;;  %v4202_v54 = vadd.f32 %v5209_v42, %v7217_v0  ;;  %5278 = vmatprep.mubr.bf16.mxu1 %v4283_v10 }
 0x593   :  { %v4236_v53 = vmul.f32 0.01, %v4202_v54  ;;  %v4267_v43 = vmax.f32 %v4199_v21, %v4235_v40 }
 0x595   :  { %v4268_v1 = vmax.f32 %v4202_v54, %v4236_v53 }
 0x597   :  { %v4284_v18 = vpack.c.bf16 %v4268_v1, %v4267_v43 }
 0x599   :  { %5279 = vmatmul.mubr.bf16.gmra.mrb[236].mxu1 %v4284_v18 }
 0x5fc   :  { %v5252_v4 = vpop.f32.mrb[208].mxu1 }
 0x5fd   :  { %v4384_v26 = vpop.f32.mrb[209].mxu1  ;;  %v4393_v59 = vadd.f32 %v5252_v4, %v7251_v63 }
 0x5fe   :  { %v5253_v36 = vpop.f32.mrb[210].mxu1  ;;  %v4385_v20 = vadd.f32 %v4384_v26, %v7251_v63 }
 0x5ff   :  { %v4396_v3 = vadd.f32 %v5253_v36, %v7251_v63  ;;  %v4387_v38 = vpop.f32.mrb[211].mxu1 }
 0x600   :  { %v4388_v0 = vadd.f32 %v4387_v38, %v7251_v63 }
 0x601   :  { %v5011_v17 = vpack.c.bf16 %v4396_v3, %v4393_v59 }
 0x602   :  { %v5006_v46 = vpack.c.bf16 %v4388_v0, %v4385_v20 }
 0x603   :  { %5083 = vst [vmem:[#allocation14 + $0x8] sm:$0xff] %v5011_v17  }
 0x604   :  { %5007 = vst [vmem:[#allocation14] sm:$0xff] %v5006_v46  }
 0x60c   :  { %v5256_v24 = vpop.f32.mrb[212].mxu1 }
 0x60d   :  { %v4400_v33 = vpop.f32.mrb[213].mxu1  ;;  %v4409_v35 = vadd.f32 %v5256_v24, %v7251_v63 }
 0x60e   :  { %v5257_v58 = vpop.f32.mrb[214].mxu1  ;;  %v4401_v41 = vadd.f32 %v4400_v33, %v7251_v63 }
 0x60f   :  { %v4412_v30 = vadd.f32 %v5257_v58, %v7251_v63  ;;  %v4403_v13 = vpop.f32.mrb[215].mxu1 }
 0x610   :  { %v4404_v6 = vadd.f32 %v4403_v13, %v7251_v63 }
 0x611   :  { %v5021_v34 = vpack.c.bf16 %v4412_v30, %v4409_v35 }
 0x612   :  { %v5016_v62 = vpack.c.bf16 %v4404_v6, %v4401_v41 }
 0x613   :  { %5085 = vst [vmem:[#allocation14 + $0x18] sm:$0xff] %v5021_v34  }
 0x614   :  { %5084 = vst [vmem:[#allocation14 + $0x10] sm:$0xff] %v5016_v62  }
 0x61c   :  { %v5260_v23 = vpop.f32.mrb[216].mxu1 }
 0x61d   :  { %v4416_v16 = vpop.f32.mrb[217].mxu1  ;;  %v4425_v32 = vadd.f32 %v5260_v23, %v7251_v63 }
 0x61e   :  { %v5261_v8 = vpop.f32.mrb[218].mxu1  ;;  %v4417_v15 = vadd.f32 %v4416_v16, %v7251_v63 }
 0x61f   :  { %v4428_v12 = vadd.f32 %v5261_v8, %v7251_v63  ;;  %v4419_v14 = vpop.f32.mrb[219].mxu1 }
 0x620   :  { %v4420_v44 = vadd.f32 %v4419_v14, %v7251_v63 }
 0x621   :  { %v5031_v11 = vpack.c.bf16 %v4428_v12, %v4425_v32 }
 0x622   :  { %v5026_v51 = vpack.c.bf16 %v4420_v44, %v4417_v15 }
 0x623   :  { %5087 = vst [vmem:[#allocation14 + $0x28] sm:$0xff] %v5031_v11  }
 0x624   :  { %5086 = vst [vmem:[#allocation14 + $0x20] sm:$0xff] %v5026_v51  }
 0x62c   :  { %v5264_v39 = vpop.f32.mrb[220].mxu1 }
 0x62d   :  { %v4432_v47 = vpop.f32.mrb[221].mxu1  ;;  %v4441_v27 = vadd.f32 %v5264_v39, %v7251_v63 }
 0x62e   :  { %v5265_v49 = vpop.f32.mrb[222].mxu1  ;;  %v4433_v56 = vadd.f32 %v4432_v47, %v7251_v63 }
 0x62f   :  { %v4444_v25 = vadd.f32 %v5265_v49, %v7251_v63  ;;  %v4435_v22 = vpop.f32.mrb[223].mxu1 }
 0x630   :  { %v4436_v7 = vadd.f32 %v4435_v22, %v7251_v63 }
 0x631   :  { %v5041_v5 = vpack.c.bf16 %v4444_v25, %v4441_v27 }
 0x632   :  { %v5036_v9 = vpack.c.bf16 %v4436_v7, %v4433_v56 }
 0x633   :  { %5089 = vst [vmem:[#allocation14 + $0x38] sm:$0xff] %v5041_v5  }
 0x634   :  { %5088 = vst [vmem:[#allocation14 + $0x30] sm:$0xff] %v5036_v9  }
 0x63c   :  { %v5268_v61 = vpop.f32.mrb[224].mxu1 }
 0x63d   :  { %v4448_v55 = vpop.f32.mrb[225].mxu1  ;;  %v4457_v28 = vadd.f32 %v5268_v61, %v7251_v63 }
 0x63e   :  { %v5269_v48 = vpop.f32.mrb[226].mxu1  ;;  %v4449_v45 = vadd.f32 %v4448_v55, %v7251_v63 }
 0x63f   :  { %v4460_v31 = vadd.f32 %v5269_v48, %v7251_v63  ;;  %v4451_v29 = vpop.f32.mrb[227].mxu1 }
 0x640   :  { %v4452_v50 = vadd.f32 %v4451_v29, %v7251_v63 }
 0x641   :  { %v5051_v57 = vpack.c.bf16 %v4460_v31, %v4457_v28 }
 0x642   :  { %v5046_v52 = vpack.c.bf16 %v4452_v50, %v4449_v45 }
 0x643   :  { %5091 = vst [vmem:[#allocation14 + $0x48] sm:$0xff] %v5051_v57  }
 0x644   :  { %5090 = vst [vmem:[#allocation14 + $0x40] sm:$0xff] %v5046_v52  }
 0x64c   :  { %v5272_v60 = vpop.f32.mrb[228].mxu1 }
 0x64d   :  { %v4464_v2 = vpop.f32.mrb[229].mxu1  ;;  %v4473_v37 = vadd.f32 %v5272_v60, %v7251_v63 }
 0x64e   :  { %v5273_v19 = vpop.f32.mrb[230].mxu1  ;;  %v4465_v10 = vadd.f32 %v4464_v2, %v7251_v63 }
 0x64f   :  { %v4476_v21 = vadd.f32 %v5273_v19, %v7251_v63  ;;  %v4467_v42 = vpop.f32.mrb[231].mxu1 }
 0x650   :  { %v4468_v40 = vadd.f32 %v4467_v42, %v7251_v63 }
 0x651   :  { %v5061_v54 = vpack.c.bf16 %v4476_v21, %v4473_v37 }
 0x652   :  { %v5056_v53 = vpack.c.bf16 %v4468_v40, %v4465_v10 }
 0x653   :  { %5093 = vst [vmem:[#allocation14 + $0x58] sm:$0xff] %v5061_v54  }
 0x654   :  { %5092 = vst [vmem:[#allocation14 + $0x50] sm:$0xff] %v5056_v53  }
 0x65c   :  { %v5276_v43 = vpop.f32.mrb[232].mxu1 }
 0x65d   :  { %v4480_v1 = vpop.f32.mrb[233].mxu1  ;;  %v4489_v4 = vadd.f32 %v5276_v43, %v7251_v63 }
 0x65e   :  { %v5277_v18 = vpop.f32.mrb[234].mxu1  ;;  %v4481_v59 = vadd.f32 %v4480_v1, %v7251_v63 }
 0x65f   :  { %v4492_v26 = vadd.f32 %v5277_v18, %v7251_v63  ;;  %v4483_v36 = vpop.f32.mrb[235].mxu1 }
 0x660   :  { %v4484_v3 = vadd.f32 %v4483_v36, %v7251_v63 }
 0x661   :  { %v5071_v38 = vpack.c.bf16 %v4492_v26, %v4489_v4 }
 0x662   :  { %v5066_v20 = vpack.c.bf16 %v4484_v3, %v4481_v59 }
 0x663   :  { %5095 = vst [vmem:[#allocation14 + $0x68] sm:$0xff] %v5071_v38  }
 0x664   :  { %5094 = vst [vmem:[#allocation14 + $0x60] sm:$0xff] %v5066_v20  }
 0x66c   :  { %v5280_v0 = vpop.f32.mrb[236].mxu1 }
 0x66d   :  { %v4496_v17 = vpop.f32.mrb[237].mxu1  ;;  %v4505_v24 = vadd.f32 %v5280_v0, %v7251_v63 }
 0x66e   :  { %v5281_v46 = vpop.f32.mrb[238].mxu1  ;;  %v4497_v35 = vadd.f32 %v4496_v17, %v7251_v63 }
 0x66f   :  { %v4508_v33 = vadd.f32 %v5281_v46, %v7251_v63  ;;  %v4499_v58 = vpop.f32.mrb[239].mxu1 }
 0x670   :  { %v4500_v30 = vadd.f32 %v4499_v58, %v7251_v63 }
 0x671   :  { %v5081_v13 = vpack.c.bf16 %v4508_v33, %v4505_v24 }
 0x672   :  { %v5076_v41 = vpack.c.bf16 %v4500_v30, %v4497_v35 }
 0x673   :  { %5097 = vst [vmem:[#allocation14 + $0x78] sm:$0xff] %v5081_v13  }
 0x674   :  { %5096 = vst [vmem:[#allocation14 + $0x70] sm:$0xff] %v5076_v41  }
 0x675   :  { %6222 = shalt.err (!%p6219_p4)
}
 0x676   :  { %s6223_s25 = scalar_lea.hbm %s7307_s7, 2048 }
 0x677   :  { %p6224_p5 = scmp.ne.s32.totalorder %s7307_s7, %s6223_s25  ;;  %p6227_p6 = scmp.lt.u32.totalorder %s6223_s25, %s7307_s7 }
 0x679   :  { %p6229_p7 = pnand %p6227_p6, %p6224_p5 }
 0x67b   :  { %6232 = shalt.err (!%p6229_p7)
}
 0x67c   :  { %4682 = dma.vmem_to_hbm [thread:$0]  %s4677_s22, 2048, %s7307_s7, [#allocation4], %s6251_s16, %s6251_s16, %s6252_s19  }
 0x67d   :  { %6241 = dma.done.wait [#allocation4], 2048  }
 0x67e   :  { %6242 = vsyncadd [#allocation4], 4294965248 }
 0x67f   :  { %4686 = vsyncpa [#allocation3], 1 }
 0x680   :  { %4687 = vsyncpa [#allocation6], 1 }
 0x681   :  { %4688 = vsyncpa [#allocation9], 1 }
 0x682   :  { %4689 = vsyncpa [#allocation12], 1 }
 0x683   :  { %4690 = vsyncpa [#allocation4], 1 }

</bundles_post_ra>
